<compile_context>
chip_gen: v6e
topology: v6e:2x2x1
jax: 0.10.0
libtpu: 0.0.40
codegen_flags: <defaults>
</compile_context>

<pallas_src>
import functools
import math

import jax
import jax.numpy as jnp
from jax.experimental import pallas as pl
from jax.experimental.pallas import tpu as pltpu


def _simplified_sdpa_kernel(x_ref, wt_ref, b_ref, o_ref, slab_ref, *,
                            num_heads, d_k, scale):
    """One block of `bt` batch elements per grid step.

    x_ref    : (bt, NQ, D)   tokens (queries == keys == values, self-attention)
    wt_ref   : (D, D)        fc_o weight, PRE-TRANSPOSED in the wrapper (W.T)
    b_ref    : (1, D)        fc_o bias
    o_ref    : (bt, NQ, D)   output tokens
    slab_ref : (bt*NQ, D)    f32 VMEM scratch holding the concatenated heads
    """
    bt, nq, d_model = x_ref.shape
    x = x_ref[...]                                   # keep native dtype (f32/bf16)

    # Static Python loop over heads: num_heads is small & static, and each
    # head's temporaries die at the slab store, so vreg pressure stays bounded
    # without dynamic-lane-offset slicing.
    for head in range(num_heads):
        lo = head * d_k
        hi = lo + d_k
        xh = x[:, :, lo:hi]                          # (bt, NQ, d_k)

        # Fold the 1/sqrt(d_k) scale into q (NQ*d_k mults vs NQ*NQ on scores).
        q = xh * scale

        # scores: contract the LAST dim of both operands -> no in-kernel .T
        s = jnp.einsum('bqd,bkd->bqk', q, xh,
                       preferred_element_type=jnp.float32)     # (bt, NQ, NQ) f32

        # numerically-stable softmax over keys (kept f32, incl. on v5e)
        s = s - jnp.max(s, axis=-1, keepdims=True)
        p = jnp.exp(s)
        p = p * pl.reciprocal(jnp.sum(p, axis=-1, keepdims=True), approx=True)

        # TODO(synk): nn.Dropout(0.1) on the attention map is omitted
        # (inference / eval-mode semantics -> identity).

        head_out = jnp.einsum('bqk,bkd->bqd', p.astype(x.dtype), xh,
                              preferred_element_type=jnp.float32)  # (bt,NQ,d_k)

        # Concat-then-project: park this head's output at its lane slot.
        slab_ref[:, lo:hi] = head_out.reshape(bt * nq, d_k)

    # Single K=D output-projection matmul (fc_o) with M = bt*NQ rows.
    concat = slab_ref[...]                           # (bt*NQ, D) f32
    wt = wt_ref[...]                                 # (D, D) == W.T
    proj = jnp.dot(concat.astype(wt.dtype), wt,
                   preferred_element_type=jnp.float32)          # (bt*NQ, D)
    proj = proj + b_ref[...].astype(jnp.float32)     # bias broadcast over rows
    o_ref[...] = proj.reshape(bt, nq, d_model).astype(o_ref.dtype)


def _pick_block_batch(b, max_block=8):
    """Largest divisor of b that is <= max_block (batch elements per step)."""
    bt = 1
    for cand in range(1, min(b, max_block) + 1):
        if b % cand == 0:
            bt = cand
    return bt


def simplified_sdpa(x_nchw, fc_o_weight, fc_o_bias, *, num_heads, block_b=None):
    """x_nchw: (B, C, H, W) with C == d_model.  Returns (B, C, H, W)."""
    b, c, h, w = x_nchw.shape
    d_model = c
    assert d_model % num_heads == 0
    d_k = d_model // num_heads
    nq = h * w
    # In-kernel (bt, NQ, d) <-> (bt*NQ, d) regrouping assumes sublane alignment.
    assert nq % 8 == 0, "kernel assumes H*W is a multiple of 8"
    # TODO(synk): for much larger feature maps (NQ^2 scores no longer resident,
    # esp. v7x's 64 MiB VMEM) switch to a flash-style online-softmax key tiling.

    bt = block_b if block_b is not None else _pick_block_batch(b)
    assert b % bt == 0

    # NCHW -> (B, NQ, D)   ('b c h w -> b (h w) c')
    tokens = jnp.transpose(x_nchw.reshape(b, c, nq), (0, 2, 1))
    # Pre-transpose fc_o weight so the kernel contracts without an in-kernel .T
    w_t = jnp.transpose(fc_o_weight)                 # (D_in, D_out)
    bias2d = fc_o_bias.reshape(1, d_model)

    kernel = functools.partial(
        _simplified_sdpa_kernel,
        num_heads=num_heads, d_k=d_k, scale=1.0 / math.sqrt(d_k))

    out_tokens = pl.pallas_call(
        kernel,
        out_shape=jax.ShapeDtypeStruct((b, nq, d_model), tokens.dtype),
        grid_spec=pltpu.PrefetchScalarGridSpec(
            num_scalar_prefetch=0,
            grid=(b // bt,),
            in_specs=[
                pl.BlockSpec((bt, nq, d_model), lambda i: (i, 0, 0)),
                pl.BlockSpec((d_model, d_model), lambda i: (0, 0)),
                pl.BlockSpec((1, d_model), lambda i: (0, 0)),
            ],
            out_specs=pl.BlockSpec((bt, nq, d_model), lambda i: (i, 0, 0)),
            scratch_shapes=[pltpu.VMEM((bt * nq, d_model), jnp.float32)],
        ),
        compiler_params=pltpu.CompilerParams(
            dimension_semantics=("parallel",),
            vmem_limit_bytes=32 * 1024 * 1024),
    )(tokens, w_t, bias2d)

    # (B, NQ, D) -> NCHW   ('b (h w) c -> b c h w')
    return jnp.transpose(out_tokens, (0, 2, 1)).reshape(b, c, h, w)


def _reference(x_nchw, fc_o_weight, fc_o_bias, *, num_heads):
    """Pure-JAX reference mirroring the PyTorch forward (eval mode)."""
    b, c, h, w = x_nchw.shape
    d_model = c
    d_k = d_model // num_heads
    nq = h * w
    q_tokens = jnp.transpose(x_nchw.reshape(b, c, nq), (0, 2, 1))        # (B,NQ,D)
    q = q_tokens.reshape(b, nq, num_heads, d_k).transpose(0, 2, 1, 3)    # (B,H,NQ,dk)
    k = q_tokens.reshape(b, nq, num_heads, d_k).transpose(0, 2, 3, 1)    # (B,H,dk,NK)
    v = q_tokens.reshape(b, nq, num_heads, d_k).transpose(0, 2, 1, 3)    # (B,H,NK,dk)
    att = jnp.matmul(q, k) / jnp.sqrt(jnp.float32(d_k))
    att = jax.nn.softmax(att, axis=-1)
    out = jnp.matmul(att, v)                                             # (B,H,NQ,dk)
    out = out.transpose(0, 2, 1, 3).reshape(b, nq, d_model)
    out = out @ fc_o_weight.T + fc_o_bias
    return jnp.transpose(out, (0, 2, 1)).reshape(b, c, h, w)


if __name__ == "__main__":
    # Module hyper-params (small, consistent with the PyTorch forward).
    B, D_MODEL, H_SP, W_SP = 2, 32, 8, 8       # input NCHW, C == d_model
    NUM_HEADS = 4

    key = jax.random.PRNGKey(0)
    kx, kw = jax.random.split(key)

    x = jax.random.normal(kx, (B, D_MODEL, H_SP, W_SP), dtype=jnp.float32)

    # fc_o init per init_weights(): weight ~ Normal(std=0.001), bias = 0.
    fc_o_weight = 0.001 * jax.random.normal(kw, (D_MODEL, D_MODEL), dtype=jnp.float32)
    fc_o_bias = jnp.zeros((D_MODEL,), dtype=jnp.float32)

    out = simplified_sdpa(x, fc_o_weight, fc_o_bias, num_heads=NUM_HEADS)
    out = jax.block_until_ready(out)

    ref = _reference(x, fc_o_weight, fc_o_bias, num_heads=NUM_HEADS)
    assert out.shape == (B, D_MODEL, H_SP, W_SP)
    # Tolerance accounts for the EUP approx-reciprocal in the softmax divide.
    assert jnp.allclose(out, ref, rtol=1e-3, atol=1e-4), "mismatch vs reference"

    print("KERNEL_OK")
</pallas_src>

<mosaic_0001>
module attributes {stable_mosaic.version = 11 : i64} {
  func.func @_simplified_sdpa_kernel(%arg0: i32, %arg1: memref<2x64x32xf32, #tpu.memory_space<vmem>>, %arg2: memref<32x32xf32, #tpu.memory_space<vmem>>, %arg3: memref<1x32xf32, #tpu.memory_space<vmem>>, %arg4: memref<2x64x32xf32, #tpu.memory_space<vmem>>, %arg5: memref<128x32xf32, #tpu.memory_space<vmem>>) attributes {dimension_semantics = [#tpu.dimension_semantics<parallel>], iteration_bounds = array<i64: 1>, scalar_prefetch = 0 : i64, scratch_operands = 1 : i64, tpu.core_type = #tpu.core_type<tc>, window_params = [{transform_indices = @transform_0, window_bounds = array<i64: 2, 64, 32>}, {pipeline_mode = #tpu.pipeline_mode<synchronous>, transform_indices = @transform_1, window_bounds = array<i64: 32, 32>}, {pipeline_mode = #tpu.pipeline_mode<synchronous>, transform_indices = @transform_2, window_bounds = array<i64: 1, 32>}, {transform_indices = @transform_3, window_bounds = array<i64: 2, 64, 32>}]} {
    %c0 = arith.constant 0 : index
    %c0_0 = arith.constant 0 : index
    %c0_1 = arith.constant 0 : index
    %0 = vector.load %arg1[%c0, %c0_0, %c0_1] : memref<2x64x32xf32, #tpu.memory_space<vmem>>, vector<2x64x32xf32>
    %1 = vector.extract_strided_slice %0 {offsets = [0, 0, 0], sizes = [2, 64, 8], strides = [1, 1, 1]} : vector<2x64x32xf32> to vector<2x64x8xf32>
    %cst = arith.constant 0.353553385 : f32
    %2 = vector.broadcast %cst : f32 to vector<2x64x8xf32>
    %3 = arith.mulf %1, %2 : vector<2x64x8xf32>
    "tpu.trace_start"() <{level = 10 : i32, message = "bqd,bkd->bqk"}> : () -> ()
    %cst_2 = arith.constant dense<0.000000e+00> : vector<2x64x64xf32>
    %4 = tpu.matmul %3, %1, %cst_2 {dimension_numbers = #tpu.dot_dimension_numbers<[2], [2], [1], [1], [0, 0, 0, 1, 1, 1], [0], [0]>} : vector<2x64x8xf32>, vector<2x64x8xf32>, vector<2x64x64xf32> -> vector<2x64x64xf32>
    "tpu.trace_stop"() : () -> ()
    %cst_3 = arith.constant dense<0xFF800000> : vector<2x64xf32>
    %5 = vector.multi_reduction <maximumf>, %4, %cst_3 [2] : vector<2x64x64xf32> to vector<2x64xf32>
    %6 = vector.shape_cast %5 : vector<2x64xf32> to vector<2x64x1xf32>
    %7 = vector.broadcast %6 : vector<2x64x1xf32> to vector<2x64x64xf32>
    %8 = arith.subf %4, %7 : vector<2x64x64xf32>
    %9 = math.exp %8 : vector<2x64x64xf32>
    %cst_4 = arith.constant dense<0.000000e+00> : vector<2x64xf32>
    %10 = vector.multi_reduction <add>, %9, %cst_4 [2] : vector<2x64x64xf32> to vector<2x64xf32>
    %11 = vector.shape_cast %10 : vector<2x64xf32> to vector<2x64x1xf32>
    %12 = tpu.reciprocal %11 {approx = true} : vector<2x64x1xf32> -> vector<2x64x1xf32>
    %13 = vector.broadcast %12 : vector<2x64x1xf32> to vector<2x64x64xf32>
    %14 = arith.mulf %9, %13 : vector<2x64x64xf32>
    "tpu.trace_start"() <{level = 10 : i32, message = "bqk,bkd->bqd"}> : () -> ()
    %cst_5 = arith.constant dense<0.000000e+00> : vector<2x64x8xf32>
    %15 = tpu.matmul %14, %1, %cst_5 {dimension_numbers = #tpu.dot_dimension_numbers<[2], [1], [1], [2], [0, 0, 0, 1, 1, 2], [0], [0]>} : vector<2x64x64xf32>, vector<2x64x8xf32>, vector<2x64x8xf32> -> vector<2x64x8xf32>
    "tpu.trace_stop"() : () -> ()
    %16 = vector.shape_cast %15 : vector<2x64x8xf32> to vector<128x8xf32>
    %c0_6 = arith.constant 0 : index
    %c0_7 = arith.constant 0 : index
    %17 = vector.load %arg5[%c0_6, %c0_7] : memref<128x32xf32, #tpu.memory_space<vmem>>, vector<128x8xf32>
    tpu.vector_store %arg5[%c0_6, %c0_7], %16 {strides = array<i32>} : memref<128x32xf32, #tpu.memory_space<vmem>>, vector<128x8xf32>,
    %18 = vector.extract_strided_slice %0 {offsets = [0, 0, 8], sizes = [2, 64, 8], strides = [1, 1, 1]} : vector<2x64x32xf32> to vector<2x64x8xf32>
    %cst_8 = arith.constant 0.353553385 : f32
    %19 = vector.broadcast %cst_8 : f32 to vector<2x64x8xf32>
    %20 = arith.mulf %18, %19 : vector<2x64x8xf32>
    "tpu.trace_start"() <{level = 10 : i32, message = "bqd,bkd->bqk"}> : () -> ()
    %cst_9 = arith.constant dense<0.000000e+00> : vector<2x64x64xf32>
    %21 = tpu.matmul %20, %18, %cst_9 {dimension_numbers = #tpu.dot_dimension_numbers<[2], [2], [1], [1], [0, 0, 0, 1, 1, 1], [0], [0]>} : vector<2x64x8xf32>, vector<2x64x8xf32>, vector<2x64x64xf32> -> vector<2x64x64xf32>
    "tpu.trace_stop"() : () -> ()
    %cst_10 = arith.constant dense<0xFF800000> : vector<2x64xf32>
    %22 = vector.multi_reduction <maximumf>, %21, %cst_10 [2] : vector<2x64x64xf32> to vector<2x64xf32>
    %23 = vector.shape_cast %22 : vector<2x64xf32> to vector<2x64x1xf32>
    %24 = vector.broadcast %23 : vector<2x64x1xf32> to vector<2x64x64xf32>
    %25 = arith.subf %21, %24 : vector<2x64x64xf32>
    %26 = math.exp %25 : vector<2x64x64xf32>
    %cst_11 = arith.constant dense<0.000000e+00> : vector<2x64xf32>
    %27 = vector.multi_reduction <add>, %26, %cst_11 [2] : vector<2x64x64xf32> to vector<2x64xf32>
    %28 = vector.shape_cast %27 : vector<2x64xf32> to vector<2x64x1xf32>
    %29 = tpu.reciprocal %28 {approx = true} : vector<2x64x1xf32> -> vector<2x64x1xf32>
    %30 = vector.broadcast %29 : vector<2x64x1xf32> to vector<2x64x64xf32>
    %31 = arith.mulf %26, %30 : vector<2x64x64xf32>
    "tpu.trace_start"() <{level = 10 : i32, message = "bqk,bkd->bqd"}> : () -> ()
    %cst_12 = arith.constant dense<0.000000e+00> : vector<2x64x8xf32>
    %32 = tpu.matmul %31, %18, %cst_12 {dimension_numbers = #tpu.dot_dimension_numbers<[2], [1], [1], [2], [0, 0, 0, 1, 1, 2], [0], [0]>} : vector<2x64x64xf32>, vector<2x64x8xf32>, vector<2x64x8xf32> -> vector<2x64x8xf32>
    "tpu.trace_stop"() : () -> ()
    %33 = vector.shape_cast %32 : vector<2x64x8xf32> to vector<128x8xf32>
    %c0_13 = arith.constant 0 : index
    %c8 = arith.constant 8 : index
    %34 = vector.load %arg5[%c0_13, %c8] : memref<128x32xf32, #tpu.memory_space<vmem>>, vector<128x8xf32>
    tpu.vector_store %arg5[%c0_13, %c8], %33 {strides = array<i32>} : memref<128x32xf32, #tpu.memory_space<vmem>>, vector<128x8xf32>,
    %35 = vector.extract_strided_slice %0 {offsets = [0, 0, 16], sizes = [2, 64, 8], strides = [1, 1, 1]} : vector<2x64x32xf32> to vector<2x64x8xf32>
    %cst_14 = arith.constant 0.353553385 : f32
    %36 = vector.broadcast %cst_14 : f32 to vector<2x64x8xf32>
    %37 = arith.mulf %35, %36 : vector<2x64x8xf32>
    "tpu.trace_start"() <{level = 10 : i32, message = "bqd,bkd->bqk"}> : () -> ()
    %cst_15 = arith.constant dense<0.000000e+00> : vector<2x64x64xf32>
    %38 = tpu.matmul %37, %35, %cst_15 {dimension_numbers = #tpu.dot_dimension_numbers<[2], [2], [1], [1], [0, 0, 0, 1, 1, 1], [0], [0]>} : vector<2x64x8xf32>, vector<2x64x8xf32>, vector<2x64x64xf32> -> vector<2x64x64xf32>
    "tpu.trace_stop"() : () -> ()
    %cst_16 = arith.constant dense<0xFF800000> : vector<2x64xf32>
    %39 = vector.multi_reduction <maximumf>, %38, %cst_16 [2] : vector<2x64x64xf32> to vector<2x64xf32>
    %40 = vector.shape_cast %39 : vector<2x64xf32> to vector<2x64x1xf32>
    %41 = vector.broadcast %40 : vector<2x64x1xf32> to vector<2x64x64xf32>
    %42 = arith.subf %38, %41 : vector<2x64x64xf32>
    %43 = math.exp %42 : vector<2x64x64xf32>
    %cst_17 = arith.constant dense<0.000000e+00> : vector<2x64xf32>
    %44 = vector.multi_reduction <add>, %43, %cst_17 [2] : vector<2x64x64xf32> to vector<2x64xf32>
    %45 = vector.shape_cast %44 : vector<2x64xf32> to vector<2x64x1xf32>
    %46 = tpu.reciprocal %45 {approx = true} : vector<2x64x1xf32> -> vector<2x64x1xf32>
    %47 = vector.broadcast %46 : vector<2x64x1xf32> to vector<2x64x64xf32>
    %48 = arith.mulf %43, %47 : vector<2x64x64xf32>
    "tpu.trace_start"() <{level = 10 : i32, message = "bqk,bkd->bqd"}> : () -> ()
    %cst_18 = arith.constant dense<0.000000e+00> : vector<2x64x8xf32>
    %49 = tpu.matmul %48, %35, %cst_18 {dimension_numbers = #tpu.dot_dimension_numbers<[2], [1], [1], [2], [0, 0, 0, 1, 1, 2], [0], [0]>} : vector<2x64x64xf32>, vector<2x64x8xf32>, vector<2x64x8xf32> -> vector<2x64x8xf32>
    "tpu.trace_stop"() : () -> ()
    %50 = vector.shape_cast %49 : vector<2x64x8xf32> to vector<128x8xf32>
    %c0_19 = arith.constant 0 : index
    %c16 = arith.constant 16 : index
    %51 = vector.load %arg5[%c0_19, %c16] : memref<128x32xf32, #tpu.memory_space<vmem>>, vector<128x8xf32>
    tpu.vector_store %arg5[%c0_19, %c16], %50 {strides = array<i32>} : memref<128x32xf32, #tpu.memory_space<vmem>>, vector<128x8xf32>,
    %52 = vector.extract_strided_slice %0 {offsets = [0, 0, 24], sizes = [2, 64, 8], strides = [1, 1, 1]} : vector<2x64x32xf32> to vector<2x64x8xf32>
    %cst_20 = arith.constant 0.353553385 : f32
    %53 = vector.broadcast %cst_20 : f32 to vector<2x64x8xf32>
    %54 = arith.mulf %52, %53 : vector<2x64x8xf32>
    "tpu.trace_start"() <{level = 10 : i32, message = "bqd,bkd->bqk"}> : () -> ()
    %cst_21 = arith.constant dense<0.000000e+00> : vector<2x64x64xf32>
    %55 = tpu.matmul %54, %52, %cst_21 {dimension_numbers = #tpu.dot_dimension_numbers<[2], [2], [1], [1], [0, 0, 0, 1, 1, 1], [0], [0]>} : vector<2x64x8xf32>, vector<2x64x8xf32>, vector<2x64x64xf32> -> vector<2x64x64xf32>
    "tpu.trace_stop"() : () -> ()
    %cst_22 = arith.constant dense<0xFF800000> : vector<2x64xf32>
    %56 = vector.multi_reduction <maximumf>, %55, %cst_22 [2] : vector<2x64x64xf32> to vector<2x64xf32>
    %57 = vector.shape_cast %56 : vector<2x64xf32> to vector<2x64x1xf32>
    %58 = vector.broadcast %57 : vector<2x64x1xf32> to vector<2x64x64xf32>
    %59 = arith.subf %55, %58 : vector<2x64x64xf32>
    %60 = math.exp %59 : vector<2x64x64xf32>
    %cst_23 = arith.constant dense<0.000000e+00> : vector<2x64xf32>
    %61 = vector.multi_reduction <add>, %60, %cst_23 [2] : vector<2x64x64xf32> to vector<2x64xf32>
    %62 = vector.shape_cast %61 : vector<2x64xf32> to vector<2x64x1xf32>
    %63 = tpu.reciprocal %62 {approx = true} : vector<2x64x1xf32> -> vector<2x64x1xf32>
    %64 = vector.broadcast %63 : vector<2x64x1xf32> to vector<2x64x64xf32>
    %65 = arith.mulf %60, %64 : vector<2x64x64xf32>
    "tpu.trace_start"() <{level = 10 : i32, message = "bqk,bkd->bqd"}> : () -> ()
    %cst_24 = arith.constant dense<0.000000e+00> : vector<2x64x8xf32>
    %66 = tpu.matmul %65, %52, %cst_24 {dimension_numbers = #tpu.dot_dimension_numbers<[2], [1], [1], [2], [0, 0, 0, 1, 1, 2], [0], [0]>} : vector<2x64x64xf32>, vector<2x64x8xf32>, vector<2x64x8xf32> -> vector<2x64x8xf32>
    "tpu.trace_stop"() : () -> ()
    %67 = vector.shape_cast %66 : vector<2x64x8xf32> to vector<128x8xf32>
    %c0_25 = arith.constant 0 : index
    %c24 = arith.constant 24 : index
    %68 = vector.load %arg5[%c0_25, %c24] : memref<128x32xf32, #tpu.memory_space<vmem>>, vector<128x8xf32>
    tpu.vector_store %arg5[%c0_25, %c24], %67 {strides = array<i32>} : memref<128x32xf32, #tpu.memory_space<vmem>>, vector<128x8xf32>,
    %c0_26 = arith.constant 0 : index
    %c0_27 = arith.constant 0 : index
    %69 = vector.load %arg5[%c0_26, %c0_27] : memref<128x32xf32, #tpu.memory_space<vmem>>, vector<128x32xf32>
    %c0_28 = arith.constant 0 : index
    %c0_29 = arith.constant 0 : index
    %70 = vector.load %arg2[%c0_28, %c0_29] : memref<32x32xf32, #tpu.memory_space<vmem>>, vector<32x32xf32>
    %cst_30 = arith.constant dense<0.000000e+00> : vector<128x32xf32>
    %71 = tpu.matmul %69, %70, %cst_30 {dimension_numbers = #tpu.dot_dimension_numbers<[1], [0], [0], [1], [0, 0, 1, 1], [], []>} : vector<128x32xf32>, vector<32x32xf32>, vector<128x32xf32> -> vector<128x32xf32>
    %c0_31 = arith.constant 0 : index
    %c0_32 = arith.constant 0 : index
    %72 = vector.load %arg3[%c0_31, %c0_32] : memref<1x32xf32, #tpu.memory_space<vmem>>, vector<1x32xf32>
    %73 = vector.broadcast %72 : vector<1x32xf32> to vector<128x32xf32>
    %74 = arith.addf %71, %73 : vector<128x32xf32>
    %75 = vector.shape_cast %74 : vector<128x32xf32> to vector<2x64x32xf32>
    %c0_33 = arith.constant 0 : index
    %c0_34 = arith.constant 0 : index
    %c0_35 = arith.constant 0 : index
    %76 = vector.load %arg4[%c0_33, %c0_34, %c0_35] : memref<2x64x32xf32, #tpu.memory_space<vmem>>, vector<2x64x32xf32>
    tpu.vector_store %arg4[%c0_33, %c0_34, %c0_35], %75 {strides = array<i32>} : memref<2x64x32xf32, #tpu.memory_space<vmem>>, vector<2x64x32xf32>,
    return
  }
  func.func @transform_0(%arg0: i32) -> (i32, i32, i32) {
    %c0_i32 = arith.constant 0 : i32
    %c0_i32_0 = arith.constant 0 : i32
    %c0_i32_1 = arith.constant 0 : i32
    return %arg0, %c0_i32, %c0_i32_0 : i32, i32, i32
  }
  func.func @transform_1(%arg0: i32) -> (i32, i32) {
    %c0_i32 = arith.constant 0 : i32
    %c0_i32_0 = arith.constant 0 : i32
    %c0_i32_1 = arith.constant 0 : i32
    return %c0_i32, %c0_i32_0 : i32, i32
  }
  func.func @transform_2(%arg0: i32) -> (i32, i32) {
    %c0_i32 = arith.constant 0 : i32
    %c0_i32_0 = arith.constant 0 : i32
    %c0_i32_1 = arith.constant 0 : i32
    return %c0_i32, %c0_i32_0 : i32, i32
  }
  func.func @transform_3(%arg0: i32) -> (i32, i32, i32) {
    %c0_i32 = arith.constant 0 : i32
    %c0_i32_0 = arith.constant 0 : i32
    %c0_i32_1 = arith.constant 0 : i32
    return %arg0, %c0_i32, %c0_i32_0 : i32, i32, i32
  }
}

</mosaic_0001>

<bundles_post_ra>
// kernel: tpu_custom_call.1
= control target key start
LH: loop header
LB: loop body
LE: loop exit
PB: predicated region body
PF: predicated region fallthrough
CT: control target
= control target key end

     0   :  { %vm46_vm0 = vcmask 64512   ;;  %s4895_s26 = smov 120   ;;  %vm353_vm1 = vcmask 523264   ;;  %s4896_s20 = smov 112   ;;  %vm1656_vm2 = vcmask 130112   ;;  %vm2525_vm3 = vcmask 195712   ;;  %s6850_s0 = inlined_call_operand.vmem [shape: f32[2,64,32], index: 0, kind: input, shape index: {}]   ;;  %s6851_s1 = inlined_call_operand.vmem [shape: f32[32,32], index: 1, kind: input, shape index: {}]   ;;  %s6852_s2 = inlined_call_operand.vmem [shape: f32[1,32], index: 2, kind: input, shape index: {}]   ;;  %s6853_s3 = inlined_call_operand.vmem [shape: f32[2,64,32], index: 3, kind: output, shape index: {}]  }
   0x1   :  { %v4924_v0 = vld [vmem:[%s6850_s0 + $0x38] sm:$0xff]  ;;  %v4934_v2 = vld [vmem:[%s6850_s0 + $0x30] sm:$0xff]  ;;  %v4956_v4 = vld [vmem:[%s6850_s0 + $0x28] sm:$0xff]  ;;  %s4899_s25 = smov 16   ;;  %s4900_s7 = smov 24   ;;  %vm3394_vm4 = vcmask 261312  }
   0x2   :  { %v4929_v1 = vld [vmem:[%s6850_s0 + $0x78] sm:$0xff]  ;;  %4137 = vmatprep.subr.msk.mxu0 %vm46_vm0, %v4924_v0  ;;  %v4943_v3 = vld [vmem:[%s6850_s0 + $0x70] sm:$0xff]  ;;  %v4961_v5 = vld [vmem:[%s6850_s0 + $0x68] sm:$0xff]  ;;  %834 = vrot.lane.b32.xlu0 %v4924_v0, %s4895_s26  ;;  %v5135_v26 = vmul.f32 0.35355338, %v4956_v4  ;;  %vm3438_vm5 = vcmask 261120  }
   0x3   :  { %4165 = vmatprep.subr.msk.mxu1 %vm46_vm0, %v4929_v1  ;;  %4138 = vmatpush3.xpose.msk.msra.mxu0 %vm46_vm0, %v4924_v0  ;;  %v4966_v6 = vld [vmem:[%s6850_s0] sm:$0xff]  ;;  %v5020_v12 = vld [vmem:[%s6850_s0 + $0x18] sm:$0xff]  ;;  %v5042_v14 = vld [vmem:[%s6850_s0 + $0x10] sm:$0xff]  ;;  %v5138_v27 = vmul.f32 0.35355338, %v4961_v5 }
   0x4   :  { %4166 = vmatpush3.xpose.msk.msra.mxu1 %vm46_vm0, %v4929_v1  ;;  %4139 = vmatprep.subr.msk.mxu0 %vm46_vm0, %v4934_v2  ;;  %v4973_v7 = vld [vmem:[%s6850_s0 + $0x40] sm:$0xff]  ;;  %v4976_v8 = vmul.f32 0.35355338, %v4966_v6  ;;  %v5025_v13 = vld [vmem:[%s6850_s0 + $0x58] sm:$0xff]  ;;  %v5047_v15 = vld [vmem:[%s6850_s0 + $0x50] sm:$0xff] }
   0x5   :  { %4167 = vmatprep.subr.msk.mxu1 %vm46_vm0, %v4943_v3  ;;  %832 = vrot.lane.b32.xlu1 %v4934_v2, %s4895_s26  ;;  %v4985_v9 = vmul.f32 0.35355338, %v4973_v7  ;;  %v4994_v10 = vld [vmem:[%s6850_s0 + $0x20] sm:$0xff]  ;;  %v15_v16 = vld [vmem:[%s6850_s0 + $0x8] sm:$0xff]  ;;  %v5102_v20 = vmul.f32 0.35355338, %v5042_v14 }
   0x6   :  { %6867 = vst [vmem:[#allocation3_spill] sm:$0xff] %v4976_v8  ;;  %v4999_v11 = vld [vmem:[%s6850_s0 + $0x60] sm:$0xff]  ;;  %4153 = vmatprep.mubr.msk.f32.mxu0 %vm46_vm0, %v4976_v8  ;;  %830 = vrot.lane.b32.xlu0 %v4956_v4, %s4895_s26  ;;  %v5067_v17 = vld [vmem:[%s6850_s0 + $0x48] sm:$0xff]  ;;  %v5090_v18 = vmul.f32 0.35355338, %v15_v16 }
   0x7   :  { %4140 = vmatpush3.xpose.msk.msra.mxu0 %vm46_vm0, %v4934_v2  ;;  %4181 = vmatprep.mubr.msk.f32.mxu1 %vm46_vm0, %v4985_v9  ;;  %v5093_v19 = vmul.f32 0.35355338, %v5067_v17  ;;  %v5105_v21 = vmul.f32 0.35355338, %v5047_v15  ;;  %v5113_v22 = vmul.f32 0.35355338, %v5020_v12 }
   0x8   :  { %4168 = vmatpush3.xpose.msk.msra.mxu1 %vm46_vm0, %v4943_v3  ;;  %4141 = vmatprep.subr.msk.mxu0 %vm46_vm0, %v4956_v4  ;;  %6868 = vst [vmem:[#allocation4_spill] sm:$0xff] %v5090_v18  ;;  %v5116_v23 = vmul.f32 0.35355338, %v5025_v13  ;;  %v5123_v24 = vmul.f32 0.35355338, %v4994_v10 }
   0x9   :  { %4169 = vmatprep.subr.msk.mxu1 %vm46_vm0, %v4961_v5  ;;  %828 = vrot.lane.b32.xlu1 %v4994_v10, %s4895_s26  ;;  %v5126_v25 = vmul.f32 0.35355338, %v4999_v11  ;;  %v5145_v28 = vmul.f32 0.35355338, %v4934_v2  ;;  %v5148_v29 = vmul.f32 0.35355338, %v4943_v3 }
   0xa   :  { %826 = vrot.lane.b32.xlu0 %v5020_v12, %s4895_s26  ;;  %v5157_v30 = vmul.f32 0.35355338, %v4924_v0  ;;  %v5160_v31 = vmul.f32 0.35355338, %v4929_v1 }
   0xb   :  { %4142 = vmatpush3.xpose.msk.msra.mxu0 %vm46_vm0, %v4956_v4 }
   0xc   :  { %4170 = vmatpush3.xpose.msk.msra.mxu1 %vm46_vm0, %v4961_v5  ;;  %4143 = vmatprep.subr.msk.mxu0 %vm46_vm0, %v4994_v10 }
   0xd   :  { %4171 = vmatprep.subr.msk.mxu1 %vm46_vm0, %v4999_v11  ;;  %1003 = vrot.lane.b32.xlu1 %v4929_v1, %s4895_s26 }
   0xe   :  { %824 = vrot.lane.b32.xlu0 %v5042_v14, %s4895_s26 }
   0xf   :  { %4144 = vmatpush3.xpose.msk.msra.mxu0 %vm46_vm0, %v4994_v10 }
  0x10   :  { %4172 = vmatpush3.xpose.msk.msra.mxu1 %vm46_vm0, %v4999_v11  ;;  %4145 = vmatprep.subr.msk.mxu0 %vm46_vm0, %v5020_v12 }
  0x11   :  { %4173 = vmatprep.subr.msk.mxu1 %vm46_vm0, %v5025_v13  ;;  %1001 = vrot.lane.b32.xlu1 %v4943_v3, %s4895_s26 }
  0x12   :  { %822 = vrot.lane.b32.xlu0 %v15_v16, %s4895_s26 }
  0x13   :  { %4146 = vmatpush3.xpose.msk.msra.mxu0 %vm46_vm0, %v5020_v12 }
  0x14   :  { %4174 = vmatpush3.xpose.msk.msra.mxu1 %vm46_vm0, %v5025_v13  ;;  %4147 = vmatprep.subr.msk.mxu0 %vm46_vm0, %v5042_v14 }
  0x15   :  { %4175 = vmatprep.subr.msk.mxu1 %vm46_vm0, %v5047_v15  ;;  %999 = vrot.lane.b32.xlu1 %v4961_v5, %s4895_s26 }
  0x16   :  { %820 = vrot.lane.b32.xlu0 %v4966_v6, %s4895_s26 }
  0x17   :  { %4148 = vmatpush3.xpose.msk.msra.mxu0 %vm46_vm0, %v5042_v14 }
  0x18   :  { %4176 = vmatpush3.xpose.msk.msra.mxu1 %vm46_vm0, %v5047_v15  ;;  %4149 = vmatprep.subr.msk.mxu0 %vm46_vm0, %v15_v16 }
  0x19   :  { %4177 = vmatprep.subr.msk.mxu1 %vm46_vm0, %v5067_v17  ;;  %997 = vrot.lane.b32.xlu1 %v4999_v11, %s4895_s26 }
  0x1a   :  { %804 = vrot.lane.b32.xlu0 %v4976_v8, %s4895_s26 }
  0x1b   :  { %4150 = vmatpush3.xpose.msk.msra.mxu0 %vm46_vm0, %v15_v16 }
  0x1c   :  { %4178 = vmatpush3.xpose.msk.msra.mxu1 %vm46_vm0, %v5067_v17  ;;  %4151 = vmatprep.subr.msk.mxu0 %vm46_vm0, %v4966_v6 }
  0x1d   :  { %4179 = vmatprep.subr.msk.mxu1 %vm46_vm0, %v4973_v7 }
  0x1f   :  { %4152 = vmatpush3.xpose.msk.msra.mxu0 %vm46_vm0, %v4966_v6 }
  0x20   :  { %4180 = vmatpush3.xpose.msk.msra.mxu1 %vm46_vm0, %v4973_v7 }
  0x21   :  { %4193 = vmatprep.subr.mxu1 %v4924_v0 }
  0x22   :  { %4154 = vmatmul.mubr.msk.f32.vlgmr.msra.gmra.mxu0 %vm46_vm0, %v5090_v18 }
  0x23   :  { %4182 = vmatmul.mubr.msk.f32.vlgmr.msra.gmra.mxu1 %vm46_vm0, %v5093_v19  ;;  %4156 = vmatprep.mubr.msk.f32.mxu0 %vm46_vm0, %v5102_v20 }
  0x24   :  { %4184 = vmatprep.mubr.msk.f32.mxu1 %vm46_vm0, %v5105_v21  ;;  %4194 = vmatpush3.msra.mxu1 %v4924_v0 }
  0x25   :  { %4195 = vmatprep.subr.mxu1 %v4934_v2 }
  0x26   :  { %4157 = vmatmul.mubr.msk.f32.gmra.mxu0 %vm46_vm0, %v5113_v22  ;;  %4196 = vmatpush3.msra.mxu1 %v4934_v2 }
  0x27   :  { %4185 = vmatmul.mubr.msk.f32.gmra.mxu1 %vm46_vm0, %v5116_v23  ;;  %4159 = vmatprep.mubr.msk.f32.mxu0 %vm46_vm0, %v5123_v24 }
  0x28   :  { %4187 = vmatprep.mubr.msk.f32.mxu1 %vm46_vm0, %v5126_v25  ;;  %4197 = vmatprep.subr.mxu1 %v4956_v4 }
  0x29   :  { %4198 = vmatpush3.msra.mxu1 %v4956_v4 }
  0x2a   :  { %4160 = vmatmul.mubr.msk.f32.gmra.mxu0 %vm46_vm0, %v5135_v26  ;;  %4199 = vmatprep.subr.mxu1 %v4994_v10 }
  0x2b   :  { %4188 = vmatmul.mubr.msk.f32.gmra.mxu1 %vm46_vm0, %v5138_v27  ;;  %4162 = vmatprep.mubr.msk.f32.mxu0 %vm46_vm0, %v5145_v28 }
  0x2c   :  { %4190 = vmatprep.mubr.msk.f32.mxu1 %vm46_vm0, %v5148_v29  ;;  %4200 = vmatpush3.msra.mxu1 %v4994_v10 }
  0x2d   :  { %4201 = vmatprep.subr.mxu1 %v5020_v12 }
  0x2e   :  { %4163 = vmatmul.mubr.msk.f32.gmra.mxu0 %vm46_vm0, %v5157_v30  ;;  %4202 = vmatpush3.msra.mxu1 %v5020_v12 }
  0x2f   :  { %4191 = vmatmul.mubr.msk.f32.gmra.mxu1 %vm46_vm0, %v5160_v31  ;;  %4203 = vmatprep.subr.mxu1 %v5042_v14 }
  0x30   :  { %4204 = vmatpush3.msra.mxu1 %v5042_v14 }
  0x31   :  { %4205 = vmatprep.subr.mxu1 %v15_v16 }
  0x32   :  { %4206 = vmatpush3.msra.mxu1 %v15_v16 }
  0x33   :  { %4207 = vmatprep.subr.mxu1 %v4966_v6 }
  0x34   :  { %4208 = vmatpush3.msra.mxu1 %v4966_v6 }
  0x35   :  { %4221 = vmatprep.subr.mxu1 %v4929_v1 }
  0x74   :  { %v5180_v32 = vpop.permute.xlu0 %834 }
  0x75   :  { %4249 = vmatprep.subr.msk.mxu0 %vm46_vm0, %v5180_v32 }
  0x76   :  { %4250 = vmatpush3.xpose.msk.msra.mxu0 %vm46_vm0, %v5180_v32 }
  0x77   :  { %v5182_v33 = vpop.permute.xlu1 %832 }
  0x78   :  { %4251 = vmatprep.subr.msk.mxu0 %vm46_vm0, %v5182_v33  ;;  %v5190_v34 = vpop.permute.xlu0 %830 }
  0x7a   :  { %4252 = vmatpush3.xpose.msk.msra.mxu0 %vm46_vm0, %v5182_v33 }
  0x7b   :  { %4253 = vmatprep.subr.msk.mxu0 %vm46_vm0, %v5190_v34  ;;  %v5196_v35 = vpop.permute.xlu1 %828 }
  0x7c   :  { %v5202_v36 = vpop.permute.xlu0 %826 }
  0x7e   :  { %4254 = vmatpush3.xpose.msk.msra.mxu0 %vm46_vm0, %v5190_v34 }
  0x7f   :  { %4255 = vmatprep.subr.msk.mxu0 %vm46_vm0, %v5196_v35 }
  0x80   :  { %v5208_v37 = vpop.permute.xlu0 %824 }
  0x82   :  { %4256 = vmatpush3.xpose.msk.msra.mxu0 %vm46_vm0, %v5196_v35 }
  0x83   :  { %4257 = vmatprep.subr.msk.mxu0 %vm46_vm0, %v5202_v36 }
  0x84   :  { %v5214_v38 = vpop.permute.xlu0 %822 }
  0x86   :  { %4258 = vmatpush3.xpose.msk.msra.mxu0 %vm46_vm0, %v5202_v36 }
  0x87   :  { %4259 = vmatprep.subr.msk.mxu0 %vm46_vm0, %v5208_v37 }
  0x88   :  { %v5220_v39 = vpop.permute.xlu0 %820 }
  0x8a   :  { %4260 = vmatpush3.xpose.msk.msra.mxu0 %vm46_vm0, %v5208_v37 }
  0x8b   :  { %4261 = vmatprep.subr.msk.mxu0 %vm46_vm0, %v5214_v38 }
  0x8c   :  { %v805_v40 = vpop.permute.xlu0 %804 }
  0x8d   :  { %4265 = vmatprep.mubr.msk.f32.mxu0 %vm46_vm0, %v805_v40 }
  0x8e   :  { %4262 = vmatpush3.xpose.msk.msra.mxu0 %vm46_vm0, %v5214_v38 }
  0x8f   :  { %4263 = vmatprep.subr.msk.mxu0 %vm46_vm0, %v5220_v39 }
  0x92   :  { %4264 = vmatpush3.xpose.msk.msra.mxu0 %vm46_vm0, %v5220_v39 }
  0x93   :  { %4305 = vmatprep.subr.mxu0 %v5180_v32 }
  0xe2   :  { %v4155_v41 = vpop.f32.mrf.mxu0 }
  0xe3   :  { %v4183_v42 = vpop.f32.mrf.mxu1  ;;  %v357_v44 = vsel %vm353_vm1, %v4155_v41, -inf }
  0xe4   :  { %v381_v43 = vsel %vm353_vm1, %v4183_v42, -inf  ;;  %358 = vmax.xlane.f32.xlu0 %v357_v44  ;;  %v161_v45 = vpop.f32.mrf.mxu0 }
  0xe5   :  { %382 = vmax.xlane.f32.xlu1 %v381_v43  ;;  %v5232_v46 = vpop.f32.mrf.mxu1  ;;  %v354_v48 = vsel %vm353_vm1, %v161_v45, -inf  ;;  %v5286_v43 = vpop.permute.xlu1 %1003 }
  0xe6   :  { %v4158_v47 = vpop.f32.mrf.mxu0  ;;  %v378_v54 = vsel %vm353_vm1, %v5232_v46, -inf }
  0xe7   :  { %v363_v49 = vsel %vm353_vm1, %v4158_v47, -inf  ;;  %v5236_v50 = vpop.f32.mrf.mxu1 }
  0xe8   :  { %355 = vmax.xlane.f32.xlu0 %v354_v48  ;;  %v5238_v51 = vpop.f32.mrf.mxu0  ;;  %v387_v52 = vsel %vm353_vm1, %v5236_v50, -inf }
  0xe9   :  { %364 = vmax.xlane.f32.xlu1 %v363_v49  ;;  %v5246_v55 = vpop.f32.mrf.mxu1  ;;  %v360_v59 = vsel %vm353_vm1, %v5238_v51, -inf  ;;  %v5288_v44 = vpop.permute.xlu1 %1001 }
  0xea   :  { %v5242_v53 = vpop.f32.mrf.mxu0  ;;  %v384_v58 = vsel %vm353_vm1, %v5246_v55, -inf  ;;  %6869 = vst [vmem:[#allocation5_spill] sm:$0xff] %v5288_v44 }
  0xeb   :  { %v5250_v57 = vpop.f32.mrf.mxu1  ;;  %v369_v60 = vsel %vm353_vm1, %v5242_v53, -inf }
  0xec   :  { %379 = vmax.xlane.f32.xlu0 %v378_v54  ;;  %v5248_v56 = vpop.f32.mrf.mxu0  ;;  %v393_v0 = vsel %vm353_vm1, %v5250_v57, -inf }
  0xed   :  { %388 = vmax.xlane.f32.xlu1 %v387_v52  ;;  %v366_v61 = vsel %vm353_vm1, %v5248_v56, -inf  ;;  %v5260_v62 = vpop.f32.mrf.mxu1  ;;  %v5290_v48 = vpop.permute.xlu1 %999 }
  0xee   :  { %v5262_v63 = vpop.f32.mrf.mxu0  ;;  %v390_v2 = vsel %vm353_vm1, %v5260_v62, -inf  ;;  %6870 = vst [vmem:[#allocation6_spill] sm:$0xff] %v5290_v48 }
  0xef   :  { %v5270_v6 = vpop.f32.mrf.mxu1  ;;  %v375_v10 = vsel %vm353_vm1, %v5262_v63, -inf }
  0xf0   :  { %385 = vmax.xlane.f32.xlu0 %v384_v58  ;;  %v5268_v4 = vpop.f32.mrf.mxu0  ;;  %v399_v40 = vsel %vm353_vm1, %v5270_v6, -inf }
  0xf1   :  { %361 = vmax.xlane.f32.xlu1 %v360_v59  ;;  %v372_v12 = vsel %vm353_vm1, %v5268_v4, -inf  ;;  %v5276_v14 = vpop.f32.mrf.mxu1  ;;  %v5292_v49 = vpop.permute.xlu1 %997 }
  0xf2   :  { %v396_v16 = vsel %vm353_vm1, %v5276_v14, -inf  ;;  %6871 = vst [vmem:[#allocation7_spill] sm:$0xff] %v5292_v49 }
  0xf4   :  { %367 = vmax.xlane.f32.xlu0 %v366_v61 }
  0xf5   :  { %370 = vmax.xlane.f32.xlu1 %v369_v60 }
  0xf8   :  { %391 = vmax.xlane.f32.xlu0 %v390_v2 }
  0xf9   :  { %394 = vmax.xlane.f32.xlu1 %v393_v0 }
  0xfc   :  { %373 = vmax.xlane.f32.xlu0 %v372_v12 }
  0xfd   :  { %376 = vmax.xlane.f32.xlu1 %v375_v10 }
 0x100   :  { %397 = vmax.xlane.f32.xlu0 %v396_v16 }
 0x10e   :  { %806 = vrot.lane.b32.xlu1 %v5090_v18, %s4895_s26 }
 0x116   :  { %995 = vrot.lane.b32.xlu0 %v5025_v13, %s4895_s26 }
 0x132   :  { %400 = vmax.xlane.f32.xlu1 %v399_v40 }
 0x16d   :  { %v359_v54 = vpop.xlane.xlu0 %358 }
 0x16e   :  { %v383_v52 = vpop.xlane.xlu1 %382  ;;  %v403_v59 = vsub.f32 %v4155_v41, %v359_v54 }
 0x16f   :  { %v411_v58 = vsub.f32 %v4183_v42, %v383_v52 }
 0x170   :  { %v420_v60 = vmul.f32 1.442695, %v403_v59 }
 0x171   :  { %v436_v61 = vmul.f32 1.442695, %v411_v58  ;;  %v356_v0 = vpop.xlane.xlu0 %355 }
 0x172   :  { %v365_v2 = vpop.xlane.xlu1 %364  ;;  %v402_v10 = vsub.f32 %v161_v45, %v356_v0  ;;  %4623 = vpow2.f32 %v420_v60 }
 0x173   :  { %v405_v12 = vsub.f32 %v4158_v47, %v365_v2  ;;  %4625 = vpow2.f32 %v436_v61 }
 0x174   :  { %v418_v16 = vmul.f32 1.442695, %v402_v10 }
 0x175   :  { %v424_v40 = vmul.f32 1.442695, %v405_v12  ;;  %v380_v8 = vpop.xlane.xlu0 %379 }
 0x176   :  { %v389_v18 = vpop.xlane.xlu1 %388  ;;  %4627 = vpow2.f32 %v418_v16  ;;  %v410_v48 = vsub.f32 %v5232_v46, %v380_v8 }
 0x177   :  { %v413_v49 = vsub.f32 %v5236_v50, %v389_v18  ;;  %4629 = vpow2.f32 %v424_v40 }
 0x178   :  { %v434_v44 = vmul.f32 1.442695, %v410_v48 }
 0x179   :  { %v440_v42 = vmul.f32 1.442695, %v413_v49  ;;  %v386_v41 = vpop.xlane.xlu0 %385 }
 0x17a   :  { %v362_v52 = vpop.xlane.xlu1 %361  ;;  %4631 = vpow2.f32 %v434_v44  ;;  %v412_v45 = vsub.f32 %v5246_v55, %v386_v41 }
 0x17b   :  { %v404_v47 = vsub.f32 %v5238_v51, %v362_v52  ;;  %4633 = vpow2.f32 %v440_v42 }
 0x17c   :  { %v438_v54 = vmul.f32 1.442695, %v412_v45 }
 0x17d   :  { %v422_v58 = vmul.f32 1.442695, %v404_v47  ;;  %v368_v60 = vpop.xlane.xlu0 %367 }
 0x17e   :  { %v371_v59 = vpop.xlane.xlu1 %370  ;;  %4635 = vpow2.f32 %v438_v54  ;;  %v406_v18 = vsub.f32 %v5248_v56, %v368_v60 }
 0x17f   :  { %v407_v8 = vsub.f32 %v5242_v53, %v371_v59  ;;  %v5300_v46 = vpop.eup %4623  ;;  %4637 = vpow2.f32 %v422_v58 }
 0x180   :  { %v426_v48 = vmul.f32 1.442695, %v406_v18  ;;  %v453_v51 = vsel %vm353_vm1, %v5300_v46, 0.0  ;;  %v5304_v55 = vpop.eup %4625 }
 0x181   :  { %v428_v50 = vmul.f32 1.442695, %v407_v8  ;;  %v392_v49 = vpop.xlane.xlu0 %391  ;;  %454 = vadd.xlane.f32.xlu1 %v453_v51  ;;  %v477_v12 = vsel %vm353_vm1, %v5304_v55, 0.0 }
 0x182   :  { %v395_v44 = vpop.xlane.xlu1 %394  ;;  %v414_v0 = vsub.f32 %v5260_v62, %v392_v49 }
 0x183   :  { %4639 = vpow2.f32 %v428_v50  ;;  %v415_v61 = vsub.f32 %v5250_v57, %v395_v44  ;;  %v5308_v53 = vpop.eup %4627 }
 0x184   :  { %4641 = vpow2.f32 %v426_v48  ;;  %v450_v2 = vsel %vm353_vm1, %v5308_v53, 0.0  ;;  %v442_v10 = vmul.f32 1.442695, %v414_v0  ;;  %v5314_v42 = vpop.eup %4629 }
 0x185   :  { %v444_v56 = vmul.f32 1.442695, %v415_v61  ;;  %451 = vadd.xlane.f32.xlu0 %v450_v2  ;;  %v374_v40 = vpop.xlane.xlu0 %373  ;;  %478 = vadd.xlane.f32.xlu1 %v477_v12  ;;  %v459_v58 = vsel %vm353_vm1, %v5314_v42, 0.0 }
 0x186   :  { %v377_v16 = vpop.xlane.xlu1 %376  ;;  %v408_v62 = vsub.f32 %v5268_v4, %v374_v40 }
 0x187   :  { %4643 = vpow2.f32 %v444_v56  ;;  %v409_v57 = vsub.f32 %v5262_v63, %v377_v16  ;;  %v5318_v41 = vpop.eup %4631 }
 0x188   :  { %v430_v52 = vmul.f32 1.442695, %v408_v62  ;;  %v474_v45 = vsel %vm353_vm1, %v5318_v41, 0.0  ;;  %v5322_v47 = vpop.eup %4633  ;;  %4645 = vpow2.f32 %v442_v10 }
 0x189   :  { %v432_v54 = vmul.f32 1.442695, %v409_v57  ;;  %475 = vadd.xlane.f32.xlu0 %v474_v45  ;;  %460 = vadd.xlane.f32.xlu1 %v459_v58  ;;  %v483_v60 = vsel %vm353_vm1, %v5322_v47, 0.0 }
 0x18a   :  { %v807_v59 = vpop.permute.xlu1 %806  ;;  %4647 = vpow2.f32 %v430_v52 }
 0x18b   :  { %4266 = vmatmul.mubr.msk.f32.vlgmr.msra.gmra.mxu0 %vm46_vm0, %v807_v59  ;;  %v5327_v63 = vpop.eup %4635  ;;  %4649 = vpow2.f32 %v432_v54 }
 0x18c   :  { %4306 = vmatpush3.msra.mxu0 %v5180_v32  ;;  %v480_v4 = vsel %vm353_vm1, %v5327_v63, 0.0  ;;  %v5335_v8 = vpop.eup %4637 }
 0x18d   :  { %4307 = vmatprep.subr.mxu0 %v5182_v33  ;;  %484 = vadd.xlane.f32.xlu0 %v483_v60  ;;  %v456_v50 = vsel %vm353_vm1, %v5335_v8, 0.0 }
 0x18e   :  { %4308 = vmatpush3.msra.mxu0 %v5182_v33  ;;  %481 = vadd.xlane.f32.xlu1 %v480_v4 }
 0x18f   :  { %4309 = vmatprep.subr.mxu0 %v5190_v34 }
 0x190   :  { %v5339_v18 = vpop.eup %4639  ;;  %4310 = vmatpush3.msra.mxu0 %v5190_v34 }
 0x191   :  { %4311 = vmatprep.subr.mxu0 %v5196_v35  ;;  %v465_v32 = vsel %vm353_vm1, %v5339_v18, 0.0  ;;  %v5347_v48 = vpop.eup %4641  ;;  %457 = vadd.xlane.f32.xlu0 %v456_v50 }
 0x192   :  { %4312 = vmatpush3.msra.mxu0 %v5196_v35  ;;  %466 = vadd.xlane.f32.xlu1 %v465_v32  ;;  %v462_v44 = vsel %vm353_vm1, %v5347_v48, 0.0 }
 0x193   :  { %4313 = vmatprep.subr.mxu0 %v5202_v36 }
 0x194   :  { %v5351_v33 = vpop.eup %4643  ;;  %4314 = vmatpush3.msra.mxu0 %v5202_v36 }
 0x195   :  { %4315 = vmatprep.subr.mxu0 %v5208_v37  ;;  %v489_v34 = vsel %vm353_vm1, %v5351_v33, 0.0  ;;  %463 = vadd.xlane.f32.xlu0 %v462_v44  ;;  %v5360_v35 = vpop.eup %4645 }
 0x196   :  { %4316 = vmatpush3.msra.mxu0 %v5208_v37  ;;  %490 = vadd.xlane.f32.xlu1 %v489_v34  ;;  %v486_v36 = vsel %vm353_vm1, %v5360_v35, 0.0 }
 0x197   :  { %4317 = vmatprep.subr.mxu0 %v5214_v38  ;;  %v5364_v49 = vpop.eup %4647 }
 0x198   :  { %4318 = vmatpush3.msra.mxu0 %v5214_v38  ;;  %v468_v37 = vsel %vm353_vm1, %v5364_v49, 0.0  ;;  %v5372_v51 = vpop.eup %4649  ;;  %v398_v38 = vpop.xlane.xlu0 %397 }
 0x199   :  { %4319 = vmatprep.subr.mxu0 %v5220_v39  ;;  %469 = vadd.xlane.f32.xlu0 %v468_v37  ;;  %v471_v61 = vsel %vm353_vm1, %v5372_v51, 0.0 }
 0x19a   :  { %4320 = vmatpush3.msra.mxu0 %v5220_v39  ;;  %487 = vadd.xlane.f32.xlu1 %v486_v36  ;;  %v416_v39 = vsub.f32 %v5276_v14, %v398_v38 }
 0x19c   :  { %v446_v0 = vmul.f32 1.442695, %v416_v39 }
 0x19e   :  { %472 = vadd.xlane.f32.xlu1 %v471_v61  ;;  %4651 = vpow2.f32 %v446_v0 }
 0x1ab   :  { %v5382_v12 = vpop.eup %4651 }
 0x1ac   :  { %v492_v16 = vsel %vm353_vm1, %v5382_v12, 0.0 }
 0x1af   :  { %993 = vrot.lane.b32.xlu1 %v5047_v15, %s4895_s26  ;;  %991 = vrot.lane.b32.xlu0 %v5067_v17, %s4895_s26 }
 0x1bb   :  { %v401_v56 = vpop.xlane.xlu1 %400 }
 0x1bc   :  { %v417_v2 = vsub.f32 %v5270_v6, %v401_v56  ;;  %v5420_v6 = vpop.permute.xlu0 %995 }
 0x1be   :  { %v448_v10 = vmul.f32 1.442695, %v417_v2 }
 0x1c0   :  { %4653 = vpow2.f32 %v448_v10 }
 0x1cd   :  { %v5386_v40 = vpop.eup %4653 }
 0x1ce   :  { %493 = vadd.xlane.f32.xlu0 %v492_v16  ;;  %v495_v57 = vsel %vm353_vm1, %v5386_v40, 0.0 }
 0x1d3   :  { %496 = vadd.xlane.f32.xlu1 %v495_v57 }
 0x1e4   :  { %989 = vrot.lane.b32.xlu1 %v4973_v7, %s4895_s26  ;;  %973 = vrot.lane.b32.xlu0 %v4985_v9, %s4895_s26 }
 0x1e8   :  { %975 = vrot.lane.b32.xlu1 %v5093_v19, %s4895_s26  ;;  %808 = vrot.lane.b32.xlu0 %v5102_v20, %s4895_s26 }
 0x1ec   :  { %810 = vrot.lane.b32.xlu1 %v5113_v22, %s4895_s26  ;;  %812 = vrot.lane.b32.xlu0 %v5123_v24, %s4895_s26 }
 0x1f0   :  { %814 = vrot.lane.b32.xlu1 %v5135_v26, %s4895_s26  ;;  %816 = vrot.lane.b32.xlu0 %v5145_v28, %s4895_s26 }
 0x1f4   :  { %818 = vrot.lane.b32.xlu1 %v5157_v30, %s4895_s26  ;;  %977 = vrot.lane.b32.xlu0 %v5105_v21, %s4895_s26 }
 0x1f8   :  { %979 = vrot.lane.b32.xlu1 %v5116_v23, %s4895_s26  ;;  %981 = vrot.lane.b32.xlu0 %v5126_v25, %s4895_s26 }
 0x1fc   :  { %983 = vrot.lane.b32.xlu1 %v5138_v27, %s4895_s26  ;;  %985 = vrot.lane.b32.xlu0 %v5148_v29, %s4895_s26 }
 0x200   :  { %987 = vrot.lane.b32.xlu1 %v5160_v31, %s4895_s26 }
 0x20a   :  { %v455_v14 = vpop.xlane.xlu1 %454 }
 0x20b   :  { %4655 = vrcp.f32 %v455_v14 }
 0x20e   :  { %v452_v62 = vpop.xlane.xlu0 %451  ;;  %v479_v52 = vpop.xlane.xlu1 %478 }
 0x20f   :  { %4657 = vrcp.f32 %v452_v62 }
 0x212   :  { %v476_v45 = vpop.xlane.xlu0 %475  ;;  %v461_v54 = vpop.xlane.xlu1 %460 }
 0x213   :  { %4659 = vrcp.f32 %v461_v54 }
 0x216   :  { %v485_v58 = vpop.xlane.xlu0 %484 }
 0x217   :  { %v482_v59 = vpop.xlane.xlu1 %481 }
 0x218   :  { %v4656_v60 = vpop.eup %4655 }
 0x219   :  { %v515_v44 = vmul.f32 %v4656_v60, %v5300_v46 }
 0x21a   :  { %v458_v4 = vpop.xlane.xlu0 %457 }
 0x21b   :  { %v467_v32 = vpop.xlane.xlu1 %466  ;;  %4661 = vrcp.f32 %v458_v4 }
 0x21c   :  { %v4658_v50 = vpop.eup %4657  ;;  %4663 = vrcp.f32 %v467_v32 }
 0x21d   :  { %v514_v34 = vmul.f32 %v4658_v50, %v5308_v53 }
 0x21e   :  { %v464_v36 = vpop.xlane.xlu0 %463 }
 0x21f   :  { %v491_v37 = vpop.xlane.xlu1 %490  ;;  %4665 = vrcp.f32 %v464_v36  ;;  %4209 = vmatprep.mubr.msk.f32.mxu1 %vm353_vm1, %v514_v34 }
 0x220   :  { %4210 = vmatmul.mubr.msk.f32.vlgmr.msra.gmra.mxu1 %vm353_vm1, %v515_v44  ;;  %v4660_v46 = vpop.eup %4659 }
 0x221   :  { %4222 = vmatpush3.msra.mxu1 %v4929_v1 }
 0x222   :  { %4223 = vmatprep.subr.mxu1 %v4943_v3  ;;  %v470_v38 = vpop.xlane.xlu0 %469 }
 0x223   :  { %v488_v61 = vpop.xlane.xlu1 %487  ;;  %4224 = vmatpush3.msra.mxu1 %v4943_v3  ;;  %4667 = vrcp.f32 %v470_v38  ;;  %v517_v3 = vmul.f32 %v4660_v46, %v5314_v42 }
 0x224   :  { %4225 = vmatprep.subr.mxu1 %v4961_v5  ;;  %4669 = vrcp.f32 %v476_v45 }
 0x225   :  { %4226 = vmatpush3.msra.mxu1 %v4961_v5 }
 0x226   :  { %4227 = vmatprep.subr.mxu1 %v4999_v11  ;;  %v992_v54 = vpop.permute.xlu0 %991 }
 0x227   :  { %v473_v53 = vpop.xlane.xlu1 %472  ;;  %4228 = vmatpush3.msra.mxu1 %v4999_v11 }
 0x228   :  { %v4662_v39 = vpop.eup %4661  ;;  %4671 = vrcp.f32 %v473_v53  ;;  %4229 = vmatprep.subr.mxu1 %v5025_v13 }
 0x229   :  { %4230 = vmatpush3.msra.mxu1 %v5025_v13  ;;  %v516_v1 = vmul.f32 %v4662_v39, %v5335_v8  ;;  %4673 = vrcp.f32 %v479_v52  ;;  %v4664_v5 = vpop.eup %4663 }
 0x22a   :  { %4231 = vmatprep.subr.mxu1 %v5047_v15  ;;  %4675 = vrcp.f32 %v482_v59  ;;  %v519_v42 = vmul.f32 %v4664_v5, %v5339_v18 }
 0x22b   :  { %4232 = vmatpush3.msra.mxu1 %v5047_v15  ;;  %4212 = vmatprep.mubr.msk.f32.mxu1 %vm353_vm1, %v516_v1  ;;  %4677 = vrcp.f32 %v485_v58  ;;  %v994_v52 = vpop.permute.xlu1 %993 }
 0x22c   :  { %v4666_v11 = vpop.eup %4665  ;;  %4233 = vmatprep.subr.mxu1 %v5067_v17  ;;  %4213 = vmatmul.mubr.msk.f32.gmra.mxu1 %vm353_vm1, %v517_v3  ;;  %4679 = vrcp.f32 %v488_v61 }
 0x22d   :  { %4234 = vmatpush3.msra.mxu1 %v5067_v17  ;;  %v518_v13 = vmul.f32 %v4666_v11, %v5347_v48  ;;  %4681 = vrcp.f32 %v491_v37 }
 0x22e   :  { %4235 = vmatprep.subr.mxu1 %v4973_v7 }
 0x22f   :  { %4236 = vmatpush3.msra.mxu1 %v4973_v7  ;;  %4215 = vmatprep.mubr.msk.f32.mxu1 %vm353_vm1, %v518_v13 }
 0x230   :  { %4277 = vmatprep.subr.msk.mxu1 %vm46_vm0, %v5286_v43  ;;  %4216 = vmatmul.mubr.msk.f32.gmra.mxu1 %vm353_vm1, %v519_v42  ;;  %v4668_v15 = vpop.eup %4667 }
 0x231   :  { %v520_v17 = vmul.f32 %v4668_v15, %v5364_v49  ;;  %v4670_v8 = vpop.eup %4669 }
 0x232   :  { %v522_v7 = vmul.f32 %v4670_v8, %v5318_v41 }
 0x233   :  { %4218 = vmatprep.mubr.msk.f32.mxu1 %vm353_vm1, %v520_v17 }
 0x235   :  { %v4672_v48 = vpop.eup %4671 }
 0x236   :  { %v521_v18 = vmul.f32 %v4672_v48, %v5372_v51  ;;  %v4674_v0 = vpop.eup %4673  ;;  %v6872_v51 = vld [vmem:[#allocation5_spill] sm:$0xff] }
 0x237   :  { %v4676_v56 = vpop.eup %4675  ;;  %v523_v2 = vmul.f32 %v4674_v0, %v5304_v55  ;;  %v6873_v55 = vld [vmem:[#allocation6_spill] sm:$0xff] }
 0x238   :  { %4219 = vmatmul.mubr.msk.f32.gmra.mxu1 %vm353_vm1, %v521_v18  ;;  %v4678_v10 = vpop.eup %4677  ;;  %v524_v16 = vmul.f32 %v4676_v56, %v5327_v63 }
 0x239   :  { %4237 = vmatprep.mubr.msk.f32.mxu1 %vm353_vm1, %v522_v7  ;;  %v4680_v49 = vpop.eup %4679  ;;  %v525_v41 = vmul.f32 %v4678_v10, %v5322_v47  ;;  %v6874_v47 = vld [vmem:[#allocation7_spill] sm:$0xff] }
 0x23a   :  { %v4682_v57 = vpop.eup %4681  ;;  %v526_v14 = vmul.f32 %v4680_v49, %v5360_v35 }
 0x23b   :  { %v527_v63 = vmul.f32 %v4682_v57, %v5351_v33 }
 0x23c   :  { %4238 = vmatmul.mubr.msk.f32.vlgmr.msra.gmra.mxu1 %vm353_vm1, %v523_v2 }
 0x23d   :  { %4278 = vmatpush3.xpose.msk.msra.mxu1 %vm46_vm0, %v5286_v43  ;;  %4240 = vmatprep.mubr.msk.f32.mxu1 %vm353_vm1, %v524_v16 }
 0x23e   :  { %4279 = vmatprep.subr.msk.mxu1 %vm46_vm0, %v6872_v51 }
 0x240   :  { %4241 = vmatmul.mubr.msk.f32.gmra.mxu1 %vm353_vm1, %v525_v41 }
 0x241   :  { %4280 = vmatpush3.xpose.msk.msra.mxu1 %vm46_vm0, %v6872_v51  ;;  %4243 = vmatprep.mubr.msk.f32.mxu1 %vm353_vm1, %v526_v14 }
 0x242   :  { %4281 = vmatprep.subr.msk.mxu1 %vm46_vm0, %v6873_v55 }
 0x244   :  { %4244 = vmatmul.mubr.msk.f32.gmra.mxu1 %vm353_vm1, %v527_v63 }
 0x245   :  { %4282 = vmatpush3.xpose.msk.msra.mxu1 %vm46_vm0, %v6873_v55 }
 0x246   :  { %4283 = vmatprep.subr.msk.mxu1 %vm46_vm0, %v6874_v47 }
 0x249   :  { %4284 = vmatpush3.xpose.msk.msra.mxu1 %vm46_vm0, %v6874_v47 }
 0x24a   :  { %4285 = vmatprep.subr.msk.mxu1 %vm46_vm0, %v5420_v6 }
 0x24b   :  { %v5483_v35 = vpop.f32.mrf.mxu0 }
 0x24c   :  { %v1145_v62 = vsel %vm353_vm1, %v5483_v35, -inf }
 0x24d   :  { %1146 = vmax.xlane.f32.xlu1 %v1145_v62  ;;  %v5487_v33 = vpop.f32.mrf.mxu0  ;;  %4286 = vmatpush3.xpose.msk.msra.mxu1 %vm46_vm0, %v5420_v6 }
 0x24e   :  { %v1142_v45 = vsel %vm353_vm1, %v5487_v33, -inf  ;;  %4287 = vmatprep.subr.msk.mxu1 %vm46_vm0, %v994_v52 }
 0x24f   :  { %1143 = vmax.xlane.f32.xlu0 %v1142_v45 }
 0x251   :  { %4288 = vmatpush3.xpose.msk.msra.mxu1 %vm46_vm0, %v994_v52 }
 0x252   :  { %4289 = vmatprep.subr.msk.mxu1 %vm46_vm0, %v992_v54 }
 0x255   :  { %4290 = vmatpush3.xpose.msk.msra.mxu1 %vm46_vm0, %v992_v54 }
 0x257   :  { %v494_v58 = vpop.xlane.xlu0 %493 }
 0x258   :  { %4683 = vrcp.f32 %v494_v58 }
 0x25b   :  { %v974_v4 = vpop.permute.xlu0 %973 }
 0x25c   :  { %v497_v59 = vpop.xlane.xlu1 %496 }
 0x25d   :  { %4685 = vrcp.f32 %v497_v59  ;;  %v5570_v59 = vld [vmem:[%s6850_s0 + $0x30] sm:$0xff] }
 0x25f   :  { %v809_v32 = vpop.permute.xlu0 %808 }
 0x260   :  { %v990_v60 = vpop.permute.xlu1 %989  ;;  %4268 = vmatprep.mubr.msk.f32.mxu0 %vm46_vm0, %v809_v32  ;;  %v5591_v32 = vld [vmem:[%s6850_s0 + $0x78] sm:$0xff] }
 0x261   :  { %4291 = vmatprep.subr.msk.mxu1 %vm46_vm0, %v990_v60 }
 0x262   :  { %4292 = vmatpush3.xpose.msk.msra.mxu1 %vm46_vm0, %v990_v60 }
 0x263   :  { %4333 = vmatprep.subr.mxu1 %v5286_v43  ;;  %v813_v34 = vpop.permute.xlu0 %812 }
 0x264   :  { %v976_v50 = vpop.permute.xlu1 %975 }
 0x265   :  { %v4684_v44 = vpop.eup %4683 }
 0x266   :  { %v528_v36 = vmul.f32 %v4684_v44, %v5382_v12  ;;  %v5612_v44 = vld [vmem:[%s6850_s0 + $0x18] sm:$0xff] }
 0x267   :  { %v817_v61 = vpop.permute.xlu0 %816 }
 0x268   :  { %v811_v37 = vpop.permute.xlu1 %810  ;;  %4246 = vmatprep.mubr.msk.f32.mxu1 %vm353_vm1, %v528_v36  ;;  %v5619_v36 = vld [vmem:[%s6850_s0 + $0x68] sm:$0xff] }
 0x269   :  { %4269 = vmatmul.mubr.msk.f32.gmra.mxu0 %vm46_vm0, %v811_v37  ;;  %v5626_v37 = vld [vmem:[%s6850_s0 + $0x10] sm:$0xff] }
 0x26a   :  { %v4686_v38 = vpop.eup %4685  ;;  %4271 = vmatprep.mubr.msk.f32.mxu0 %vm46_vm0, %v813_v34  ;;  %v5605_v34 = vld [vmem:[%s6850_s0 + $0x70] sm:$0xff]  ;;  %6875 = vst [vmem:[#allocation5_spill] sm:$0xff] %v5626_v37 }
 0x26b   :  { %v529_v46 = vmul.f32 %v4686_v38, %v5386_v40  ;;  %v978_v39 = vpop.permute.xlu0 %977  ;;  %v5640_v38 = vld [vmem:[%s6850_s0 + $0x8] sm:$0xff] }
 0x26c   :  { %v815_v53 = vpop.permute.xlu1 %814  ;;  %6877 = vst [vmem:[#allocation7_spill] sm:$0xff] %v5640_v38 }
 0x26d   :  { %4247 = vmatmul.mubr.msk.f32.gmra.mxu1 %vm353_vm1, %v529_v46  ;;  %4272 = vmatmul.mubr.msk.f32.gmra.mxu0 %vm46_vm0, %v815_v53  ;;  %v6878_v46 = vld [vmem:[#allocation4_spill] sm:$0xff]  ;;  %v5649_v53 = vld [vmem:[%s6850_s0] sm:$0xff] }
 0x26e   :  { %4293 = vmatprep.mubr.msk.f32.mxu1 %vm46_vm0, %v974_v4  ;;  %4274 = vmatprep.mubr.msk.f32.mxu0 %vm46_vm0, %v817_v61  ;;  %v5577_v4 = vld [vmem:[%s6850_s0 + $0x20] sm:$0xff]  ;;  %6879 = vst [vmem:[#allocation8_spill] sm:$0xff] %v5649_v53 }
 0x26f   :  { %v982_v40 = vpop.permute.xlu0 %981  ;;  %v5633_v61 = vld [vmem:[%s6850_s0 + $0x60] sm:$0xff] }
 0x270   :  { %v819_v12 = vpop.permute.xlu1 %818  ;;  %6876 = vst [vmem:[#allocation6_spill] sm:$0xff] %v5633_v61 }
 0x271   :  { %4275 = vmatmul.mubr.msk.f32.gmra.mxu0 %vm46_vm0, %v819_v12  ;;  %4294 = vmatmul.mubr.msk.f32.vlgmr.msra.gmra.mxu1 %vm46_vm0, %v976_v50  ;;  %v5598_v50 = vld [vmem:[%s6850_s0 + $0x28] sm:$0xff] }
 0x272   :  { %4334 = vmatpush3.msra.mxu1 %v5286_v43  ;;  %4296 = vmatprep.mubr.msk.f32.mxu1 %vm46_vm0, %v978_v39  ;;  %v6880_v39 = vld [vmem:[#allocation3_spill] sm:$0xff] }
 0x273   :  { %4335 = vmatprep.subr.mxu1 %v6872_v51  ;;  %v986_v3 = vpop.permute.xlu0 %985 }
 0x274   :  { %4336 = vmatpush3.msra.mxu1 %v6872_v51  ;;  %v980_v1 = vpop.permute.xlu1 %979 }
 0x275   :  { %4337 = vmatprep.subr.mxu1 %v6873_v55  ;;  %4297 = vmatmul.mubr.msk.f32.gmra.mxu1 %vm46_vm0, %v980_v1 }
 0x276   :  { %4338 = vmatpush3.msra.mxu1 %v6873_v55  ;;  %4299 = vmatprep.mubr.msk.f32.mxu1 %vm46_vm0, %v982_v40 }
 0x277   :  { %4339 = vmatprep.subr.mxu1 %v6874_v47 }
 0x278   :  { %4340 = vmatpush3.msra.mxu1 %v6874_v47  ;;  %v984_v43 = vpop.permute.xlu1 %983 }
 0x279   :  { %4341 = vmatprep.subr.mxu1 %v5420_v6  ;;  %4300 = vmatmul.mubr.msk.f32.gmra.mxu1 %vm46_vm0, %v984_v43 }
 0x27a   :  { %4342 = vmatpush3.msra.mxu1 %v5420_v6  ;;  %4302 = vmatprep.mubr.msk.f32.mxu1 %vm46_vm0, %v986_v3 }
 0x27b   :  { %4343 = vmatprep.subr.mxu1 %v994_v52 }
 0x27c   :  { %4344 = vmatpush3.msra.mxu1 %v994_v52  ;;  %v988_v5 = vpop.permute.xlu1 %987 }
 0x27d   :  { %4345 = vmatprep.subr.mxu1 %v992_v54  ;;  %4303 = vmatmul.mubr.msk.f32.gmra.mxu1 %vm46_vm0, %v988_v5 }
 0x27e   :  { %4346 = vmatpush3.msra.mxu1 %v992_v54 }
 0x27f   :  { %4347 = vmatprep.subr.mxu1 %v990_v60 }
 0x280   :  { %4348 = vmatpush3.msra.mxu1 %v990_v60  ;;  %v5584_v60 = vld [vmem:[%s6850_s0 + $0x38] sm:$0xff] }
 0x2d6   :  { %v1147_v12 = vpop.xlane.xlu1 %1146 }
 0x2d7   :  { %v1191_v1 = vsub.f32 %v5483_v35, %v1147_v12 }
 0x2d8   :  { %v1144_v40 = vpop.xlane.xlu0 %1143 }
 0x2d9   :  { %v1190_v43 = vsub.f32 %v5487_v33, %v1144_v40  ;;  %v1208_v3 = vmul.f32 1.442695, %v1191_v1 }
 0x2db   :  { %v1206_v5 = vmul.f32 1.442695, %v1190_v43  ;;  %4687 = vpow2.f32 %v1208_v3 }
 0x2dd   :  { %4689 = vpow2.f32 %v1206_v5 }
 0x2e0   :  { %v4211_v11 = vpop.f32.mrf.mxu1 }
 0x2e1   :  { %789 = vst.msk [vmem:[#allocation2 + $0x8] sm:$0xff] %vm46_vm0, %v4211_v11 }
 0x2e2   :  { %v620_v13 = vpop.f32.mrf.mxu1 }
 0x2e3   :  { %788 = vst.msk [vmem:[#allocation2] sm:$0xff] %vm46_vm0, %v620_v13 }
 0x2e8   :  { %v5657_v11 = vpop.eup %4687 }
 0x2ea   :  { %v5659_v13 = vpop.eup %4689 }
 0x2ec   :  { %v4214_v42 = vpop.f32.mrf.mxu1 }
 0x2ed   :  { %791 = vst.msk [vmem:[#allocation2 + $0x18] sm:$0xff] %vm46_vm0, %v4214_v42  ;;  %v1241_v42 = vsel %vm353_vm1, %v5657_v11, 0.0 }
 0x2ee   :  { %v630_v6 = vpop.f32.mrf.mxu1 }
 0x2ef   :  { %790 = vst.msk [vmem:[#allocation2 + $0x10] sm:$0xff] %vm46_vm0, %v630_v6  ;;  %v1238_v6 = vsel %vm353_vm1, %v5659_v13, 0.0 }
 0x2f0   :  { %v4217_v15 = vpop.f32.mrf.mxu1 }
 0x2f1   :  { %793 = vst.msk [vmem:[#allocation2 + $0x28] sm:$0xff] %vm46_vm0, %v4217_v15 }
 0x2f2   :  { %v640_v17 = vpop.f32.mrf.mxu1 }
 0x2f3   :  { %792 = vst.msk [vmem:[#allocation2 + $0x20] sm:$0xff] %vm46_vm0, %v640_v17 }
 0x2f8   :  { %v4220_v8 = vpop.f32.mrf.mxu1 }
 0x2f9   :  { %795 = vst.msk [vmem:[#allocation2 + $0x38] sm:$0xff] %vm46_vm0, %v4220_v8 }
 0x2fa   :  { %v650_v48 = vpop.f32.mrf.mxu1 }
 0x2fb   :  { %794 = vst.msk [vmem:[#allocation2 + $0x30] sm:$0xff] %vm46_vm0, %v650_v48 }
 0x2fc   :  { %v4239_v18 = vpop.f32.mrf.mxu1 }
 0x2fd   :  { %797 = vst.msk [vmem:[#allocation2 + $0x48] sm:$0xff] %vm46_vm0, %v4239_v18 }
 0x2fe   :  { %v749_v0 = vpop.f32.mrf.mxu1 }
 0x2ff   :  { %796 = vst.msk [vmem:[#allocation2 + $0x40] sm:$0xff] %vm46_vm0, %v749_v0 }
 0x300   :  { %v4242_v7 = vpop.f32.mrf.mxu1 }
 0x301   :  { %799 = vst.msk [vmem:[#allocation2 + $0x58] sm:$0xff] %vm46_vm0, %v4242_v7 }
 0x302   :  { %v759_v56 = vpop.f32.mrf.mxu1 }
 0x303   :  { %798 = vst.msk [vmem:[#allocation2 + $0x50] sm:$0xff] %vm46_vm0, %v759_v56 }
 0x304   :  { %v4245_v2 = vpop.f32.mrf.mxu1 }
 0x305   :  { %801 = vst.msk [vmem:[#allocation2 + $0x68] sm:$0xff] %vm46_vm0, %v4245_v2 }
 0x306   :  { %v769_v10 = vpop.f32.mrf.mxu1 }
 0x307   :  { %800 = vst.msk [vmem:[#allocation2 + $0x60] sm:$0xff] %vm46_vm0, %v769_v10 }
 0x329   :  { %v5541_v16 = vpop.f32.mrf.mxu0 }
 0x32a   :  { %v1151_v49 = vsel %vm353_vm1, %v5541_v16, -inf }
 0x32b   :  { %1152 = vmax.xlane.f32.xlu1 %v1151_v49  ;;  %v5545_v51 = vpop.f32.mrf.mxu0 }
 0x32c   :  { %v1148_v41 = vsel %vm353_vm1, %v5545_v51, -inf }
 0x32d   :  { %v4248_v57 = vpop.f32.mrf.mxu1  ;;  %1149 = vmax.xlane.f32.xlu0 %v1148_v41  ;;  %v5549_v14 = vpop.f32.mrf.mxu0 }
 0x32e   :  { %803 = vst.msk [vmem:[#allocation2 + $0x78] sm:$0xff] %vm46_vm0, %v4248_v57  ;;  %v1157_v55 = vsel %vm353_vm1, %v5549_v14, -inf }
 0x32f   :  { %v779_v63 = vpop.f32.mrf.mxu1  ;;  %1158 = vmax.xlane.f32.xlu1 %v1157_v55  ;;  %v5554_v47 = vpop.f32.mrf.mxu0 }
 0x330   :  { %802 = vst.msk [vmem:[#allocation2 + $0x70] sm:$0xff] %vm46_vm0, %v779_v63  ;;  %v1154_v62 = vsel %vm353_vm1, %v5554_v47, -inf }
 0x331   :  { %1155 = vmax.xlane.f32.xlu0 %v1154_v62  ;;  %v5559_v52 = vpop.f32.mrf.mxu0  ;;  %v5671_v55 = vpop.f32.mrf.mxu1 }
 0x332   :  { %v1163_v45 = vsel %vm353_vm1, %v5559_v52, -inf }
 0x333   :  { %1164 = vmax.xlane.f32.xlu1 %v1163_v45  ;;  %v5563_v54 = vpop.f32.mrf.mxu0 }
 0x334   :  { %v1160_v58 = vsel %vm353_vm1, %v5563_v54, -inf }
 0x335   :  { %1161 = vmax.xlane.f32.xlu0 %v1160_v58 }
 0x344   :  { %1701 = vrot.lane.b32.xlu1 %v5570_v59, %s4896_s20 }
 0x348   :  { %1697 = vrot.lane.b32.xlu1 %v5577_v4, %s4896_s20 }
 0x34b   :  { %1703 = vrot.lane.b32.xlu0 %v5584_v60, %s4896_s20 }
 0x34c   :  { %1872 = vrot.lane.b32.xlu1 %v5591_v32, %s4896_s20 }
 0x34f   :  { %1699 = vrot.lane.b32.xlu0 %v5598_v50, %s4896_s20 }
 0x350   :  { %1870 = vrot.lane.b32.xlu1 %v5605_v34, %s4896_s20 }
 0x353   :  { %1695 = vrot.lane.b32.xlu0 %v5612_v44, %s4896_s20 }
 0x354   :  { %1868 = vrot.lane.b32.xlu1 %v5619_v36, %s4896_s20 }
 0x357   :  { %1693 = vrot.lane.b32.xlu0 %v5626_v37, %s4896_s20 }
 0x358   :  { %1866 = vrot.lane.b32.xlu1 %v5633_v61, %s4896_s20 }
 0x35b   :  { %1691 = vrot.lane.b32.xlu0 %v5640_v38, %s4896_s20 }
 0x35c   :  { %1675 = vrot.lane.b32.xlu1 %v6878_v46, %s4896_s20 }
 0x35f   :  { %1689 = vrot.lane.b32.xlu0 %v5649_v53, %s4896_s20 }
 0x363   :  { %1673 = vrot.lane.b32.xlu0 %v6880_v39, %s4896_s20 }
 0x380   :  { %1242 = vadd.xlane.f32.xlu1 %v1241_v42 }
 0x382   :  { %1239 = vadd.xlane.f32.xlu0 %v1238_v6 }
 0x3b4   :  { %v1153_v15 = vpop.xlane.xlu1 %1152 }
 0x3b5   :  { %v1193_v35 = vsub.f32 %v5541_v16, %v1153_v15 }
 0x3b6   :  { %v1150_v33 = vpop.xlane.xlu0 %1149 }
 0x3b7   :  { %v1212_v17 = vmul.f32 1.442695, %v1193_v35  ;;  %v1192_v8 = vsub.f32 %v5545_v51, %v1150_v33 }
 0x3b8   :  { %v1159_v48 = vpop.xlane.xlu1 %1158 }
 0x3b9   :  { %4691 = vpow2.f32 %v1212_v17  ;;  %v1210_v18 = vmul.f32 1.442695, %v1192_v8  ;;  %v1195_v0 = vsub.f32 %v5549_v14, %v1159_v48 }
 0x3ba   :  { %v1156_v7 = vpop.xlane.xlu0 %1155 }
 0x3bb   :  { %4693 = vpow2.f32 %v1210_v18  ;;  %v1216_v56 = vmul.f32 1.442695, %v1195_v0  ;;  %v1194_v2 = vsub.f32 %v5554_v47, %v1156_v7  ;;  %v5679_v47 = vpop.f32.mrf.mxu1  ;;  %v1169_v0 = vsel %vm353_vm1, %v5671_v55, -inf }
 0x3bc   :  { %v1165_v10 = vpop.xlane.xlu1 %1164 }
 0x3bd   :  { %4695 = vpow2.f32 %v1216_v56  ;;  %v1214_v49 = vmul.f32 1.442695, %v1194_v2  ;;  %v1197_v41 = vsub.f32 %v5559_v52, %v1165_v10  ;;  %v5685_v58 = vpop.f32.mrf.mxu1  ;;  %v1166_v2 = vsel %vm353_vm1, %v5679_v47, -inf }
 0x3be   :  { %v1162_v16 = vpop.xlane.xlu0 %1161  ;;  %v1175_v48 = vsel %vm353_vm1, %v5685_v58, -inf }
 0x3bf   :  { %4697 = vpow2.f32 %v1214_v49  ;;  %v1220_v57 = vmul.f32 1.442695, %v1197_v41  ;;  %v1196_v51 = vsub.f32 %v5563_v54, %v1162_v16  ;;  %v5699_v3 = vpop.f32.mrf.mxu1 }
 0x3c0   :  { %v5673_v63 = vpop.permute.xlu1 %1701  ;;  %v1172_v49 = vsel %vm353_vm1, %v5699_v3, -inf }
 0x3c1   :  { %4699 = vpow2.f32 %v1220_v57  ;;  %v1218_v14 = vmul.f32 1.442695, %v1196_v51  ;;  %v5709_v35 = vpop.f32.mrf.mxu1 }
 0x3c2   :  { %v5675_v62 = vpop.permute.xlu0 %1703  ;;  %v1181_v7 = vsel %vm353_vm1, %v5709_v35, -inf }
 0x3c3   :  { %4701 = vpow2.f32 %v1218_v14  ;;  %4361 = vmatprep.subr.msk.mxu0 %vm46_vm0, %v5675_v62  ;;  %v5719_v18 = vpop.f32.mrf.mxu1 }
 0x3c4   :  { %v5681_v52 = vpop.permute.xlu1 %1697  ;;  %v1178_v41 = vsel %vm353_vm1, %v5719_v18, -inf }
 0x3c5   :  { %v5725_v56 = vpop.f32.mrf.mxu1 }
 0x3c6   :  { %v5683_v45 = vpop.eup %4691  ;;  %v1187_v10 = vsel %vm353_vm1, %v5725_v56, -inf  ;;  %v5739_v51 = vpop.permute.xlu0 %1699 }
 0x3c7   :  { %v1247_v54 = vsel %vm353_vm1, %v5683_v45, 0.0  ;;  %v5735_v16 = vpop.f32.mrf.mxu1 }
 0x3c8   :  { %v5689_v12 = vpop.eup %4693  ;;  %1248 = vadd.xlane.f32.xlu1 %v1247_v54  ;;  %v5691_v40 = vpop.permute.xlu1 %1872  ;;  %v1184_v57 = vsel %vm353_vm1, %v5735_v16, -inf  ;;  %v5746_v54 = vld [vmem:[%s6850_s0 + $0x50] sm:$0xff] }
 0x3c9   :  { %v1244_v1 = vsel %vm353_vm1, %v5689_v12, 0.0  ;;  %4389 = vmatprep.subr.msk.mxu1 %vm46_vm0, %v5691_v40  ;;  %6881 = vst [vmem:[#allocation9_spill] sm:$0xff] %v5746_v54 }
 0x3ca   :  { %v5697_v43 = vpop.eup %4695  ;;  %1245 = vadd.xlane.f32.xlu0 %v1244_v1  ;;  %v5741_v14 = vpop.permute.xlu0 %1695 }
 0x3cb   :  { %v1253_v5 = vsel %vm353_vm1, %v5697_v43, 0.0 }
 0x3cc   :  { %v5703_v42 = vpop.eup %4697  ;;  %1254 = vadd.xlane.f32.xlu1 %v1253_v5  ;;  %v5750_v1 = vpop.permute.xlu1 %1870 }
 0x3cd   :  { %v1250_v6 = vsel %vm353_vm1, %v5703_v42, 0.0 }
 0x3ce   :  { %v5707_v15 = vpop.eup %4699  ;;  %1251 = vadd.xlane.f32.xlu0 %v1250_v6  ;;  %v5752_v5 = vpop.permute.xlu0 %1693 }
 0x3cf   :  { %v1259_v33 = vsel %vm353_vm1, %v5707_v15, 0.0 }
 0x3d0   :  { %v5713_v17 = vpop.eup %4701  ;;  %1260 = vadd.xlane.f32.xlu1 %v1259_v33  ;;  %v5754_v6 = vpop.permute.xlu1 %1868 }
 0x3d1   :  { %v1256_v8 = vsel %vm353_vm1, %v5713_v17, 0.0 }
 0x3d2   :  { %1257 = vadd.xlane.f32.xlu0 %v1256_v8  ;;  %v5756_v33 = vpop.permute.xlu0 %1691  ;;  %v5761_v8 = vld [vmem:[%s6850_s0 + $0x58] sm:$0xff] }
 0x3d3   :  { %6882 = vst [vmem:[#allocation10_spill] sm:$0xff] %v5761_v8 }
 0x3d4   :  { %1176 = vmax.xlane.f32.xlu1 %v1175_v48  ;;  %v5765_v48 = vpop.permute.xlu1 %1866 }
 0x3d6   :  { %1170 = vmax.xlane.f32.xlu0 %v1169_v0  ;;  %v5767_v0 = vpop.permute.xlu0 %1689 }
 0x3d8   :  { %1182 = vmax.xlane.f32.xlu1 %v1181_v7  ;;  %v5769_v7 = vpop.permute.xlu1 %1675 }
 0x3da   :  { %1167 = vmax.xlane.f32.xlu0 %v1166_v2  ;;  %v5771_v2 = vpop.permute.xlu0 %1673 }
 0x3dc   :  { %1188 = vmax.xlane.f32.xlu1 %v1187_v10 }
 0x3de   :  { %1173 = vmax.xlane.f32.xlu0 %v1172_v49 }
 0x3e2   :  { %1179 = vmax.xlane.f32.xlu0 %v1178_v41 }
 0x3e6   :  { %1185 = vmax.xlane.f32.xlu0 %v1184_v57 }
 0x3ed   :  { %1862 = vrot.lane.b32.xlu1 %v5746_v54, %s4896_s20 }
 0x3fc   :  { %1864 = vrot.lane.b32.xlu0 %v5761_v8, %s4896_s20 }
 0x409   :  { %v1243_v10 = vpop.xlane.xlu1 %1242 }
 0x40a   :  { %4703 = vrcp.f32 %v1243_v10 }
 0x40b   :  { %v1240_v49 = vpop.xlane.xlu0 %1239 }
 0x40c   :  { %4705 = vrcp.f32 %v1240_v49 }
 0x417   :  { %v4704_v41 = vpop.eup %4703 }
 0x418   :  { %v1303_v39 = vmul.f32 %v4704_v41, %v5657_v11 }
 0x419   :  { %v4706_v57 = vpop.eup %4705 }
 0x41a   :  { %v1302_v54 = vmul.f32 %v4706_v57, %v5659_v13 }
 0x41c   :  { %4321 = vmatprep.mubr.msk.f32.mxu0 %vm353_vm1, %v1302_v54 }
 0x41d   :  { %4322 = vmatmul.mubr.msk.f32.vlgmr.msra.gmra.mxu0 %vm353_vm1, %v1303_v39 }
 0x41e   :  { %4362 = vmatpush3.xpose.msk.msra.mxu0 %vm46_vm0, %v5675_v62 }
 0x41f   :  { %4363 = vmatprep.subr.msk.mxu0 %vm46_vm0, %v5673_v63 }
 0x422   :  { %4364 = vmatpush3.xpose.msk.msra.mxu0 %vm46_vm0, %v5673_v63 }
 0x423   :  { %4365 = vmatprep.subr.msk.mxu0 %vm46_vm0, %v5739_v51 }
 0x426   :  { %4366 = vmatpush3.xpose.msk.msra.mxu0 %vm46_vm0, %v5739_v51 }
 0x427   :  { %4367 = vmatprep.subr.msk.mxu0 %vm46_vm0, %v5681_v52 }
 0x42a   :  { %4368 = vmatpush3.xpose.msk.msra.mxu0 %vm46_vm0, %v5681_v52 }
 0x42b   :  { %4369 = vmatprep.subr.msk.mxu0 %vm46_vm0, %v5741_v14 }
 0x42e   :  { %4370 = vmatpush3.xpose.msk.msra.mxu0 %vm46_vm0, %v5741_v14 }
 0x42f   :  { %4371 = vmatprep.subr.msk.mxu0 %vm46_vm0, %v5752_v5 }
 0x432   :  { %4372 = vmatpush3.xpose.msk.msra.mxu0 %vm46_vm0, %v5752_v5 }
 0x433   :  { %4373 = vmatprep.subr.msk.mxu0 %vm46_vm0, %v5756_v33 }
 0x436   :  { %4374 = vmatpush3.xpose.msk.msra.mxu0 %vm46_vm0, %v5756_v33 }
 0x437   :  { %4375 = vmatprep.subr.msk.mxu0 %vm46_vm0, %v5767_v0 }
 0x43a   :  { %4376 = vmatpush3.xpose.msk.msra.mxu0 %vm46_vm0, %v5767_v0 }
 0x43b   :  { %4417 = vmatprep.subr.mxu0 %v5675_v62 }
 0x451   :  { %v1249_v39 = vpop.xlane.xlu1 %1248 }
 0x452   :  { %4707 = vrcp.f32 %v1249_v39 }
 0x453   :  { %v1246_v11 = vpop.xlane.xlu0 %1245 }
 0x454   :  { %4709 = vrcp.f32 %v1246_v11 }
 0x455   :  { %v1255_v13 = vpop.xlane.xlu1 %1254 }
 0x456   :  { %4711 = vrcp.f32 %v1255_v13 }
 0x457   :  { %v1252_v54 = vpop.xlane.xlu0 %1251 }
 0x458   :  { %4713 = vrcp.f32 %v1252_v54 }
 0x459   :  { %v1261_v10 = vpop.xlane.xlu1 %1260 }
 0x45a   :  { %4715 = vrcp.f32 %v1261_v10 }
 0x45b   :  { %v1258_v49 = vpop.xlane.xlu0 %1257 }
 0x45c   :  { %4717 = vrcp.f32 %v1258_v49 }
 0x45d   :  { %v1177_v41 = vpop.xlane.xlu1 %1176 }
 0x45e   :  { %v1201_v38 = vsub.f32 %v5685_v58, %v1177_v41 }
 0x45f   :  { %v1171_v57 = vpop.xlane.xlu0 %1170  ;;  %v4708_v8 = vpop.eup %4707 }
 0x460   :  { %v1199_v53 = vsub.f32 %v5671_v55, %v1171_v57  ;;  %v1305_v13 = vmul.f32 %v4708_v8, %v5683_v45  ;;  %v1228_v49 = vmul.f32 1.442695, %v1201_v38 }
 0x461   :  { %v4710_v46 = vpop.eup %4709 }
 0x462   :  { %v1224_v61 = vmul.f32 1.442695, %v1199_v53  ;;  %v1304_v39 = vmul.f32 %v4710_v46, %v5689_v12 }
 0x463   :  { %v1168_v11 = vpop.xlane.xlu0 %1167  ;;  %v4712_v37 = vpop.eup %4711 }
 0x464   :  { %4719 = vpow2.f32 %v1224_v61  ;;  %v1198_v54 = vsub.f32 %v5679_v47, %v1168_v11  ;;  %4324 = vmatprep.mubr.msk.f32.mxu0 %vm353_vm1, %v1304_v39  ;;  %v1307_v53 = vmul.f32 %v4712_v37, %v5697_v43 }
 0x465   :  { %v4714_v10 = vpop.eup %4713  ;;  %4325 = vmatmul.mubr.msk.f32.gmra.mxu0 %vm353_vm1, %v1305_v13 }
 0x466   :  { %v1222_v55 = vmul.f32 1.442695, %v1198_v54  ;;  %v1306_v57 = vmul.f32 %v4714_v10, %v5703_v42 }
 0x467   :  { %v4716_v58 = vpop.eup %4715 }
 0x468   :  { %4721 = vpow2.f32 %v1222_v55  ;;  %4327 = vmatprep.mubr.msk.f32.mxu0 %vm353_vm1, %v1306_v57  ;;  %v1309_v47 = vmul.f32 %v4716_v58, %v5707_v15 }
 0x469   :  { %v4718_v46 = vpop.eup %4717  ;;  %4328 = vmatmul.mubr.msk.f32.gmra.mxu0 %vm353_vm1, %v1307_v53  ;;  %4723 = vpow2.f32 %v1228_v49 }
 0x46a   :  { %v1308_v61 = vmul.f32 %v4718_v46, %v5713_v17  ;;  %v1183_v17 = vpop.xlane.xlu1 %1182 }
 0x46c   :  { %4330 = vmatprep.mubr.msk.f32.mxu0 %vm353_vm1, %v1308_v61 }
 0x46d   :  { %4331 = vmatmul.mubr.msk.f32.gmra.mxu0 %vm353_vm1, %v1309_v47 }
 0x46e   :  { %4377 = vmatprep.mubr.msk.f32.mxu0 %vm46_vm0, %v5771_v2 }
 0x471   :  { %v5825_v37 = vpop.eup %4719  ;;  %4378 = vmatmul.mubr.msk.f32.vlgmr.msra.gmra.mxu0 %vm46_vm0, %v5769_v7 }
 0x472   :  { %4418 = vmatpush3.msra.mxu0 %v5675_v62  ;;  %v1265_v38 = vsel %vm353_vm1, %v5825_v37, 0.0  ;;  %v5857_v62 = vld [vmem:[%s6850_s0 + $0x40] sm:$0xff] }
 0x473   :  { %4419 = vmatprep.subr.mxu0 %v5673_v63  ;;  %1266 = vadd.xlane.f32.xlu1 %v1265_v38 }
 0x474   :  { %4420 = vmatpush3.msra.mxu0 %v5673_v63 }
 0x475   :  { %v5834_v45 = vpop.eup %4721  ;;  %4421 = vmatprep.subr.mxu0 %v5739_v51 }
 0x476   :  { %4422 = vmatpush3.msra.mxu0 %v5739_v51  ;;  %v1262_v12 = vsel %vm353_vm1, %v5834_v45, 0.0  ;;  %v5840_v43 = vpop.eup %4723  ;;  %v5865_v51 = vld [vmem:[%s6850_s0 + $0x48] sm:$0xff]  ;;  %s4897_s0 = smov 104  }
 0x477   :  { %4423 = vmatprep.subr.mxu0 %v5681_v52  ;;  %1263 = vadd.xlane.f32.xlu0 %v1262_v12  ;;  %v1271_v63 = vsel %vm353_vm1, %v5840_v43, 0.0 }
 0x478   :  { %4424 = vmatpush3.msra.mxu0 %v5681_v52  ;;  %v1174_v52 = vpop.xlane.xlu0 %1173 }
 0x479   :  { %4425 = vmatprep.subr.mxu0 %v5741_v14  ;;  %v1200_v15 = vsub.f32 %v5699_v3, %v1174_v52  ;;  %v1189_v3 = vpop.xlane.xlu1 %1188 }
 0x47a   :  { %4426 = vmatpush3.msra.mxu0 %v5741_v14  ;;  %v1203_v14 = vsub.f32 %v5709_v35, %v1183_v17  ;;  %v1205_v41 = vsub.f32 %v5725_v56, %v1189_v3 }
 0x47b   :  { %4427 = vmatprep.subr.mxu0 %v5752_v5  ;;  %1272 = vadd.xlane.f32.xlu0 %v1271_v63 }
 0x47c   :  { %4428 = vmatpush3.msra.mxu0 %v5752_v5  ;;  %v1180_v42 = vpop.xlane.xlu0 %1179  ;;  %v1226_v5 = vmul.f32 1.442695, %v1200_v15  ;;  %v1236_v11 = vmul.f32 1.442695, %v1205_v41 }
 0x47d   :  { %4429 = vmatprep.subr.mxu0 %v5756_v33  ;;  %v1202_v8 = vsub.f32 %v5719_v18, %v1180_v42  ;;  %v5921_v53 = vpop.permute.xlu1 %1862 }
 0x47e   :  { %4430 = vmatpush3.msra.mxu0 %v5756_v33  ;;  %4725 = vpow2.f32 %v1226_v5 }
 0x47f   :  { %4431 = vmatprep.subr.mxu0 %v5767_v0  ;;  %v1230_v2 = vmul.f32 1.442695, %v1202_v8 }
 0x480   :  { %4432 = vmatpush3.msra.mxu0 %v5767_v0  ;;  %v1186_v33 = vpop.xlane.xlu0 %1185  ;;  %v1232_v0 = vmul.f32 1.442695, %v1203_v14 }
 0x481   :  { %v1204_v7 = vsub.f32 %v5735_v16, %v1186_v33 }
 0x482   :  { %4727 = vpow2.f32 %v1232_v0 }
 0x483   :  { %v1234_v39 = vmul.f32 1.442695, %v1204_v7  ;;  %4729 = vpow2.f32 %v1230_v2 }
 0x484   :  { %1858 = vrot.lane.b32.xlu1 %v5857_v62, %s4896_s20  ;;  %v5923_v58 = vpop.permute.xlu0 %1864 }
 0x485   :  { %4731 = vpow2.f32 %v1234_v39 }
 0x486   :  { %4733 = vpow2.f32 %v1236_v11 }
 0x48b   :  { %v5873_v13 = vpop.eup %4725 }
 0x48c   :  { %v1268_v35 = vsel %vm353_vm1, %v5873_v13, 0.0 }
 0x48f   :  { %v5877_v18 = vpop.eup %4727 }
 0x490   :  { %v5879_v54 = vpop.eup %4729  ;;  %v1277_v16 = vsel %vm353_vm1, %v5877_v18, 0.0 }
 0x491   :  { %1860 = vrot.lane.b32.xlu0 %v5865_v51, %s4896_s20  ;;  %v1274_v56 = vsel %vm353_vm1, %v5879_v54, 0.0 }
 0x492   :  { %v5883_v10 = vpop.eup %4731 }
 0x493   :  { %v1280_v49 = vsel %vm353_vm1, %v5883_v10, 0.0  ;;  %v5889_v55 = vpop.eup %4733 }
 0x494   :  { %v1283_v57 = vsel %vm353_vm1, %v5889_v55, 0.0 }
 0x4a8   :  { %1269 = vadd.xlane.f32.xlu1 %v1268_v35 }
 0x4ac   :  { %1278 = vadd.xlane.f32.xlu1 %v1277_v16 }
 0x4b0   :  { %1275 = vadd.xlane.f32.xlu1 %v1274_v56  ;;  %1281 = vadd.xlane.f32.xlu0 %v1280_v49 }
 0x4b4   :  { %1284 = vadd.xlane.f32.xlu1 %v1283_v57 }
 0x4c5   :  { %1844 = vrot.lane.b32.xlu1 %v5093_v19, %s4896_s20 }
 0x4c6   :  { %1842 = vrot.lane.b32.xlu0 %v4985_v9, %s4896_s20 }
 0x4c9   :  { %1679 = vrot.lane.b32.xlu1 %v5113_v22, %s4896_s20 }
 0x4ca   :  { %1677 = vrot.lane.b32.xlu0 %v5102_v20, %s4896_s20 }
 0x4cd   :  { %1683 = vrot.lane.b32.xlu1 %v5135_v26, %s4896_s20 }
 0x4ce   :  { %1681 = vrot.lane.b32.xlu0 %v5123_v24, %s4896_s20 }
 0x4d1   :  { %1687 = vrot.lane.b32.xlu1 %v5157_v30, %s4896_s20 }
 0x4d2   :  { %1685 = vrot.lane.b32.xlu0 %v5145_v28, %s4896_s20 }
 0x4d5   :  { %1848 = vrot.lane.b32.xlu1 %v5116_v23, %s4896_s20 }
 0x4d6   :  { %1846 = vrot.lane.b32.xlu0 %v5105_v21, %s4896_s20 }
 0x4d9   :  { %1852 = vrot.lane.b32.xlu1 %v5138_v27, %s4896_s20 }
 0x4da   :  { %1850 = vrot.lane.b32.xlu0 %v5126_v25, %s4896_s20 }
 0x4dd   :  { %1856 = vrot.lane.b32.xlu1 %v5160_v31, %s4896_s20 }
 0x4de   :  { %1854 = vrot.lane.b32.xlu0 %v5148_v29, %s4896_s20  ;;  %s4898_s20 = smov 8  }
 0x4fc   :  { %v1267_v46 = vpop.xlane.xlu1 %1266 }
 0x4fd   :  { %4735 = vrcp.f32 %v1267_v46 }
 0x500   :  { %v1264_v61 = vpop.xlane.xlu0 %1263  ;;  %v5965_v5 = vpop.permute.xlu1 %1858 }
 0x501   :  { %4737 = vrcp.f32 %v1264_v61 }
 0x50a   :  { %v4736_v47 = vpop.eup %4735 }
 0x50b   :  { %v1311_v63 = vmul.f32 %v4736_v47, %v5825_v37  ;;  %v5941_v37 = vpop.f32.mrf.mxu0 }
 0x50d   :  { %v5947_v52 = vpop.f32.mrf.mxu0 }
 0x50e   :  { %v4738_v38 = vpop.eup %4737 }
 0x50f   :  { %v1310_v12 = vmul.f32 %v4738_v38, %v5834_v45  ;;  %v1273_v45 = vpop.xlane.xlu0 %1272 }
 0x510   :  { %4739 = vrcp.f32 %v1273_v45 }
 0x511   :  { %4349 = vmatprep.mubr.msk.f32.mxu1 %vm353_vm1, %v1310_v12 }
 0x512   :  { %4350 = vmatmul.mubr.msk.f32.vlgmr.msra.gmra.mxu1 %vm353_vm1, %v1311_v63 }
 0x513   :  { %4390 = vmatpush3.xpose.msk.msra.mxu1 %vm46_vm0, %v5691_v40  ;;  %v5955_v15 = vpop.permute.xlu0 %1860 }
 0x514   :  { %4391 = vmatprep.subr.msk.mxu1 %vm46_vm0, %v5750_v1 }
 0x517   :  { %4392 = vmatpush3.xpose.msk.msra.mxu1 %vm46_vm0, %v5750_v1 }
 0x518   :  { %4393 = vmatprep.subr.msk.mxu1 %vm46_vm0, %v5754_v6 }
 0x51b   :  { %4394 = vmatpush3.xpose.msk.msra.mxu1 %vm46_vm0, %v5754_v6 }
 0x51c   :  { %4395 = vmatprep.subr.msk.mxu1 %vm46_vm0, %v5765_v48 }
 0x51d   :  { %v4740_v57 = vpop.eup %4739 }
 0x51e   :  { %v1313_v38 = vmul.f32 %v4740_v57, %v5840_v43 }
 0x51f   :  { %4396 = vmatpush3.xpose.msk.msra.mxu1 %vm46_vm0, %v5765_v48 }
 0x520   :  { %4397 = vmatprep.subr.msk.mxu1 %vm46_vm0, %v5923_v58 }
 0x523   :  { %4398 = vmatpush3.xpose.msk.msra.mxu1 %vm46_vm0, %v5923_v58 }
 0x524   :  { %4399 = vmatprep.subr.msk.mxu1 %vm46_vm0, %v5921_v53 }
 0x525   :  { %v5953_v42 = vpop.f32.mrf.mxu0 }
 0x527   :  { %4400 = vmatpush3.xpose.msk.msra.mxu1 %vm46_vm0, %v5921_v53  ;;  %v5959_v17 = vpop.f32.mrf.mxu0 }
 0x528   :  { %4401 = vmatprep.subr.msk.mxu1 %vm46_vm0, %v5955_v15 }
 0x529   :  { %v5963_v14 = vpop.f32.mrf.mxu0 }
 0x52b   :  { %4402 = vmatpush3.xpose.msk.msra.mxu1 %vm46_vm0, %v5955_v15  ;;  %v5969_v33 = vpop.f32.mrf.mxu0 }
 0x52c   :  { %4403 = vmatprep.subr.msk.mxu1 %vm46_vm0, %v5965_v5 }
 0x52d   :  { %v5973_v8 = vpop.f32.mrf.mxu0 }
 0x52f   :  { %4404 = vmatpush3.xpose.msk.msra.mxu1 %vm46_vm0, %v5965_v5  ;;  %v5977_v0 = vpop.f32.mrf.mxu0 }
 0x530   :  { %6883 = vst [vmem:[#allocation11_spill] sm:$0xff] %v5977_v0  ;;  %4445 = vmatprep.subr.mxu1 %v5691_v40 }
 0x531   :  { %v5980_v7 = vpop.f32.mrf.mxu0  ;;  %v1270_v3 = vpop.xlane.xlu1 %1269 }
 0x532   :  { %4741 = vrcp.f32 %v1270_v3  ;;  %v2014_v2 = vsel %vm353_vm1, %v5980_v7, -inf }
 0x533   :  { %v5984_v41 = vpop.f32.mrf.mxu0  ;;  %2015 = vmax.xlane.f32.xlu1 %v2014_v2 }
 0x534   :  { %v2011_v39 = vsel %vm353_vm1, %v5984_v41, -inf }
 0x535   :  { %v1279_v11 = vpop.xlane.xlu1 %1278  ;;  %2012 = vmax.xlane.f32.xlu0 %v2011_v39 }
 0x536   :  { %4743 = vrcp.f32 %v1279_v11 }
 0x539   :  { %v1276_v35 = vpop.xlane.xlu1 %1275  ;;  %v1282_v16 = vpop.xlane.xlu0 %1281 }
 0x53a   :  { %4745 = vrcp.f32 %v1276_v35 }
 0x53b   :  { %4747 = vrcp.f32 %v1282_v16 }
 0x53d   :  { %v1285_v56 = vpop.xlane.xlu1 %1284  ;;  %v1843_v49 = vpop.permute.xlu0 %1842 }
 0x53e   :  { %4749 = vrcp.f32 %v1285_v56 }
 0x53f   :  { %v4742_v46 = vpop.eup %4741 }
 0x540   :  { %v1312_v61 = vmul.f32 %v4742_v46, %v5873_v13 }
 0x541   :  { %v1845_v47 = vpop.permute.xlu1 %1844  ;;  %v1678_v12 = vpop.permute.xlu0 %1677 }
 0x542   :  { %4352 = vmatprep.mubr.msk.f32.mxu1 %vm353_vm1, %v1312_v61  ;;  %4380 = vmatprep.mubr.msk.f32.mxu0 %vm46_vm0, %v1678_v12 }
 0x543   :  { %4353 = vmatmul.mubr.msk.f32.gmra.mxu1 %vm353_vm1, %v1313_v38  ;;  %v4744_v3 = vpop.eup %4743 }
 0x544   :  { %v1315_v43 = vmul.f32 %v4744_v3, %v5877_v18 }
 0x545   :  { %v1680_v63 = vpop.permute.xlu1 %1679  ;;  %v1682_v45 = vpop.permute.xlu0 %1681 }
 0x546   :  { %4381 = vmatmul.mubr.msk.f32.gmra.mxu0 %vm46_vm0, %v1680_v63 }
 0x547   :  { %v4746_v2 = vpop.eup %4745  ;;  %4383 = vmatprep.mubr.msk.f32.mxu0 %vm46_vm0, %v1682_v45 }
 0x548   :  { %v4748_v39 = vpop.eup %4747  ;;  %v1314_v13 = vmul.f32 %v4746_v2, %v5879_v54 }
 0x549   :  { %v1684_v11 = vpop.permute.xlu1 %1683  ;;  %v1686_v35 = vpop.permute.xlu0 %1685  ;;  %v1316_v16 = vmul.f32 %v4748_v39, %v5883_v10 }
 0x54a   :  { %4355 = vmatprep.mubr.msk.f32.mxu1 %vm353_vm1, %v1314_v13  ;;  %4384 = vmatmul.mubr.msk.f32.gmra.mxu0 %vm46_vm0, %v1684_v11 }
 0x54b   :  { %v4750_v56 = vpop.eup %4749  ;;  %4356 = vmatmul.mubr.msk.f32.gmra.mxu1 %vm353_vm1, %v1315_v43  ;;  %4386 = vmatprep.mubr.msk.f32.mxu0 %vm46_vm0, %v1686_v35 }
 0x54c   :  { %4358 = vmatprep.mubr.msk.f32.mxu1 %vm353_vm1, %v1316_v16  ;;  %v1317_v57 = vmul.f32 %v4750_v56, %v5889_v55 }
 0x54d   :  { %v1688_v54 = vpop.permute.xlu1 %1687  ;;  %v1847_v18 = vpop.permute.xlu0 %1846 }
 0x54e   :  { %4387 = vmatmul.mubr.msk.f32.gmra.mxu0 %vm46_vm0, %v1688_v54 }
 0x54f   :  { %4359 = vmatmul.mubr.msk.f32.gmra.mxu1 %vm353_vm1, %v1317_v57 }
 0x550   :  { %4405 = vmatprep.mubr.msk.f32.mxu1 %vm46_vm0, %v1843_v49 }
 0x551   :  { %v1849_v46 = vpop.permute.xlu1 %1848  ;;  %v1851_v10 = vpop.permute.xlu0 %1850 }
 0x553   :  { %4406 = vmatmul.mubr.msk.f32.vlgmr.msra.gmra.mxu1 %vm46_vm0, %v1845_v47 }
 0x554   :  { %4446 = vmatpush3.msra.mxu1 %v5691_v40  ;;  %4408 = vmatprep.mubr.msk.f32.mxu1 %vm46_vm0, %v1847_v18 }
 0x555   :  { %4447 = vmatprep.subr.mxu1 %v5750_v1  ;;  %v1853_v55 = vpop.permute.xlu1 %1852  ;;  %v1855_v40 = vpop.permute.xlu0 %1854 }
 0x556   :  { %4448 = vmatpush3.msra.mxu1 %v5750_v1 }
 0x557   :  { %4449 = vmatprep.subr.mxu1 %v5754_v6  ;;  %4409 = vmatmul.mubr.msk.f32.gmra.mxu1 %vm46_vm0, %v1849_v46 }
 0x558   :  { %4450 = vmatpush3.msra.mxu1 %v5754_v6  ;;  %4411 = vmatprep.mubr.msk.f32.mxu1 %vm46_vm0, %v1851_v10 }
 0x559   :  { %4451 = vmatprep.subr.mxu1 %v5765_v48  ;;  %v1857_v1 = vpop.permute.xlu1 %1856 }
 0x55a   :  { %4452 = vmatpush3.msra.mxu1 %v5765_v48 }
 0x55b   :  { %4453 = vmatprep.subr.mxu1 %v5923_v58  ;;  %4412 = vmatmul.mubr.msk.f32.gmra.mxu1 %vm46_vm0, %v1853_v55 }
 0x55c   :  { %4454 = vmatpush3.msra.mxu1 %v5923_v58  ;;  %4414 = vmatprep.mubr.msk.f32.mxu1 %vm46_vm0, %v1855_v40 }
 0x55d   :  { %4455 = vmatprep.subr.mxu1 %v5921_v53 }
 0x55e   :  { %4456 = vmatpush3.msra.mxu1 %v5921_v53 }
 0x55f   :  { %4457 = vmatprep.subr.mxu1 %v5955_v15  ;;  %4415 = vmatmul.mubr.msk.f32.gmra.mxu1 %vm46_vm0, %v1857_v1 }
 0x560   :  { %4458 = vmatpush3.msra.mxu1 %v5955_v15 }
 0x561   :  { %4459 = vmatprep.subr.mxu1 %v5965_v5 }
 0x562   :  { %4460 = vmatpush3.msra.mxu1 %v5965_v5 }
 0x5bc   :  { %v2016_v45 = vpop.xlane.xlu1 %2015 }
 0x5bd   :  { %v2060_v2 = vsub.f32 %v5980_v7, %v2016_v45 }
 0x5be   :  { %v2013_v3 = vpop.xlane.xlu0 %2012 }
 0x5bf   :  { %v2059_v39 = vsub.f32 %v5984_v41, %v2013_v3  ;;  %v2077_v13 = vmul.f32 1.442695, %v2060_v2 }
 0x5c1   :  { %4751 = vpow2.f32 %v2077_v13 }
 0x5ce   :  { %v6085_v11 = vpop.eup %4751 }
 0x5cf   :  { %v2110_v35 = vsel %vm353_vm1, %v6085_v11, 0.0 }
 0x5d2   :  { %v6093_v16 = vpop.f32.mrf.mxu1 }
 0x5d4   :  { %v6095_v7 = vpop.f32.mrf.mxu1 }
 0x603   :  { %v6097_v41 = vpop.f32.mrf.mxu1 }
 0x605   :  { %v6099_v56 = vpop.f32.mrf.mxu1 }
 0x606   :  { %v4382_v6 = vpop.f32.mrf.mxu0 }
 0x607   :  { %v2020_v48 = vsel %vm353_vm1, %v4382_v6, -inf }
 0x608   :  { %2021 = vmax.xlane.f32.xlu1 %v2020_v48  ;;  %v1813_v58 = vpop.f32.mrf.mxu0 }
 0x609   :  { %v2017_v49 = vsel %vm353_vm1, %v1813_v58, -inf }
 0x60a   :  { %2018 = vmax.xlane.f32.xlu0 %v2017_v49  ;;  %v6031_v53 = vpop.f32.mrf.mxu0 }
 0x60b   :  { %v2026_v61 = vsel %vm353_vm1, %v6031_v53, -inf  ;;  %v6101_v57 = vpop.f32.mrf.mxu1 }
 0x60c   :  { %2027 = vmax.xlane.f32.xlu1 %v2026_v61  ;;  %v6035_v47 = vpop.f32.mrf.mxu0 }
 0x60d   :  { %v2023_v15 = vsel %vm353_vm1, %v6035_v47, -inf  ;;  %v6103_v54 = vpop.f32.mrf.mxu1 }
 0x60e   :  { %2024 = vmax.xlane.f32.xlu0 %v2023_v15  ;;  %v6039_v5 = vpop.f32.mrf.mxu0 }
 0x60f   :  { %v2032_v38 = vsel %vm353_vm1, %v6039_v5, -inf  ;;  %v6105_v1 = vpop.f32.mrf.mxu1 }
 0x610   :  { %2033 = vmax.xlane.f32.xlu1 %v2032_v38  ;;  %v6043_v12 = vpop.f32.mrf.mxu0 }
 0x611   :  { %v2029_v63 = vsel %vm353_vm1, %v6043_v12, -inf }
 0x612   :  { %2030 = vmax.xlane.f32.xlu0 %v2029_v63 }
 0x621   :  { %2570 = vrot.lane.b32.xlu1 %v5570_v59, %s4897_s0  ;;  %v6884_v59 = vld [vmem:[#allocation5_spill] sm:$0xff] }
 0x622   :  { %6892 = vst [vmem:[#allocation5_spill] sm:$0xff] %v6093_v16 }
 0x625   :  { %2566 = vrot.lane.b32.xlu1 %v5577_v4, %s4897_s0  ;;  %v6885_v4 = vld [vmem:[#allocation6_spill] sm:$0xff] }
 0x626   :  { %6893 = vst [vmem:[#allocation6_spill] sm:$0xff] %v6095_v7 }
 0x628   :  { %2572 = vrot.lane.b32.xlu0 %v5584_v60, %s4897_s0  ;;  %v6886_v60 = vld [vmem:[#allocation7_spill] sm:$0xff] }
 0x629   :  { %2741 = vrot.lane.b32.xlu1 %v5591_v32, %s4897_s0  ;;  %v6887_v32 = vld [vmem:[#allocation4_spill] sm:$0xff]  ;;  %6894 = vst [vmem:[#allocation7_spill] sm:$0xff] %v6097_v41 }
 0x62a   :  { %6895 = vst [vmem:[#allocation4_spill] sm:$0xff] %v6099_v56 }
 0x62c   :  { %2568 = vrot.lane.b32.xlu0 %v5598_v50, %s4897_s0  ;;  %v6888_v50 = vld [vmem:[#allocation8_spill] sm:$0xff] }
 0x62d   :  { %2739 = vrot.lane.b32.xlu1 %v5605_v34, %s4897_s0  ;;  %v6889_v34 = vld [vmem:[#allocation3_spill] sm:$0xff]  ;;  %6896 = vst [vmem:[#allocation8_spill] sm:$0xff] %v6101_v57 }
 0x62e   :  { %6897 = vst [vmem:[#allocation3_spill] sm:$0xff] %v6103_v54 }
 0x630   :  { %2564 = vrot.lane.b32.xlu0 %v5612_v44, %s4897_s0  ;;  %v6890_v44 = vld [vmem:[#allocation9_spill] sm:$0xff] }
 0x631   :  { %2737 = vrot.lane.b32.xlu1 %v5619_v36, %s4897_s0  ;;  %v6891_v36 = vld [vmem:[#allocation10_spill] sm:$0xff]  ;;  %6898 = vst [vmem:[#allocation9_spill] sm:$0xff] %v6105_v1 }
 0x634   :  { %2562 = vrot.lane.b32.xlu0 %v6884_v59, %s4897_s0  ;;  %v6109_v59 = vpop.f32.mrf.mxu1 }
 0x635   :  { %2735 = vrot.lane.b32.xlu1 %v6885_v4, %s4897_s0  ;;  %6899 = vst [vmem:[#allocation10_spill] sm:$0xff] %v6109_v59 }
 0x638   :  { %2560 = vrot.lane.b32.xlu0 %v6886_v60, %s4897_s0 }
 0x639   :  { %2544 = vrot.lane.b32.xlu1 %v6887_v32, %s4897_s0 }
 0x63c   :  { %2558 = vrot.lane.b32.xlu0 %v6888_v50, %s4897_s0 }
 0x63d   :  { %2546 = vrot.lane.b32.xlu1 %v5102_v20, %s4897_s0  ;;  %v2075_v20 = vmul.f32 1.442695, %v2059_v39 }
 0x63f   :  { %4753 = vpow2.f32 %v2075_v20 }
 0x640   :  { %2542 = vrot.lane.b32.xlu0 %v6889_v34, %s4897_s0  ;;  %v6113_v34 = vpop.f32.mrf.mxu1 }
 0x641   :  { %2731 = vrot.lane.b32.xlu1 %v6890_v44, %s4897_s0 }
 0x644   :  { %2733 = vrot.lane.b32.xlu0 %v6891_v36, %s4897_s0 }
 0x648   :  { %2548 = vrot.lane.b32.xlu0 %v5113_v22, %s4897_s0 }
 0x64c   :  { %v6087_v43 = vpop.eup %4753 }
 0x64d   :  { %v2107_v22 = vsel %vm353_vm1, %v6087_v43, 0.0 }
 0x665   :  { %2111 = vadd.xlane.f32.xlu1 %v2110_v35 }
 0x667   :  { %2108 = vadd.xlane.f32.xlu0 %v2107_v22 }
 0x691   :  { %v2022_v18 = vpop.xlane.xlu1 %2021 }
 0x692   :  { %v2062_v46 = vsub.f32 %v4382_v6, %v2022_v18 }
 0x693   :  { %v2019_v10 = vpop.xlane.xlu0 %2018 }
 0x694   :  { %v2081_v55 = vmul.f32 1.442695, %v2062_v46  ;;  %v2061_v40 = vsub.f32 %v1813_v58, %v2019_v10 }
 0x695   :  { %v2028_v48 = vpop.xlane.xlu1 %2027 }
 0x696   :  { %4755 = vpow2.f32 %v2081_v55  ;;  %v2079_v49 = vmul.f32 1.442695, %v2061_v40  ;;  %v2064_v61 = vsub.f32 %v6031_v53, %v2028_v48 }
 0x697   :  { %v2025_v15 = vpop.xlane.xlu0 %2024 }
 0x698   :  { %4757 = vpow2.f32 %v2079_v49  ;;  %v2085_v38 = vmul.f32 1.442695, %v2064_v61  ;;  %v2063_v63 = vsub.f32 %v6035_v47, %v2025_v15  ;;  %v6121_v47 = vpop.f32.mrf.mxu1 }
 0x699   :  { %v2034_v4 = vpop.xlane.xlu1 %2033 }
 0x69a   :  { %4759 = vpow2.f32 %v2085_v38  ;;  %v2083_v6 = vmul.f32 1.442695, %v2063_v63  ;;  %v2066_v60 = vsub.f32 %v6039_v5, %v2034_v4  ;;  %v6127_v3 = vpop.f32.mrf.mxu1  ;;  %v2038_v38 = vsel %vm353_vm1, %v6113_v34, -inf }
 0x69b   :  { %v2031_v58 = vpop.xlane.xlu0 %2030  ;;  %v2044_v61 = vsel %vm353_vm1, %v6127_v3, -inf }
 0x69c   :  { %4761 = vpow2.f32 %v2083_v6  ;;  %v2089_v32 = vmul.f32 1.442695, %v2066_v60  ;;  %v2065_v50 = vsub.f32 %v6043_v12, %v2031_v58  ;;  %v6141_v35 = vpop.f32.mrf.mxu1  ;;  %v2035_v6 = vsel %vm353_vm1, %v6121_v47, -inf }
 0x69d   :  { %v6115_v53 = vpop.permute.xlu1 %2570  ;;  %v2041_v58 = vsel %vm353_vm1, %v6141_v35, -inf }
 0x69e   :  { %4763 = vpow2.f32 %v2089_v32  ;;  %v2087_v44 = vmul.f32 1.442695, %v2065_v50  ;;  %v6151_v55 = vpop.f32.mrf.mxu1 }
 0x69f   :  { %v6117_v36 = vpop.permute.xlu0 %2572  ;;  %v2050_v63 = vsel %vm353_vm1, %v6151_v55, -inf }
 0x6a0   :  { %4765 = vpow2.f32 %v2087_v44  ;;  %4473 = vmatprep.subr.msk.mxu0 %vm46_vm0, %v6117_v36  ;;  %v6161_v15 = vpop.f32.mrf.mxu1 }
 0x6a1   :  { %v6123_v5 = vpop.permute.xlu1 %2566  ;;  %v2047_v32 = vsel %vm353_vm1, %v6161_v15, -inf }
 0x6a2   :  { %v6167_v4 = vpop.f32.mrf.mxu1 }
 0x6a3   :  { %v6125_v45 = vpop.eup %4755  ;;  %v2056_v60 = vsel %vm353_vm1, %v6167_v4, -inf }
 0x6a4   :  { %v2116_v12 = vsel %vm353_vm1, %v6125_v45, 0.0  ;;  %v6177_v50 = vpop.f32.mrf.mxu1 }
 0x6a5   :  { %v6131_v2 = vpop.eup %4757  ;;  %2117 = vadd.xlane.f32.xlu1 %v2116_v12  ;;  %v6133_v39 = vpop.permute.xlu1 %2741  ;;  %v2053_v44 = vsel %vm353_vm1, %v6177_v50, -inf }
 0x6a6   :  { %v2113_v13 = vsel %vm353_vm1, %v6131_v2, 0.0  ;;  %4501 = vmatprep.subr.msk.mxu1 %vm46_vm0, %v6133_v39  ;;  %v6181_v12 = vpop.permute.xlu0 %2568 }
 0x6a7   :  { %v6139_v20 = vpop.eup %4759  ;;  %2114 = vadd.xlane.f32.xlu0 %v2113_v13 }
 0x6a8   :  { %v2122_v22 = vsel %vm353_vm1, %v6139_v20, 0.0 }
 0x6a9   :  { %v6145_v18 = vpop.eup %4761  ;;  %2123 = vadd.xlane.f32.xlu1 %v2122_v22  ;;  %v6185_v22 = vpop.permute.xlu1 %2739 }
 0x6aa   :  { %v2119_v46 = vsel %vm353_vm1, %v6145_v18, 0.0  ;;  %v6183_v13 = vpop.permute.xlu0 %2564 }
 0x6ab   :  { %v6149_v10 = vpop.eup %4763  ;;  %2120 = vadd.xlane.f32.xlu0 %v2119_v46 }
 0x6ac   :  { %v2128_v40 = vsel %vm353_vm1, %v6149_v10, 0.0 }
 0x6ad   :  { %v6155_v48 = vpop.eup %4765  ;;  %2129 = vadd.xlane.f32.xlu1 %v2128_v40  ;;  %v6191_v40 = vpop.permute.xlu1 %2737 }
 0x6ae   :  { %v2125_v49 = vsel %vm353_vm1, %v6155_v48, 0.0  ;;  %v6189_v46 = vpop.permute.xlu0 %2562 }
 0x6af   :  { %2126 = vadd.xlane.f32.xlu0 %v2125_v49 }
 0x6b1   :  { %2045 = vmax.xlane.f32.xlu1 %v2044_v61  ;;  %v6195_v61 = vpop.permute.xlu1 %2735 }
 0x6b2   :  { %v6193_v49 = vpop.permute.xlu0 %2560 }
 0x6b3   :  { %2039 = vmax.xlane.f32.xlu0 %v2038_v38 }
 0x6b5   :  { %2051 = vmax.xlane.f32.xlu1 %v2050_v63  ;;  %v6201_v63 = vpop.permute.xlu1 %2544 }
 0x6b6   :  { %v6197_v38 = vpop.permute.xlu0 %2558 }
 0x6b7   :  { %2036 = vmax.xlane.f32.xlu0 %v2035_v6 }
 0x6b9   :  { %2057 = vmax.xlane.f32.xlu1 %v2056_v60  ;;  %v6205_v60 = vpop.permute.xlu1 %2546 }
 0x6ba   :  { %v6203_v6 = vpop.permute.xlu0 %2542 }
 0x6bb   :  { %2042 = vmax.xlane.f32.xlu0 %v2041_v58 }
 0x6bd   :  { %v6209_v58 = vpop.permute.xlu1 %2731 }
 0x6bf   :  { %2048 = vmax.xlane.f32.xlu0 %v2047_v32 }
 0x6c3   :  { %2054 = vmax.xlane.f32.xlu0 %v2053_v44 }
 0x6ca   :  { %2552 = vrot.lane.b32.xlu1 %v5135_v26, %s4897_s0  ;;  %v6207_v26 = vpop.permute.xlu0 %2733 }
 0x6ce   :  { %v6211_v32 = vpop.permute.xlu0 %2548 }
 0x6d9   :  { %2550 = vrot.lane.b32.xlu0 %v5123_v24, %s4897_s0 }
 0x6ee   :  { %v2112_v44 = vpop.xlane.xlu1 %2111 }
 0x6ef   :  { %4767 = vrcp.f32 %v2112_v44 }
 0x6f0   :  { %v2109_v59 = vpop.xlane.xlu0 %2108 }
 0x6f1   :  { %4769 = vrcp.f32 %v2109_v59 }
 0x6fc   :  { %v4768_v1 = vpop.eup %4767 }
 0x6fd   :  { %v2172_v57 = vmul.f32 %v4768_v1, %v6085_v11 }
 0x6fe   :  { %v4770_v54 = vpop.eup %4769 }
 0x6ff   :  { %v2171_v24 = vmul.f32 %v4770_v54, %v6087_v43 }
 0x701   :  { %4433 = vmatprep.mubr.msk.f32.mxu0 %vm353_vm1, %v2171_v24 }
 0x702   :  { %4434 = vmatmul.mubr.msk.f32.vlgmr.msra.gmra.mxu0 %vm353_vm1, %v2172_v57 }
 0x703   :  { %4474 = vmatpush3.xpose.msk.msra.mxu0 %vm46_vm0, %v6117_v36 }
 0x704   :  { %4475 = vmatprep.subr.msk.mxu0 %vm46_vm0, %v6115_v53 }
 0x707   :  { %4476 = vmatpush3.xpose.msk.msra.mxu0 %vm46_vm0, %v6115_v53 }
 0x708   :  { %4477 = vmatprep.subr.msk.mxu0 %vm46_vm0, %v6181_v12 }
 0x70b   :  { %4478 = vmatpush3.xpose.msk.msra.mxu0 %vm46_vm0, %v6181_v12 }
 0x70c   :  { %4479 = vmatprep.subr.msk.mxu0 %vm46_vm0, %v6123_v5 }
 0x70f   :  { %4480 = vmatpush3.xpose.msk.msra.mxu0 %vm46_vm0, %v6123_v5 }
 0x710   :  { %4481 = vmatprep.subr.msk.mxu0 %vm46_vm0, %v6183_v13 }
 0x713   :  { %4482 = vmatpush3.xpose.msk.msra.mxu0 %vm46_vm0, %v6183_v13 }
 0x714   :  { %4483 = vmatprep.subr.msk.mxu0 %vm46_vm0, %v6189_v46 }
 0x717   :  { %4484 = vmatpush3.xpose.msk.msra.mxu0 %vm46_vm0, %v6189_v46 }
 0x718   :  { %4485 = vmatprep.subr.msk.mxu0 %vm46_vm0, %v6193_v49 }
 0x71b   :  { %4486 = vmatpush3.xpose.msk.msra.mxu0 %vm46_vm0, %v6193_v49 }
 0x71c   :  { %4487 = vmatprep.subr.msk.mxu0 %vm46_vm0, %v6197_v38 }
 0x71f   :  { %4488 = vmatpush3.xpose.msk.msra.mxu0 %vm46_vm0, %v6197_v38 }
 0x720   :  { %4529 = vmatprep.subr.mxu0 %v6117_v36 }
 0x72e   :  { %v2118_v11 = vpop.xlane.xlu1 %2117 }
 0x72f   :  { %4771 = vrcp.f32 %v2118_v11 }
 0x730   :  { %v2115_v43 = vpop.xlane.xlu0 %2114 }
 0x731   :  { %4773 = vrcp.f32 %v2115_v43 }
 0x732   :  { %v2124_v57 = vpop.xlane.xlu1 %2123 }
 0x733   :  { %4775 = vrcp.f32 %v2124_v57 }
 0x734   :  { %v2121_v54 = vpop.xlane.xlu0 %2120 }
 0x735   :  { %4777 = vrcp.f32 %v2121_v54 }
 0x736   :  { %v2130_v1 = vpop.xlane.xlu1 %2129 }
 0x737   :  { %4779 = vrcp.f32 %v2130_v1 }
 0x738   :  { %v2127_v59 = vpop.xlane.xlu0 %2126 }
 0x739   :  { %4781 = vrcp.f32 %v2127_v59 }
 0x73a   :  { %v2046_v1 = vpop.xlane.xlu1 %2045 }
 0x73c   :  { %v2040_v44 = vpop.xlane.xlu0 %2039  ;;  %v4772_v24 = vpop.eup %4771 }
 0x73d   :  { %v2068_v56 = vsub.f32 %v6113_v34, %v2040_v44  ;;  %v2174_v11 = vmul.f32 %v4772_v24, %v6125_v45 }
 0x73e   :  { %v4774_v41 = vpop.eup %4773 }
 0x73f   :  { %v2093_v7 = vmul.f32 1.442695, %v2068_v56  ;;  %v2173_v16 = vmul.f32 %v4774_v41, %v6131_v2 }
 0x740   :  { %v2037_v0 = vpop.xlane.xlu0 %2036  ;;  %v4776_v43 = vpop.eup %4775 }
 0x741   :  { %4783 = vpow2.f32 %v2093_v7  ;;  %v2067_v57 = vsub.f32 %v6121_v47, %v2037_v0  ;;  %4436 = vmatprep.mubr.msk.f32.mxu0 %vm353_vm1, %v2173_v16  ;;  %v2176_v56 = vmul.f32 %v4776_v43, %v6139_v20  ;;  %v2052_v47 = vpop.xlane.xlu1 %2051 }
 0x742   :  { %v4778_v54 = vpop.eup %4777  ;;  %4437 = vmatmul.mubr.msk.f32.gmra.mxu0 %vm353_vm1, %v2174_v11 }
 0x743   :  { %v2091_v59 = vmul.f32 1.442695, %v2067_v57  ;;  %v2175_v34 = vmul.f32 %v4778_v54, %v6145_v18 }
 0x744   :  { %v2043_v44 = vpop.xlane.xlu0 %2042  ;;  %v4780_v41 = vpop.eup %4779 }
 0x745   :  { %4785 = vpow2.f32 %v2091_v59  ;;  %4439 = vmatprep.mubr.msk.f32.mxu0 %vm353_vm1, %v2175_v34  ;;  %v2178_v7 = vmul.f32 %v4780_v41, %v6149_v10  ;;  %v2058_v18 = vpop.xlane.xlu1 %2057 }
 0x746   :  { %v4782_v45 = vpop.eup %4781  ;;  %4440 = vmatmul.mubr.msk.f32.gmra.mxu0 %vm353_vm1, %v2176_v56 }
 0x747   :  { %v2177_v0 = vmul.f32 %v4782_v45, %v6155_v48 }
 0x748   :  { %v2049_v16 = vpop.xlane.xlu0 %2048 }
 0x749   :  { %4442 = vmatprep.mubr.msk.f32.mxu0 %vm353_vm1, %v2177_v0 }
 0x74a   :  { %4443 = vmatmul.mubr.msk.f32.gmra.mxu0 %vm353_vm1, %v2178_v7 }
 0x74b   :  { %4489 = vmatprep.mubr.msk.f32.mxu0 %vm46_vm0, %v6203_v6 }
 0x74c   :  { %v2055_v2 = vpop.xlane.xlu0 %2054 }
 0x74e   :  { %v6264_v20 = vpop.eup %4783  ;;  %4490 = vmatmul.mubr.msk.f32.vlgmr.msra.gmra.mxu0 %vm46_vm0, %v6201_v63  ;;  %v2553_v63 = vpop.permute.xlu1 %2552 }
 0x74f   :  { %4530 = vmatpush3.msra.mxu0 %v6117_v36  ;;  %4492 = vmatprep.mubr.msk.f32.mxu0 %vm46_vm0, %v6205_v60  ;;  %v2134_v10 = vsel %vm353_vm1, %v6264_v20, 0.0 }
 0x750   :  { %4531 = vmatprep.subr.mxu0 %v6115_v53  ;;  %2135 = vadd.xlane.f32.xlu1 %v2134_v10  ;;  %v2551_v48 = vpop.permute.xlu0 %2550 }
 0x751   :  { %4532 = vmatpush3.msra.mxu0 %v6115_v53  ;;  %v2069_v53 = vsub.f32 %v6141_v35, %v2043_v44 }
 0x752   :  { %v6275_v6 = vpop.eup %4785  ;;  %4533 = vmatprep.subr.mxu0 %v6181_v12  ;;  %4493 = vmatmul.mubr.msk.f32.gmra.mxu0 %vm46_vm0, %v6211_v32 }
 0x753   :  { %4534 = vmatpush3.msra.mxu0 %v6181_v12  ;;  %v2131_v36 = vsel %vm353_vm1, %v6275_v6, 0.0  ;;  %4495 = vmatprep.mubr.msk.f32.mxu0 %vm46_vm0, %v2551_v48  ;;  %v2072_v12 = vsub.f32 %v6151_v55, %v2052_v47 }
 0x754   :  { %4535 = vmatprep.subr.mxu0 %v6123_v5  ;;  %2132 = vadd.xlane.f32.xlu0 %v2131_v36 }
 0x755   :  { %4536 = vmatpush3.msra.mxu0 %v6123_v5  ;;  %v2070_v5 = vsub.f32 %v6127_v3, %v2046_v1  ;;  %v2101_v60 = vmul.f32 1.442695, %v2072_v12 }
 0x756   :  { %4537 = vmatprep.subr.mxu0 %v6183_v13  ;;  %4496 = vmatmul.mubr.msk.f32.gmra.mxu0 %vm46_vm0, %v2553_v63 }
 0x757   :  { %4538 = vmatpush3.msra.mxu0 %v6183_v13  ;;  %v2095_v13 = vmul.f32 1.442695, %v2069_v53 }
 0x758   :  { %4539 = vmatprep.subr.mxu0 %v6189_v46 }
 0x759   :  { %4540 = vmatpush3.msra.mxu0 %v6189_v46  ;;  %v2097_v46 = vmul.f32 1.442695, %v2070_v5  ;;  %4787 = vpow2.f32 %v2095_v13 }
 0x75a   :  { %4541 = vmatprep.subr.mxu0 %v6193_v49 }
 0x75b   :  { %4542 = vmatpush3.msra.mxu0 %v6193_v49  ;;  %v2071_v49 = vsub.f32 %v6161_v15, %v2049_v16  ;;  %4789 = vpow2.f32 %v2097_v46 }
 0x75c   :  { %4543 = vmatprep.subr.mxu0 %v6197_v38  ;;  %4791 = vpow2.f32 %v2101_v60 }
 0x75d   :  { %4544 = vmatpush3.msra.mxu0 %v6197_v38  ;;  %v2073_v38 = vsub.f32 %v6177_v50, %v2055_v2  ;;  %v2099_v32 = vmul.f32 1.442695, %v2071_v49 }
 0x75f   :  { %4793 = vpow2.f32 %v2099_v32 }
 0x761   :  { %2554 = vrot.lane.b32.xlu1 %v5145_v28, %s4897_s0  ;;  %v2074_v28 = vsub.f32 %v6167_v4, %v2058_v18 }
 0x763   :  { %v2105_v35 = vmul.f32 1.442695, %v2074_v28 }
 0x766   :  { %v6305_v3 = vpop.eup %4787 }
 0x767   :  { %v2137_v15 = vsel %vm353_vm1, %v6305_v3, 0.0 }
 0x768   :  { %v6307_v55 = vpop.eup %4789 }
 0x769   :  { %v6311_v24 = vpop.eup %4791  ;;  %v2140_v4 = vsel %vm353_vm1, %v6307_v55, 0.0 }
 0x76a   :  { %2729 = vrot.lane.b32.xlu0 %v5865_v51, %s4897_s0  ;;  %v2103_v51 = vmul.f32 1.442695, %v2073_v38  ;;  %v2146_v11 = vsel %vm353_vm1, %v6311_v24, 0.0 }
 0x76c   :  { %4795 = vpow2.f32 %v2103_v51  ;;  %v6313_v50 = vpop.eup %4793 }
 0x76d   :  { %4797 = vpow2.f32 %v2105_v35  ;;  %v2143_v57 = vsel %vm353_vm1, %v6313_v50, 0.0 }
 0x779   :  { %v6319_v43 = vpop.eup %4795 }
 0x77a   :  { %v2149_v54 = vsel %vm353_vm1, %v6319_v43, 0.0  ;;  %v6325_v1 = vpop.eup %4797 }
 0x77b   :  { %v2152_v59 = vsel %vm353_vm1, %v6325_v1, 0.0 }
 0x785   :  { %2138 = vadd.xlane.f32.xlu1 %v2137_v15 }
 0x789   :  { %2141 = vadd.xlane.f32.xlu0 %v2140_v4  ;;  %2147 = vadd.xlane.f32.xlu1 %v2146_v11 }
 0x78d   :  { %2144 = vadd.xlane.f32.xlu1 %v2143_v57  ;;  %2150 = vadd.xlane.f32.xlu0 %v2149_v54 }
 0x791   :  { %2153 = vadd.xlane.f32.xlu1 %v2152_v59 }
 0x7a2   :  { %2727 = vrot.lane.b32.xlu1 %v5857_v62, %s4897_s0 }
 0x7a3   :  { %2556 = vrot.lane.b32.xlu0 %v5157_v30, %s4897_s0 }
 0x7a6   :  { %2713 = vrot.lane.b32.xlu1 %v5093_v19, %s4897_s0 }
 0x7a7   :  { %2711 = vrot.lane.b32.xlu0 %v4985_v9, %s4897_s0 }
 0x7aa   :  { %2717 = vrot.lane.b32.xlu1 %v5116_v23, %s4897_s0 }
 0x7ab   :  { %2715 = vrot.lane.b32.xlu0 %v5105_v21, %s4897_s0 }
 0x7ae   :  { %2721 = vrot.lane.b32.xlu1 %v5138_v27, %s4897_s0 }
 0x7af   :  { %2719 = vrot.lane.b32.xlu0 %v5126_v25, %s4897_s0 }
 0x7b2   :  { %2725 = vrot.lane.b32.xlu1 %v5160_v31, %s4897_s0 }
 0x7b3   :  { %2723 = vrot.lane.b32.xlu0 %v5148_v29, %s4897_s0 }
 0x7c2   :  { %v6366_v25 = vpop.f32.mrf.mxu0 }
 0x7c4   :  { %v6372_v29 = vpop.f32.mrf.mxu0 }
 0x7d9   :  { %v2136_v19 = vpop.xlane.xlu1 %2135 }
 0x7da   :  { %4799 = vrcp.f32 %v2136_v19 }
 0x7dd   :  { %v2133_v9 = vpop.xlane.xlu0 %2132  ;;  %v2555_v30 = vpop.permute.xlu1 %2554 }
 0x7de   :  { %4801 = vrcp.f32 %v2133_v9  ;;  %4498 = vmatprep.mubr.msk.f32.mxu0 %vm46_vm0, %v2555_v30 }
 0x7e1   :  { %v6380_v34 = vpop.permute.xlu0 %2729 }
 0x7e7   :  { %v4800_v21 = vpop.eup %4799 }
 0x7e8   :  { %v2180_v62 = vmul.f32 %v4800_v21, %v6264_v20 }
 0x7eb   :  { %v4802_v23 = vpop.eup %4801 }
 0x7ec   :  { %v2179_v27 = vmul.f32 %v4802_v23, %v6275_v6 }
 0x7ee   :  { %4461 = vmatprep.mubr.msk.f32.mxu1 %vm353_vm1, %v2179_v27 }
 0x7ef   :  { %4462 = vmatmul.mubr.msk.f32.vlgmr.msra.gmra.mxu1 %vm353_vm1, %v2180_v62 }
 0x7f0   :  { %4502 = vmatpush3.xpose.msk.msra.mxu1 %vm46_vm0, %v6133_v39 }
 0x7f1   :  { %4503 = vmatprep.subr.msk.mxu1 %vm46_vm0, %v6185_v22 }
 0x7f4   :  { %4504 = vmatpush3.xpose.msk.msra.mxu1 %vm46_vm0, %v6185_v22 }
 0x7f5   :  { %4505 = vmatprep.subr.msk.mxu1 %vm46_vm0, %v6191_v40 }
 0x7f8   :  { %4506 = vmatpush3.xpose.msk.msra.mxu1 %vm46_vm0, %v6191_v40 }
 0x7f9   :  { %4507 = vmatprep.subr.msk.mxu1 %vm46_vm0, %v6195_v61 }
 0x7fc   :  { %4508 = vmatpush3.xpose.msk.msra.mxu1 %vm46_vm0, %v6195_v61 }
 0x7fd   :  { %4509 = vmatprep.subr.msk.mxu1 %vm46_vm0, %v6207_v26 }
 0x800   :  { %4510 = vmatpush3.xpose.msk.msra.mxu1 %vm46_vm0, %v6207_v26 }
 0x801   :  { %4511 = vmatprep.subr.msk.mxu1 %vm46_vm0, %v6209_v58 }
 0x802   :  { %v6378_v31 = vpop.f32.mrf.mxu0 }
 0x804   :  { %4512 = vmatpush3.xpose.msk.msra.mxu1 %vm46_vm0, %v6209_v58  ;;  %v6384_v44 = vpop.f32.mrf.mxu0 }
 0x805   :  { %4513 = vmatprep.subr.msk.mxu1 %vm46_vm0, %v6380_v34 }
 0x806   :  { %v6388_v56 = vpop.f32.mrf.mxu0 }
 0x808   :  { %4514 = vmatpush3.xpose.msk.msra.mxu1 %vm46_vm0, %v6380_v34  ;;  %v6392_v41 = vpop.f32.mrf.mxu0 }
 0x80a   :  { %v6394_v45 = vpop.f32.mrf.mxu0 }
 0x80c   :  { %v6396_v0 = vpop.f32.mrf.mxu0 }
 0x80e   :  { %v6398_v16 = vpop.f32.mrf.mxu0  ;;  %v2139_v7 = vpop.xlane.xlu1 %2138 }
 0x80f   :  { %4803 = vrcp.f32 %v2139_v7  ;;  %v2883_v47 = vsel %vm353_vm1, %v6398_v16, -inf }
 0x810   :  { %v6402_v2 = vpop.f32.mrf.mxu0  ;;  %2884 = vmax.xlane.f32.xlu1 %v2883_v47 }
 0x811   :  { %v2880_v20 = vsel %vm353_vm1, %v6402_v2, -inf }
 0x812   :  { %v6406_v18 = vpop.f32.mrf.mxu0  ;;  %v2148_v10 = vpop.xlane.xlu1 %2147  ;;  %2881 = vmax.xlane.f32.xlu0 %v2880_v20 }
 0x813   :  { %v2142_v48 = vpop.xlane.xlu0 %2141  ;;  %v2889_v46 = vsel %vm353_vm1, %v6406_v18, -inf }
 0x814   :  { %4805 = vrcp.f32 %v2142_v48  ;;  %v6408_v6 = vpop.f32.mrf.mxu0 }
 0x815   :  { %v2886_v36 = vsel %vm353_vm1, %v6408_v6, -inf  ;;  %4807 = vrcp.f32 %v2148_v10 }
 0x816   :  { %v2145_v63 = vpop.xlane.xlu1 %2144  ;;  %2887 = vmax.xlane.f32.xlu0 %v2886_v36  ;;  %v6412_v53 = vpop.f32.mrf.mxu0 }
 0x817   :  { %4809 = vrcp.f32 %v2145_v63  ;;  %v2151_v5 = vpop.xlane.xlu0 %2150  ;;  %v2895_v12 = vsel %vm353_vm1, %v6412_v53, -inf }
 0x818   :  { %4811 = vrcp.f32 %v2151_v5  ;;  %2896 = vmax.xlane.f32.xlu1 %v2895_v12  ;;  %v6416_v13 = vpop.f32.mrf.mxu0 }
 0x819   :  { %v2892_v38 = vsel %vm353_vm1, %v6416_v13, -inf }
 0x81a   :  { %v2154_v49 = vpop.xlane.xlu1 %2153  ;;  %2890 = vmax.xlane.f32.xlu0 %v2889_v46 }
 0x81b   :  { %4813 = vrcp.f32 %v2154_v49  ;;  %v2557_v60 = vpop.permute.xlu0 %2556 }
 0x81c   :  { %v4804_v32 = vpop.eup %4803  ;;  %4499 = vmatmul.mubr.msk.f32.gmra.mxu0 %vm46_vm0, %v2557_v60 }
 0x81d   :  { %v2181_v28 = vmul.f32 %v4804_v32, %v6305_v3 }
 0x81e   :  { %v2728_v51 = vpop.permute.xlu1 %2727  ;;  %2893 = vmax.xlane.f32.xlu0 %v2892_v38 }
 0x81f   :  { %4464 = vmatprep.mubr.msk.f32.mxu1 %vm353_vm1, %v2181_v28  ;;  %4515 = vmatprep.subr.msk.mxu1 %vm46_vm0, %v2728_v51  ;;  %v2712_v57 = vpop.permute.xlu0 %2711 }
 0x820   :  { %4516 = vmatpush3.xpose.msk.msra.mxu1 %vm46_vm0, %v2728_v51 }
 0x821   :  { %v4806_v35 = vpop.eup %4805  ;;  %4557 = vmatprep.subr.mxu1 %v6133_v39 }
 0x822   :  { %v2182_v15 = vmul.f32 %v4806_v35, %v6307_v55  ;;  %v4808_v4 = vpop.eup %4807  ;;  %v2714_v9 = vpop.permute.xlu1 %2713 }
 0x823   :  { %v2184_v59 = vmul.f32 %v4808_v4, %v6311_v24  ;;  %v2716_v21 = vpop.permute.xlu0 %2715 }
 0x824   :  { %v4810_v11 = vpop.eup %4809  ;;  %4465 = vmatmul.mubr.msk.f32.gmra.mxu1 %vm353_vm1, %v2182_v15 }
 0x825   :  { %v4812_v54 = vpop.eup %4811  ;;  %v2183_v3 = vmul.f32 %v4810_v11, %v6313_v50 }
 0x826   :  { %v2185_v19 = vmul.f32 %v4812_v54, %v6319_v43  ;;  %v2718_v50 = vpop.permute.xlu1 %2717 }
 0x827   :  { %4467 = vmatprep.mubr.msk.f32.mxu1 %vm353_vm1, %v2183_v3  ;;  %v2720_v24 = vpop.permute.xlu0 %2719 }
 0x828   :  { %v4814_v30 = vpop.eup %4813  ;;  %4468 = vmatmul.mubr.msk.f32.gmra.mxu1 %vm353_vm1, %v2184_v59 }
 0x829   :  { %4470 = vmatprep.mubr.msk.f32.mxu1 %vm353_vm1, %v2185_v19  ;;  %v2186_v55 = vmul.f32 %v4814_v30, %v6325_v1 }
 0x82a   :  { %v2722_v43 = vpop.permute.xlu1 %2721 }
 0x82b   :  { %v2724_v1 = vpop.permute.xlu0 %2723 }
 0x82c   :  { %4471 = vmatmul.mubr.msk.f32.gmra.mxu1 %vm353_vm1, %v2186_v55 }
 0x82d   :  { %4517 = vmatprep.mubr.msk.f32.mxu1 %vm46_vm0, %v2712_v57 }
 0x830   :  { %4518 = vmatmul.mubr.msk.f32.vlgmr.msra.gmra.mxu1 %vm46_vm0, %v2714_v9 }
 0x831   :  { %4558 = vmatpush3.msra.mxu1 %v6133_v39  ;;  %4520 = vmatprep.mubr.msk.f32.mxu1 %vm46_vm0, %v2716_v21  ;;  %v2726_v39 = vpop.permute.xlu1 %2725 }
 0x832   :  { %4559 = vmatprep.subr.mxu1 %v6185_v22 }
 0x833   :  { %4560 = vmatpush3.msra.mxu1 %v6185_v22 }
 0x834   :  { %4561 = vmatprep.subr.mxu1 %v6191_v40  ;;  %4521 = vmatmul.mubr.msk.f32.gmra.mxu1 %vm46_vm0, %v2718_v50 }
 0x835   :  { %4562 = vmatpush3.msra.mxu1 %v6191_v40  ;;  %4523 = vmatprep.mubr.msk.f32.mxu1 %vm46_vm0, %v2720_v24 }
 0x836   :  { %4563 = vmatprep.subr.mxu1 %v6195_v61 }
 0x837   :  { %4564 = vmatpush3.msra.mxu1 %v6195_v61 }
 0x838   :  { %4565 = vmatprep.subr.mxu1 %v6207_v26  ;;  %4524 = vmatmul.mubr.msk.f32.gmra.mxu1 %vm46_vm0, %v2722_v43 }
 0x839   :  { %4566 = vmatpush3.msra.mxu1 %v6207_v26  ;;  %4526 = vmatprep.mubr.msk.f32.mxu1 %vm46_vm0, %v2724_v1 }
 0x83a   :  { %4567 = vmatprep.subr.mxu1 %v6209_v58 }
 0x83b   :  { %4568 = vmatpush3.msra.mxu1 %v6209_v58 }
 0x83c   :  { %4569 = vmatprep.subr.mxu1 %v6380_v34  ;;  %4527 = vmatmul.mubr.msk.f32.gmra.mxu1 %vm46_vm0, %v2726_v39 }
 0x83d   :  { %4570 = vmatpush3.msra.mxu1 %v6380_v34 }
 0x83e   :  { %4571 = vmatprep.subr.mxu1 %v2728_v51 }
 0x83f   :  { %4572 = vmatpush3.msra.mxu1 %v2728_v51 }
 0x899   :  { %v2885_v7 = vpop.xlane.xlu1 %2884 }
 0x89a   :  { %v2929_v10 = vsub.f32 %v6398_v16, %v2885_v7 }
 0x89b   :  { %v2882_v40 = vpop.xlane.xlu0 %2881 }
 0x89c   :  { %v2928_v63 = vsub.f32 %v6402_v2, %v2882_v40  ;;  %v2946_v12 = vmul.f32 1.442695, %v2929_v10 }
 0x89e   :  { %v2944_v38 = vmul.f32 1.442695, %v2928_v63  ;;  %4815 = vpow2.f32 %v2946_v12 }
 0x89f   :  { %v2888_v62 = vpop.xlane.xlu0 %2887 }
 0x8a0   :  { %v2930_v32 = vsub.f32 %v6408_v6, %v2888_v62  ;;  %4817 = vpow2.f32 %v2944_v38 }
 0x8a1   :  { %v2897_v49 = vpop.xlane.xlu1 %2896 }
 0x8a2   :  { %v2933_v16 = vsub.f32 %v6412_v53, %v2897_v49 }
 0x8a3   :  { %v2891_v48 = vpop.xlane.xlu0 %2890 }
 0x8a4   :  { %v2931_v46 = vsub.f32 %v6406_v18, %v2891_v48  ;;  %v2948_v18 = vmul.f32 1.442695, %v2930_v32  ;;  %v2954_v57 = vmul.f32 1.442695, %v2933_v16 }
 0x8a6   :  { %v2950_v35 = vmul.f32 1.442695, %v2931_v46 }
 0x8a7   :  { %v2894_v28 = vpop.xlane.xlu0 %2893 }
 0x8a8   :  { %v2932_v4 = vsub.f32 %v6416_v13, %v2894_v28  ;;  %4819 = vpow2.f32 %v2950_v35 }
 0x8a9   :  { %4821 = vpow2.f32 %v2948_v18 }
 0x8aa   :  { %v2952_v3 = vmul.f32 1.442695, %v2932_v4  ;;  %4823 = vpow2.f32 %v2954_v57 }
 0x8ab   :  { %v6517_v50 = vpop.eup %4815 }
 0x8ac   :  { %4825 = vpow2.f32 %v2952_v3  ;;  %v2979_v39 = vsel %vm353_vm1, %v6517_v50, 0.0 }
 0x8ad   :  { %v6523_v1 = vpop.eup %4817 }
 0x8af   :  { %v6463_v26 = vpop.f32.mrf.mxu1 }
 0x8b1   :  { %v6469_v27 = vpop.f32.mrf.mxu1 }
 0x8b5   :  { %v6527_v40 = vpop.eup %4819 }
 0x8b6   :  { %v2985_v62 = vsel %vm353_vm1, %v6527_v40, 0.0 }
 0x8dc   :  { %v6459_v22 = vpop.f32.mrf.mxu0 }
 0x8dd   :  { %v2901_v61 = vsel %vm353_vm1, %v6459_v22, -inf }
 0x8de   :  { %2902 = vmax.xlane.f32.xlu1 %v2901_v61  ;;  %v6465_v23 = vpop.f32.mrf.mxu0  ;;  %v2976_v61 = vsel %vm353_vm1, %v6523_v1, 0.0 }
 0x8df   :  { %v2898_v58 = vsel %vm353_vm1, %v6465_v23, -inf }
 0x8e0   :  { %2899 = vmax.xlane.f32.xlu0 %v2898_v58  ;;  %v6531_v58 = vpop.eup %4821 }
 0x8e1   :  { %v6535_v7 = vpop.eup %4823  ;;  %v2982_v10 = vsel %vm353_vm1, %v6531_v58, 0.0 }
 0x8e2   :  { %v6539_v48 = vpop.eup %4825  ;;  %v2991_v63 = vsel %vm353_vm1, %v6535_v7, 0.0 }
 0x8e3   :  { %v2988_v12 = vsel %vm353_vm1, %v6539_v48, 0.0 }
 0x8e4   :  { %v6471_v34 = vpop.f32.mrf.mxu1 }
 0x8e6   :  { %v6473_v47 = vpop.f32.mrf.mxu1 }
 0x8e8   :  { %v6475_v20 = vpop.f32.mrf.mxu1 }
 0x8ea   :  { %v6478_v36 = vpop.f32.mrf.mxu1 }
 0x8ec   :  { %v6481_v5 = vpop.f32.mrf.mxu1 }
 0x8ee   :  { %v6484_v60 = vpop.f32.mrf.mxu1 }
 0x8f0   :  { %v6487_v51 = vpop.f32.mrf.mxu1 }
 0x8f1   :  { %v2907_v2 = vsel %vm353_vm1, %v6487_v51, -inf }
 0x8f2   :  { %2908 = vmax.xlane.f32.xlu1 %v2907_v2  ;;  %v6492_v15 = vpop.f32.mrf.mxu1 }
 0x8f3   :  { %v2904_v6 = vsel %vm353_vm1, %v6492_v15, -inf }
 0x8f4   :  { %2905 = vmax.xlane.f32.xlu0 %v2904_v6  ;;  %v6497_v11 = vpop.f32.mrf.mxu1 }
 0x8f5   :  { %v2913_v53 = vsel %vm353_vm1, %v6497_v11, -inf }
 0x8f6   :  { %2914 = vmax.xlane.f32.xlu1 %v2913_v53  ;;  %v6501_v54 = vpop.f32.mrf.mxu1 }
 0x8f7   :  { %v2910_v59 = vsel %vm353_vm1, %v6501_v54, -inf }
 0x8f8   :  { %2911 = vmax.xlane.f32.xlu0 %v2910_v59  ;;  %v6505_v13 = vpop.f32.mrf.mxu1 }
 0x8f9   :  { %v2919_v19 = vsel %vm353_vm1, %v6505_v13, -inf }
 0x8fa   :  { %2920 = vmax.xlane.f32.xlu1 %v2919_v19  ;;  %v6509_v9 = vpop.f32.mrf.mxu1 }
 0x8fb   :  { %v2916_v30 = vsel %vm353_vm1, %v6509_v9, -inf }
 0x8fc   :  { %2917 = vmax.xlane.f32.xlu0 %v2916_v30  ;;  %v6513_v55 = vpop.f32.mrf.mxu1 }
 0x8fd   :  { %v2925_v21 = vsel %vm353_vm1, %v6513_v55, -inf }
 0x8fe   :  { %2926 = vmax.xlane.f32.xlu1 %v2925_v21  ;;  %v6519_v24 = vpop.f32.mrf.mxu1 }
 0x8ff   :  { %v2922_v43 = vsel %vm353_vm1, %v6519_v24, -inf }
 0x900   :  { %2923 = vmax.xlane.f32.xlu0 %v2922_v43 }
 0x902   :  { %2980 = vadd.xlane.f32.xlu1 %v2979_v39 }
 0x904   :  { %2977 = vadd.xlane.f32.xlu0 %v2976_v61 }
 0x906   :  { %2986 = vadd.xlane.f32.xlu1 %v2985_v62 }
 0x908   :  { %2983 = vadd.xlane.f32.xlu0 %v2982_v10 }
 0x90a   :  { %2992 = vadd.xlane.f32.xlu1 %v2991_v63 }
 0x90c   :  { %2989 = vadd.xlane.f32.xlu0 %v2988_v12 }
 0x967   :  { %v2903_v46 = vpop.xlane.xlu1 %2902 }
 0x968   :  { %v2935_v49 = vsub.f32 %v6459_v22, %v2903_v46 }
 0x969   :  { %v2900_v38 = vpop.xlane.xlu0 %2899 }
 0x96a   :  { %v2958_v32 = vmul.f32 1.442695, %v2935_v49  ;;  %v2934_v28 = vsub.f32 %v6465_v23, %v2900_v38 }
 0x96c   :  { %4827 = vpow2.f32 %v2958_v32  ;;  %v2956_v16 = vmul.f32 1.442695, %v2934_v28 }
 0x96e   :  { %4829 = vpow2.f32 %v2956_v16 }
 0x979   :  { %v6547_v35 = vpop.eup %4827 }
 0x97a   :  { %v2997_v2 = vsel %vm353_vm1, %v6547_v35, 0.0 }
 0x97b   :  { %v6551_v18 = vpop.eup %4829  ;;  %2998 = vadd.xlane.f32.xlu1 %v2997_v2  ;;  %v2909_v4 = vpop.xlane.xlu1 %2908 }
 0x97c   :  { %v2937_v6 = vsub.f32 %v6487_v51, %v2909_v4  ;;  %v2994_v22 = vsel %vm353_vm1, %v6551_v18, 0.0 }
 0x97d   :  { %2995 = vadd.xlane.f32.xlu0 %v2994_v22  ;;  %v2906_v57 = vpop.xlane.xlu0 %2905 }
 0x97e   :  { %v2962_v23 = vmul.f32 1.442695, %v2937_v6  ;;  %v2936_v53 = vsub.f32 %v6492_v15, %v2906_v57 }
 0x97f   :  { %v2915_v3 = vpop.xlane.xlu1 %2914 }
 0x980   :  { %4831 = vpow2.f32 %v2962_v23  ;;  %v2960_v59 = vmul.f32 1.442695, %v2936_v53  ;;  %v2939_v19 = vsub.f32 %v6497_v11, %v2915_v3 }
 0x981   :  { %v2912_v30 = vpop.xlane.xlu0 %2911 }
 0x982   :  { %4833 = vpow2.f32 %v2960_v59  ;;  %v2966_v21 = vmul.f32 1.442695, %v2939_v19  ;;  %v2938_v43 = vsub.f32 %v6501_v54, %v2912_v30 }
 0x983   :  { %v2921_v39 = vpop.xlane.xlu1 %2920 }
 0x984   :  { %4835 = vpow2.f32 %v2966_v21  ;;  %v2964_v51 = vmul.f32 1.442695, %v2938_v43  ;;  %v2941_v61 = vsub.f32 %v6505_v13, %v2921_v39 }
 0x985   :  { %v2918_v62 = vpop.xlane.xlu0 %2917 }
 0x986   :  { %4837 = vpow2.f32 %v2964_v51  ;;  %v2970_v10 = vmul.f32 1.442695, %v2941_v61  ;;  %v2940_v15 = vsub.f32 %v6509_v9, %v2918_v62 }
 0x987   :  { %v2927_v63 = vpop.xlane.xlu1 %2926 }
 0x988   :  { %4839 = vpow2.f32 %v2970_v10  ;;  %v2968_v12 = vmul.f32 1.442695, %v2940_v15  ;;  %v2943_v11 = vsub.f32 %v6513_v55, %v2927_v63 }
 0x989   :  { %v2924_v46 = vpop.xlane.xlu0 %2923 }
 0x98a   :  { %4841 = vpow2.f32 %v2968_v12  ;;  %v2974_v49 = vmul.f32 1.442695, %v2943_v11  ;;  %v2942_v54 = vsub.f32 %v6519_v24, %v2924_v46 }
 0x98b   :  { %v2981_v38 = vpop.xlane.xlu1 %2980 }
 0x98c   :  { %4843 = vpow2.f32 %v2974_v49  ;;  %v2972_v32 = vmul.f32 1.442695, %v2942_v54 }
 0x98d   :  { %v6563_v28 = vpop.eup %4831  ;;  %4845 = vrcp.f32 %v2981_v38  ;;  %v2978_v13 = vpop.xlane.xlu0 %2977 }
 0x98e   :  { %4847 = vpow2.f32 %v2972_v32  ;;  %v3003_v9 = vsel %vm353_vm1, %v6563_v28, 0.0 }
 0x98f   :  { %v6567_v16 = vpop.eup %4833  ;;  %4849 = vrcp.f32 %v2978_v13  ;;  %3004 = vadd.xlane.f32.xlu1 %v3003_v9  ;;  %v2987_v55 = vpop.xlane.xlu1 %2986 }
 0x990   :  { %v3000_v2 = vsel %vm353_vm1, %v6567_v16, 0.0  ;;  %4851 = vrcp.f32 %v2987_v55 }
 0x991   :  { %v6571_v24 = vpop.eup %4835  ;;  %3001 = vadd.xlane.f32.xlu0 %v3000_v2  ;;  %v2984_v4 = vpop.xlane.xlu0 %2983 }
 0x992   :  { %4853 = vrcp.f32 %v2984_v4  ;;  %v3009_v6 = vsel %vm353_vm1, %v6571_v24, 0.0 }
 0x993   :  { %v6575_v22 = vpop.eup %4837  ;;  %3010 = vadd.xlane.f32.xlu1 %v3009_v6  ;;  %v2993_v57 = vpop.xlane.xlu1 %2992 }
 0x994   :  { %v3006_v23 = vsel %vm353_vm1, %v6575_v22, 0.0  ;;  %4855 = vrcp.f32 %v2993_v57 }
 0x995   :  { %v6579_v53 = vpop.eup %4839  ;;  %3007 = vadd.xlane.f32.xlu0 %v3006_v23  ;;  %v2990_v3 = vpop.xlane.xlu0 %2989 }
 0x996   :  { %4857 = vrcp.f32 %v2990_v3  ;;  %v3015_v59 = vsel %vm353_vm1, %v6579_v53, 0.0 }
 0x997   :  { %v6583_v19 = vpop.eup %4841  ;;  %3016 = vadd.xlane.f32.xlu1 %v3015_v59 }
 0x998   :  { %v3012_v30 = vsel %vm353_vm1, %v6583_v19, 0.0 }
 0x999   :  { %v6587_v21 = vpop.eup %4843  ;;  %3013 = vadd.xlane.f32.xlu0 %v3012_v30 }
 0x99a   :  { %v4846_v43 = vpop.eup %4845  ;;  %v3021_v39 = vsel %vm353_vm1, %v6587_v21, 0.0 }
 0x99b   :  { %v6591_v51 = vpop.eup %4847  ;;  %3022 = vadd.xlane.f32.xlu1 %v3021_v39  ;;  %v3041_v63 = vmul.f32 %v4846_v43, %v6517_v50 }
 0x99c   :  { %v4850_v61 = vpop.eup %4849  ;;  %v3018_v62 = vsel %vm353_vm1, %v6591_v51, 0.0 }
 0x99d   :  { %3019 = vadd.xlane.f32.xlu0 %v3018_v62  ;;  %v3040_v10 = vmul.f32 %v4850_v61, %v6523_v1  ;;  %v4852_v15 = vpop.eup %4851 }
 0x99e   :  { %v3043_v49 = vmul.f32 %v4852_v15, %v6527_v40 }
 0x99f   :  { %v4854_v12 = vpop.eup %4853  ;;  %4545 = vmatprep.mubr.msk.f32.mxu0 %vm353_vm1, %v3040_v10 }
 0x9a0   :  { %4546 = vmatmul.mubr.msk.f32.vlgmr.msra.gmra.mxu0 %vm353_vm1, %v3041_v63  ;;  %v3042_v11 = vmul.f32 %v4854_v12, %v6531_v58 }
 0x9a1   :  { %v4856_v46 = vpop.eup %4855 }
 0x9a2   :  { %4548 = vmatprep.mubr.msk.f32.mxu0 %vm353_vm1, %v3042_v11  ;;  %v3045_v50 = vmul.f32 %v4856_v46, %v6535_v7 }
 0x9a3   :  { %v4858_v54 = vpop.eup %4857 }
 0x9a4   :  { %4549 = vmatmul.mubr.msk.f32.gmra.mxu0 %vm353_vm1, %v3043_v49  ;;  %v3044_v1 = vmul.f32 %v4858_v54, %v6539_v48 }
 0x9a6   :  { %4551 = vmatprep.mubr.msk.f32.mxu0 %vm353_vm1, %v3044_v1 }
 0x9a8   :  { %4552 = vmatmul.mubr.msk.f32.gmra.mxu0 %vm353_vm1, %v3045_v50 }
 0x9ac   :  { %1610 = vrot.lane.b32.xlu1 %v5941_v37, %s4898_s20 }
 0x9b0   :  { %2477 = vrot.lane.b32.xlu1 %v6372_v29, %s4899_s25 }
 0x9b3   :  { %1608 = vrot.lane.b32.xlu0 %v5947_v52, %s4898_s20 }
 0x9b4   :  { %2479 = vrot.lane.b32.xlu1 %v6366_v25, %s4899_s25 }
 0xa04   :  { %v2999_v40 = vpop.xlane.xlu1 %2998 }
 0xa05   :  { %4859 = vrcp.f32 %v2999_v40 }
 0xa06   :  { %v2996_v58 = vpop.xlane.xlu0 %2995 }
 0xa07   :  { %4861 = vrcp.f32 %v2996_v58  ;;  %v6902_v58 = vld [vmem:[#allocation6_spill] sm:$0xff] }
 0xa12   :  { %v4860_v7 = vpop.eup %4859 }
 0xa13   :  { %v3047_v37 = vmul.f32 %v4860_v7, %v6547_v35 }
 0xa14   :  { %v4862_v48 = vpop.eup %4861 }
 0xa15   :  { %v3046_v38 = vmul.f32 %v4862_v48, %v6551_v18 }
 0xa17   :  { %4554 = vmatprep.mubr.msk.f32.mxu0 %vm353_vm1, %v3046_v38  ;;  %v6903_v38 = vld [vmem:[#allocation7_spill] sm:$0xff] }
 0xa18   :  { %4555 = vmatmul.mubr.msk.f32.gmra.mxu0 %vm353_vm1, %v3047_v37  ;;  %v3005_v29 = vpop.xlane.xlu1 %3004 }
 0xa19   :  { %4863 = vrcp.f32 %v3005_v29 }
 0xa1a   :  { %v3002_v52 = vpop.xlane.xlu0 %3001 }
 0xa1b   :  { %4865 = vrcp.f32 %v3002_v52  ;;  %v6904_v52 = vld [vmem:[#allocation4_spill] sm:$0xff] }
 0xa1c   :  { %v3011_v32 = vpop.xlane.xlu1 %3010 }
 0xa1d   :  { %4867 = vrcp.f32 %v3011_v32 }
 0xa1e   :  { %v3008_v25 = vpop.xlane.xlu0 %3007 }
 0xa1f   :  { %4869 = vrcp.f32 %v3008_v25 }
 0xa20   :  { %v3017_v13 = vpop.xlane.xlu1 %3016 }
 0xa21   :  { %4871 = vrcp.f32 %v3017_v13  ;;  %v6905_v13 = vld [vmem:[#allocation8_spill] sm:$0xff] }
 0xa22   :  { %v3014_v9 = vpop.xlane.xlu0 %3013 }
 0xa23   :  { %4873 = vrcp.f32 %v3014_v9 }
 0xa24   :  { %v3023_v55 = vpop.xlane.xlu1 %3022 }
 0xa25   :  { %4875 = vrcp.f32 %v3023_v55 }
 0xa26   :  { %v3020_v18 = vpop.xlane.xlu0 %3019  ;;  %v4864_v35 = vpop.eup %4863 }
 0xa27   :  { %4877 = vrcp.f32 %v3020_v18  ;;  %v3049_v57 = vmul.f32 %v4864_v35, %v6563_v28  ;;  %v6906_v18 = vld [vmem:[#allocation3_spill] sm:$0xff] }
 0xa28   :  { %v4866_v2 = vpop.eup %4865  ;;  %v1611_v4 = vpop.permute.xlu1 %1610 }
 0xa29   :  { %1658 = vst.msk [vmem:[#allocation2 + $0x8] sm:$0xff] %vm1656_vm2, %v1611_v4  ;;  %v3048_v6 = vmul.f32 %v4866_v2, %v6567_v16  ;;  %v6907_v4 = vld [vmem:[#allocation9_spill] sm:$0xff] }
 0xa2a   :  { %v1609_v23 = vpop.permute.xlu0 %1608  ;;  %v4868_v3 = vpop.eup %4867 }
 0xa2b   :  { %1657 = vst.msk [vmem:[#allocation2] sm:$0xff] %vm1656_vm2, %v1609_v23  ;;  %4573 = vmatprep.mubr.msk.f32.mxu1 %vm353_vm1, %v3048_v6  ;;  %v3051_v39 = vmul.f32 %v4868_v3, %v6571_v24  ;;  %v6908_v3 = vld [vmem:[#allocation10_spill] sm:$0xff] }
 0xa2c   :  { %v4870_v59 = vpop.eup %4869  ;;  %v2478_v30 = vpop.permute.xlu1 %2477  ;;  %4574 = vmatmul.mubr.msk.f32.vlgmr.msra.gmra.mxu1 %vm353_vm1, %v3049_v57 }
 0xa2d   :  { %2526 = vst.msk [vmem:[#allocation2] sm:$0xff] %vm2525_vm3, %v2478_v30  ;;  %v3050_v43 = vmul.f32 %v4870_v59, %v6575_v22 }
 0xa2e   :  { %v4872_v16 = vpop.eup %4871 }
 0xa2f   :  { %4576 = vmatprep.mubr.msk.f32.mxu1 %vm353_vm1, %v3050_v43  ;;  %v3053_v10 = vmul.f32 %v4872_v16, %v6579_v53  ;;  %v3429_v53 = vld [vmem:[%s6851_s1 + $0x10] sm:$0xff] }
 0xa30   :  { %v4874_v28 = vpop.eup %4873  ;;  %v2480_v61 = vpop.permute.xlu1 %2479  ;;  %4577 = vmatmul.mubr.msk.f32.gmra.mxu1 %vm353_vm1, %v3051_v39 }
 0xa31   :  { %2527 = vst.msk [vmem:[#allocation2 + $0x8] sm:$0xff] %vm2525_vm3, %v2480_v61  ;;  %v3052_v62 = vmul.f32 %v4874_v28, %v6583_v19  ;;  %v3430_v19 = vld [vmem:[%s6851_s1 + $0x18] sm:$0xff] }
 0xa32   :  { %v4876_v15 = vpop.eup %4875  ;;  %4585 = vmatprep.subr.mxu0 %v3430_v19 }
 0xa33   :  { %4579 = vmatprep.mubr.msk.f32.mxu1 %vm353_vm1, %v3052_v62  ;;  %v3055_v22 = vmul.f32 %v4876_v15, %v6587_v21  ;;  %4586 = vmatpush3.msra.mxu0 %v3430_v19  ;;  %v3428_v21 = vld [vmem:[%s6851_s1 + $0x8] sm:$0xff] }
 0xa34   :  { %v4878_v63 = vpop.eup %4877  ;;  %4580 = vmatmul.mubr.msk.f32.gmra.mxu1 %vm353_vm1, %v3053_v10  ;;  %4587 = vmatprep.subr.mxu0 %v3429_v53 }
 0xa35   :  { %v3054_v24 = vmul.f32 %v4878_v63, %v6591_v51  ;;  %4588 = vmatpush3.msra.mxu0 %v3429_v53  ;;  %v3427_v51 = vld [vmem:[%s6851_s1] sm:$0xff] }
 0xa36   :  { %4589 = vmatprep.subr.mxu0 %v3428_v21 }
 0xa37   :  { %4582 = vmatprep.mubr.msk.f32.mxu1 %vm353_vm1, %v3054_v24  ;;  %4590 = vmatpush3.msra.mxu0 %v3428_v21 }
 0xa38   :  { %4583 = vmatmul.mubr.msk.f32.gmra.mxu1 %vm353_vm1, %v3055_v22  ;;  %4591 = vmatprep.subr.mxu0 %v3427_v51 }
 0xa39   :  { %4592 = vmatpush3.msra.mxu0 %v3427_v51 }
 0xa60   :  { %v4547_v12 = vpop.f32.mrf.mxu0 }
 0xa61   :  { %3348 = vrot.lane.b32.xlu1 %v4547_v12, %s4900_s7 }
 0xa62   :  { %v3154_v11 = vpop.f32.mrf.mxu0 }
 0xa63   :  { %3346 = vrot.lane.b32.xlu0 %v3154_v11, %s4900_s7 }
 0xa64   :  { %v4550_v46 = vpop.f32.mrf.mxu0 }
 0xa65   :  { %1614 = vrot.lane.b32.xlu1 %v5953_v42, %s4898_s20 }
 0xa66   :  { %v3164_v49 = vpop.f32.mrf.mxu0 }
 0xa67   :  { %1612 = vrot.lane.b32.xlu0 %v5959_v17, %s4898_s20 }
 0xa68   :  { %v4553_v42 = vpop.f32.mrf.mxu0 }
 0xa69   :  { %2483 = vrot.lane.b32.xlu1 %v6378_v31, %s4899_s25 }
 0xa6a   :  { %v3174_v17 = vpop.f32.mrf.mxu0 }
 0xa6b   :  { %2481 = vrot.lane.b32.xlu0 %v6384_v44, %s4899_s25 }
 0xa6d   :  { %3352 = vrot.lane.b32.xlu1 %v4550_v46, %s4900_s7 }
 0xa6f   :  { %3350 = vrot.lane.b32.xlu0 %v3164_v49, %s4900_s7 }
 0xa71   :  { %1618 = vrot.lane.b32.xlu1 %v5963_v14, %s4898_s20  ;;  %v6900_v14 = vld [vmem:[#allocation11_spill] sm:$0xff] }
 0xa73   :  { %1616 = vrot.lane.b32.xlu0 %v5969_v33, %s4898_s20 }
 0xa75   :  { %2487 = vrot.lane.b32.xlu1 %v6388_v56, %s4899_s25 }
 0xa77   :  { %2485 = vrot.lane.b32.xlu0 %v6392_v41, %s4899_s25 }
 0xa79   :  { %3356 = vrot.lane.b32.xlu1 %v4553_v42, %s4900_s7 }
 0xa7b   :  { %3354 = vrot.lane.b32.xlu0 %v3174_v17, %s4900_s7 }
 0xa7d   :  { %1622 = vrot.lane.b32.xlu1 %v5973_v8, %s4898_s20 }
 0xa7f   :  { %1620 = vrot.lane.b32.xlu0 %v6900_v14, %s4898_s20 }
 0xa81   :  { %2491 = vrot.lane.b32.xlu1 %v6394_v45, %s4899_s25 }
 0xa83   :  { %2489 = vrot.lane.b32.xlu0 %v6396_v0, %s4899_s25  ;;  %v6901_v0 = vld [vmem:[#allocation5_spill] sm:$0xff] }
 0xad3   :  { %v3349_v33 = vpop.permute.xlu1 %3348 }
 0xad4   :  { %3396 = vst.msk [vmem:[#allocation2 + $0x8] sm:$0xff] %vm3394_vm4, %v3349_v33 }
 0xad5   :  { %v3347_v31 = vpop.permute.xlu0 %3346 }
 0xad6   :  { %3395 = vst.msk [vmem:[#allocation2] sm:$0xff] %vm3394_vm4, %v3347_v31 }
 0xad7   :  { %v1615_v44 = vpop.permute.xlu1 %1614 }
 0xad8   :  { %1660 = vst.msk [vmem:[#allocation2 + $0x18] sm:$0xff] %vm1656_vm2, %v1615_v44  ;;  %v4556_v8 = vpop.f32.mrf.mxu0 }
 0xad9   :  { %3360 = vrot.lane.b32.xlu1 %v4556_v8, %s4900_s7  ;;  %v1613_v56 = vpop.permute.xlu0 %1612 }
 0xada   :  { %1659 = vst.msk [vmem:[#allocation2 + $0x10] sm:$0xff] %vm1656_vm2, %v1613_v56  ;;  %v3184_v41 = vpop.f32.mrf.mxu0 }
 0xadb   :  { %v2484_v45 = vpop.permute.xlu1 %2483  ;;  %3358 = vrot.lane.b32.xlu0 %v3184_v41, %s4900_s7  ;;  %v3412_v50 = vld [vmem:[#allocation2 + $0x8] sm:$0xff] }
 0xadc   :  { %2529 = vst.msk [vmem:[#allocation2 + $0x18] sm:$0xff] %vm2525_vm3, %v2484_v45 }
 0xadd   :  { %1626 = vrot.lane.b32.xlu1 %v6901_v0, %s4898_s20  ;;  %v2482_v54 = vpop.permute.xlu0 %2481  ;;  %v3411_v1 = vld [vmem:[#allocation2] sm:$0xff] }
 0xade   :  { %2528 = vst.msk [vmem:[#allocation2 + $0x10] sm:$0xff] %vm2525_vm3, %v2482_v54  ;;  %4593 = vmatprep.mubr.msk.f32.mxu0 %vm3438_vm5, %v3411_v1 }
 0xadf   :  { %v3353_v40 = vpop.permute.xlu1 %3352  ;;  %1624 = vrot.lane.b32.xlu0 %v6902_v58, %s4898_s20  ;;  %4594 = vmatmul.mubr.msk.f32.vlgmr.msra.gmra.mxu0 %vm3438_vm5, %v3412_v50 }
 0xae0   :  { %3398 = vst.msk [vmem:[#allocation2 + $0x18] sm:$0xff] %vm3394_vm4, %v3353_v40 }
 0xae1   :  { %2495 = vrot.lane.b32.xlu1 %v6463_v26, %s4899_s25  ;;  %v3351_v7 = vpop.permute.xlu0 %3350 }
 0xae2   :  { %3397 = vst.msk [vmem:[#allocation2 + $0x10] sm:$0xff] %vm3394_vm4, %v3351_v7 }
 0xae3   :  { %v1619_v48 = vpop.permute.xlu1 %1618  ;;  %2493 = vrot.lane.b32.xlu0 %v6469_v27, %s4899_s25 }
 0xae4   :  { %1662 = vst.msk [vmem:[#allocation2 + $0x28] sm:$0xff] %vm1656_vm2, %v1619_v48  ;;  %v3844_v48 = vld [vmem:[%s6852_s2] ss:$0 sm:$0xff] }
 0xae5   :  { %1630 = vrot.lane.b32.xlu1 %v6903_v38, %s4898_s20  ;;  %v1617_v37 = vpop.permute.xlu0 %1616 }
 0xae6   :  { %1661 = vst.msk [vmem:[#allocation2 + $0x20] sm:$0xff] %vm1656_vm2, %v1617_v37 }
 0xae7   :  { %v2488_v29 = vpop.permute.xlu1 %2487  ;;  %1628 = vrot.lane.b32.xlu0 %v6904_v52, %s4898_s20  ;;  %v3414_v27 = vld [vmem:[#allocation2 + $0x18] sm:$0xff] }
 0xae8   :  { %2531 = vst.msk [vmem:[#allocation2 + $0x28] sm:$0xff] %vm2525_vm3, %v2488_v29 }
 0xae9   :  { %2499 = vrot.lane.b32.xlu1 %v6471_v34, %s4899_s25  ;;  %v2486_v26 = vpop.permute.xlu0 %2485  ;;  %v3413_v32 = vld [vmem:[#allocation2 + $0x10] sm:$0xff] }
 0xaea   :  { %2530 = vst.msk [vmem:[#allocation2 + $0x20] sm:$0xff] %vm2525_vm3, %v2486_v26  ;;  %4596 = vmatprep.mubr.msk.f32.mxu0 %vm3438_vm5, %v3413_v32 }
 0xaeb   :  { %v3357_v25 = vpop.permute.xlu1 %3356  ;;  %2497 = vrot.lane.b32.xlu0 %v6473_v47, %s4899_s25  ;;  %4597 = vmatmul.mubr.msk.f32.gmra.mxu0 %vm3438_vm5, %v3414_v27 }
 0xaec   :  { %3400 = vst.msk [vmem:[#allocation2 + $0x28] sm:$0xff] %vm3394_vm4, %v3357_v25  ;;  %v4575_v34 = vpop.f32.mrf.mxu1 }
 0xaed   :  { %1634 = vrot.lane.b32.xlu1 %v6905_v13, %s4898_s20  ;;  %v3355_v9 = vpop.permute.xlu0 %3354 }
 0xaee   :  { %3399 = vst.msk [vmem:[#allocation2 + $0x20] sm:$0xff] %vm3394_vm4, %v3355_v9  ;;  %v3291_v35 = vpop.f32.mrf.mxu1 }
 0xaef   :  { %v1623_v55 = vpop.permute.xlu1 %1622  ;;  %1632 = vrot.lane.b32.xlu0 %v6906_v18, %s4898_s20 }
 0xaf0   :  { %1664 = vst.msk [vmem:[#allocation2 + $0x38] sm:$0xff] %vm1656_vm2, %v1623_v55  ;;  %v4578_v23 = vpop.f32.mrf.mxu1 }
 0xaf1   :  { %2503 = vrot.lane.b32.xlu1 %v6475_v20, %s4899_s25  ;;  %v1621_v47 = vpop.permute.xlu0 %1620 }
 0xaf2   :  { %1663 = vst.msk [vmem:[#allocation2 + $0x30] sm:$0xff] %vm1656_vm2, %v1621_v47 }
 0xaf3   :  { %v2492_v2 = vpop.permute.xlu1 %2491  ;;  %2501 = vrot.lane.b32.xlu0 %v6478_v36, %s4899_s25  ;;  %v3416_v20 = vld [vmem:[#allocation2 + $0x28] sm:$0xff]  ;;  %v3301_v36 = vpop.f32.mrf.mxu1 }
 0xaf4   :  { %2533 = vst.msk [vmem:[#allocation2 + $0x38] sm:$0xff] %vm2525_vm3, %v2492_v2 }
 0xaf5   :  { %1638 = vrot.lane.b32.xlu1 %v6907_v4, %s4898_s20  ;;  %v2490_v6 = vpop.permute.xlu0 %2489  ;;  %v3415_v57 = vld [vmem:[#allocation2 + $0x20] sm:$0xff]  ;;  %v4581_v59 = vpop.f32.mrf.mxu1 }
 0xaf6   :  { %2532 = vst.msk [vmem:[#allocation2 + $0x30] sm:$0xff] %vm2525_vm3, %v2490_v6  ;;  %4599 = vmatprep.mubr.msk.f32.mxu0 %vm3438_vm5, %v3415_v57 }
 0xaf7   :  { %1636 = vrot.lane.b32.xlu0 %v6908_v3, %s4898_s20  ;;  %4600 = vmatmul.mubr.msk.f32.gmra.mxu0 %vm3438_vm5, %v3416_v20  ;;  %v3311_v30 = vpop.f32.mrf.mxu1 }
 0xaf9   :  { %2507 = vrot.lane.b32.xlu1 %v6481_v5, %s4899_s25  ;;  %v4584_v43 = vpop.f32.mrf.mxu1 }
 0xafb   :  { %2505 = vrot.lane.b32.xlu0 %v6484_v60, %s4899_s25  ;;  %v3321_v5 = vpop.f32.mrf.mxu1 }
 0xafd   :  { %3364 = vrot.lane.b32.xlu1 %v4575_v34, %s4900_s7 }
 0xaff   :  { %3362 = vrot.lane.b32.xlu0 %v3291_v35, %s4900_s7 }
 0xb01   :  { %3368 = vrot.lane.b32.xlu1 %v4578_v23, %s4900_s7 }
 0xb03   :  { %3366 = vrot.lane.b32.xlu0 %v3301_v36, %s4900_s7 }
 0xb05   :  { %3372 = vrot.lane.b32.xlu1 %v4581_v59, %s4900_s7 }
 0xb07   :  { %3370 = vrot.lane.b32.xlu0 %v3311_v30, %s4900_s7 }
 0xb09   :  { %3376 = vrot.lane.b32.xlu1 %v4584_v43, %s4900_s7 }
 0xb0b   :  { %3374 = vrot.lane.b32.xlu0 %v3321_v5, %s4900_s7 }
 0xb4b   :  { %v3361_v60 = vpop.permute.xlu1 %3360 }
 0xb4c   :  { %3402 = vst.msk [vmem:[#allocation2 + $0x38] sm:$0xff] %vm3394_vm4, %v3361_v60 }
 0xb4d   :  { %v3359_v39 = vpop.permute.xlu0 %3358 }
 0xb4e   :  { %3401 = vst.msk [vmem:[#allocation2 + $0x30] sm:$0xff] %vm3394_vm4, %v3359_v39 }
 0xb4f   :  { %v1627_v16 = vpop.permute.xlu1 %1626 }
 0xb50   :  { %1666 = vst.msk [vmem:[#allocation2 + $0x48] sm:$0xff] %vm1656_vm2, %v1627_v16 }
 0xb51   :  { %v1625_v28 = vpop.permute.xlu0 %1624 }
 0xb52   :  { %1665 = vst.msk [vmem:[#allocation2 + $0x40] sm:$0xff] %vm1656_vm2, %v1625_v28 }
 0xb53   :  { %v2496_v61 = vpop.permute.xlu1 %2495  ;;  %v3418_v15 = vld [vmem:[#allocation2 + $0x38] sm:$0xff] }
 0xb54   :  { %2535 = vst.msk [vmem:[#allocation2 + $0x48] sm:$0xff] %vm2525_vm3, %v2496_v61 }
 0xb55   :  { %v2494_v62 = vpop.permute.xlu0 %2493  ;;  %v3417_v10 = vld [vmem:[#allocation2 + $0x30] sm:$0xff] }
 0xb56   :  { %2534 = vst.msk [vmem:[#allocation2 + $0x40] sm:$0xff] %vm2525_vm3, %v2494_v62  ;;  %4602 = vmatprep.mubr.msk.f32.mxu0 %vm3438_vm5, %v3417_v10 }
 0xb57   :  { %v1631_v63 = vpop.permute.xlu1 %1630  ;;  %4603 = vmatmul.mubr.msk.f32.gmra.mxu0 %vm3438_vm5, %v3418_v15 }
 0xb58   :  { %1668 = vst.msk [vmem:[#allocation2 + $0x58] sm:$0xff] %vm1656_vm2, %v1631_v63 }
 0xb59   :  { %v1629_v24 = vpop.permute.xlu0 %1628 }
 0xb5a   :  { %1667 = vst.msk [vmem:[#allocation2 + $0x50] sm:$0xff] %vm1656_vm2, %v1629_v24 }
 0xb5b   :  { %v2500_v22 = vpop.permute.xlu1 %2499 }
 0xb5c   :  { %2537 = vst.msk [vmem:[#allocation2 + $0x58] sm:$0xff] %vm2525_vm3, %v2500_v22 }
 0xb5d   :  { %v2498_v19 = vpop.permute.xlu0 %2497 }
 0xb5e   :  { %2536 = vst.msk [vmem:[#allocation2 + $0x50] sm:$0xff] %vm2525_vm3, %v2498_v19 }
 0xb5f   :  { %v1635_v53 = vpop.permute.xlu1 %1634 }
 0xb60   :  { %1670 = vst.msk [vmem:[#allocation2 + $0x68] sm:$0xff] %vm1656_vm2, %v1635_v53 }
 0xb61   :  { %v1633_v21 = vpop.permute.xlu0 %1632 }
 0xb62   :  { %1669 = vst.msk [vmem:[#allocation2 + $0x60] sm:$0xff] %vm1656_vm2, %v1633_v21 }
 0xb63   :  { %v2504_v51 = vpop.permute.xlu1 %2503 }
 0xb64   :  { %2539 = vst.msk [vmem:[#allocation2 + $0x68] sm:$0xff] %vm2525_vm3, %v2504_v51 }
 0xb65   :  { %v2502_v12 = vpop.permute.xlu0 %2501 }
 0xb66   :  { %2538 = vst.msk [vmem:[#allocation2 + $0x60] sm:$0xff] %vm2525_vm3, %v2502_v12 }
 0xb67   :  { %v1639_v11 = vpop.permute.xlu1 %1638 }
 0xb68   :  { %1672 = vst.msk [vmem:[#allocation2 + $0x78] sm:$0xff] %vm1656_vm2, %v1639_v11 }
 0xb69   :  { %v1637_v46 = vpop.permute.xlu0 %1636 }
 0xb6a   :  { %1671 = vst.msk [vmem:[#allocation2 + $0x70] sm:$0xff] %vm1656_vm2, %v1637_v46 }
 0xb6b   :  { %v2508_v49 = vpop.permute.xlu1 %2507 }
 0xb6c   :  { %2541 = vst.msk [vmem:[#allocation2 + $0x78] sm:$0xff] %vm2525_vm3, %v2508_v49 }
 0xb6d   :  { %v2506_v42 = vpop.permute.xlu0 %2505 }
 0xb6e   :  { %2540 = vst.msk [vmem:[#allocation2 + $0x70] sm:$0xff] %vm2525_vm3, %v2506_v42 }
 0xb6f   :  { %v3365_v17 = vpop.permute.xlu1 %3364 }
 0xb70   :  { %3404 = vst.msk [vmem:[#allocation2 + $0x48] sm:$0xff] %vm3394_vm4, %v3365_v17 }
 0xb71   :  { %v3363_v14 = vpop.permute.xlu0 %3362 }
 0xb72   :  { %3403 = vst.msk [vmem:[#allocation2 + $0x40] sm:$0xff] %vm3394_vm4, %v3363_v14 }
 0xb73   :  { %v3369_v33 = vpop.permute.xlu1 %3368 }
 0xb74   :  { %3406 = vst.msk [vmem:[#allocation2 + $0x58] sm:$0xff] %vm3394_vm4, %v3369_v33 }
 0xb75   :  { %v3367_v31 = vpop.permute.xlu0 %3366 }
 0xb76   :  { %3405 = vst.msk [vmem:[#allocation2 + $0x50] sm:$0xff] %vm3394_vm4, %v3367_v31 }
 0xb77   :  { %v3373_v44 = vpop.permute.xlu1 %3372  ;;  %v3420_v41 = vld [vmem:[#allocation2 + $0x48] sm:$0xff] }
 0xb78   :  { %3408 = vst.msk [vmem:[#allocation2 + $0x68] sm:$0xff] %vm3394_vm4, %v3373_v44 }
 0xb79   :  { %v3371_v8 = vpop.permute.xlu0 %3370  ;;  %v3419_v56 = vld [vmem:[#allocation2 + $0x40] sm:$0xff] }
 0xb7a   :  { %3407 = vst.msk [vmem:[#allocation2 + $0x60] sm:$0xff] %vm3394_vm4, %v3371_v8  ;;  %4605 = vmatprep.mubr.msk.f32.mxu0 %vm3438_vm5, %v3419_v56 }
 0xb7b   :  { %v3377_v45 = vpop.permute.xlu1 %3376  ;;  %4606 = vmatmul.mubr.msk.f32.gmra.mxu0 %vm3438_vm5, %v3420_v41  ;;  %v3422_v1 = vld [vmem:[#allocation2 + $0x58] sm:$0xff] }
 0xb7c   :  { %3410 = vst.msk [vmem:[#allocation2 + $0x78] sm:$0xff] %vm3394_vm4, %v3377_v45 }
 0xb7d   :  { %v3375_v0 = vpop.permute.xlu0 %3374  ;;  %v3421_v54 = vld [vmem:[#allocation2 + $0x50] sm:$0xff] }
 0xb7e   :  { %3409 = vst.msk [vmem:[#allocation2 + $0x70] sm:$0xff] %vm3394_vm4, %v3375_v0  ;;  %4608 = vmatprep.mubr.msk.f32.mxu0 %vm3438_vm5, %v3421_v54 }
 0xb7f   :  { %4609 = vmatmul.mubr.msk.f32.gmra.mxu0 %vm3438_vm5, %v3422_v1  ;;  %v3424_v40 = vld [vmem:[#allocation2 + $0x68] sm:$0xff] }
 0xb81   :  { %v3423_v50 = vld [vmem:[#allocation2 + $0x60] sm:$0xff] }
 0xb82   :  { %4611 = vmatprep.mubr.msk.f32.mxu0 %vm3438_vm5, %v3423_v50 }
 0xb83   :  { %4612 = vmatmul.mubr.msk.f32.gmra.mxu0 %vm3438_vm5, %v3424_v40  ;;  %v3426_v7 = vld [vmem:[#allocation2 + $0x78] sm:$0xff] }
 0xb85   :  { %v3425_v58 = vld [vmem:[#allocation2 + $0x70] sm:$0xff] }
 0xb86   :  { %4614 = vmatprep.mubr.msk.f32.mxu0 %vm3438_vm5, %v3425_v58 }
 0xb87   :  { %4615 = vmatmul.mubr.msk.f32.gmra.mxu0 %vm3438_vm5, %v3426_v7 }
 0xb9f   :  { %v4595_v38 = vpop.f32.mrf.mxu0 }
 0xba0   :  { %v3559_v37 = vadd.f32 %v4595_v38, %v3844_v48 }
 0xba1   :  { %v3553_v29 = vpop.f32.mrf.mxu0 }
 0xba2   :  { %3633 = vst.msk [vmem:[%s6853_s3 + $0x8] sm:$0xff] %vm3438_vm5, %v3559_v37  ;;  %v3554_v52 = vadd.f32 %v3844_v48, %v3553_v29 }
 0xba4   :  { %3632 = vst.msk [vmem:[%s6853_s3] sm:$0xff] %vm3438_vm5, %v3554_v52 }
 0xbab   :  { %v4598_v26 = vpop.f32.mrf.mxu0 }
 0xbac   :  { %v3569_v32 = vadd.f32 %v4598_v26, %v3844_v48 }
 0xbad   :  { %v3563_v27 = vpop.f32.mrf.mxu0 }
 0xbae   :  { %3635 = vst.msk [vmem:[%s6853_s3 + $0x18] sm:$0xff] %vm3438_vm5, %v3569_v32  ;;  %v3564_v25 = vadd.f32 %v3844_v48, %v3563_v27 }
 0xbb0   :  { %3634 = vst.msk [vmem:[%s6853_s3 + $0x10] sm:$0xff] %vm3438_vm5, %v3564_v25 }
 0xbb7   :  { %v4601_v13 = vpop.f32.mrf.mxu0 }
 0xbb8   :  { %v3579_v9 = vadd.f32 %v4601_v13, %v3844_v48 }
 0xbb9   :  { %v3573_v34 = vpop.f32.mrf.mxu0 }
 0xbba   :  { %3637 = vst.msk [vmem:[%s6853_s3 + $0x28] sm:$0xff] %vm3438_vm5, %v3579_v9  ;;  %v3574_v55 = vadd.f32 %v3844_v48, %v3573_v34 }
 0xbbc   :  { %3636 = vst.msk [vmem:[%s6853_s3 + $0x20] sm:$0xff] %vm3438_vm5, %v3574_v55 }
 0xc17   :  { %v4604_v18 = vpop.f32.mrf.mxu0 }
 0xc18   :  { %v3589_v47 = vadd.f32 %v4604_v18, %v3844_v48 }
 0xc19   :  { %v3583_v35 = vpop.f32.mrf.mxu0 }
 0xc1a   :  { %3639 = vst.msk [vmem:[%s6853_s3 + $0x38] sm:$0xff] %vm3438_vm5, %v3589_v47  ;;  %v3584_v2 = vadd.f32 %v3844_v48, %v3583_v35 }
 0xc1c   :  { %3638 = vst.msk [vmem:[%s6853_s3 + $0x30] sm:$0xff] %vm3438_vm5, %v3584_v2 }
 0xc3b   :  { %v4607_v4 = vpop.f32.mrf.mxu0 }
 0xc3c   :  { %v3599_v6 = vadd.f32 %v4607_v4, %v3844_v48 }
 0xc3d   :  { %v3593_v57 = vpop.f32.mrf.mxu0 }
 0xc3e   :  { %3641 = vst.msk [vmem:[%s6853_s3 + $0x48] sm:$0xff] %vm3438_vm5, %v3599_v6  ;;  %v3594_v23 = vadd.f32 %v3844_v48, %v3593_v57 }
 0xc3f   :  { %v4610_v20 = vpop.f32.mrf.mxu0 }
 0xc40   :  { %3640 = vst.msk [vmem:[%s6853_s3 + $0x40] sm:$0xff] %vm3438_vm5, %v3594_v23  ;;  %v3609_v3 = vadd.f32 %v4610_v20, %v3844_v48 }
 0xc41   :  { %v3603_v36 = vpop.f32.mrf.mxu0 }
 0xc42   :  { %3643 = vst.msk [vmem:[%s6853_s3 + $0x58] sm:$0xff] %vm3438_vm5, %v3609_v3  ;;  %v3604_v59 = vadd.f32 %v3844_v48, %v3603_v36 }
 0xc43   :  { %v4613_v30 = vpop.f32.mrf.mxu0 }
 0xc44   :  { %3642 = vst.msk [vmem:[%s6853_s3 + $0x50] sm:$0xff] %vm3438_vm5, %v3604_v59  ;;  %v3619_v43 = vadd.f32 %v4613_v30, %v3844_v48 }
 0xc45   :  { %v3613_v5 = vpop.f32.mrf.mxu0 }
 0xc46   :  { %3645 = vst.msk [vmem:[%s6853_s3 + $0x68] sm:$0xff] %vm3438_vm5, %v3619_v43  ;;  %v3614_v60 = vadd.f32 %v3844_v48, %v3613_v5 }
 0xc47   :  { %v4616_v39 = vpop.f32.mrf.mxu0 }
 0xc48   :  { %3644 = vst.msk [vmem:[%s6853_s3 + $0x60] sm:$0xff] %vm3438_vm5, %v3614_v60  ;;  %v3629_v16 = vadd.f32 %v4616_v39, %v3844_v48 }
 0xc49   :  { %v3623_v28 = vpop.f32.mrf.mxu0 }
 0xc4a   :  { %3647 = vst.msk [vmem:[%s6853_s3 + $0x78] sm:$0xff] %vm3438_vm5, %v3629_v16  ;;  %v3624_v61 = vadd.f32 %v3844_v48, %v3623_v28 }
 0xc4c   :  { %3646 = vst.msk [vmem:[%s6853_s3 + $0x70] sm:$0xff] %vm3438_vm5, %v3624_v61 }

</bundles_post_ra>
